<compile_context>
chip_gen: v5e
topology: v5e:2x2
jax: 0.10.0
libtpu: 0.0.40
codegen_flags: <defaults>
</compile_context>

<pallas_src>
import functools

import numpy as np
import jax
import jax.numpy as jnp
from jax import lax
from jax.experimental import pallas as pl
from jax.experimental.pallas import tpu as pltpu

EPS = 1e-5     # BatchNorm eps (PyTorch default)
PAD = 8        # left halo rows per batch slab (>= 2*d_max, keeps data starts 8-aligned)


def _align8(n):
    return (n + 7) // 8 * 8


def _slab_strides(L, d_max):
    # per-batch row strides of the zero-padded conv input slabs
    S1 = _align8(L + 2 * d_max + PAD)          # conv1 input slab (holds L data rows)
    S2 = _align8(L + 4 * d_max + PAD)          # conv2 input slab (holds L+2d data rows)
    return S1, S2


def sohtcn_kernel(*refs, B, L, dils, S1, S2):
    (x_ref, rix1_ref, rix2_ref, pool_ref, wr_ref, br_ref) = refs[:6]
    nblk = len(dils)
    blk_refs = refs[6:6 + 8 * nblk]
    (wm1_ref, bm1_ref, wm2_ref, bm2_ref, o_ref, xp_ref, yp_ref) = refs[6 + 8 * nblk:]

    M1 = B * S1
    M2 = B * S2

    # Zero the padded slabs ONCE. Halo/pad rows are never written afterwards and the
    # data rows are fully overwritten by every block (dilations are non-decreasing).
    xp_ref[...] = jnp.zeros(xp_ref.shape, xp_ref.dtype)
    yp_ref[...] = jnp.zeros(yp_ref.shape, yp_ref.dtype)

    rix1 = rix1_ref[...]        # (M1, 1) int32: row index within its batch slab
    rix2 = rix2_ref[...]        # (M2, 1)

    def batch_norm_relu(y, mask, count, g_ref, be_ref):
        # train-mode BN (batch stats, biased variance) in one masked pass + ReLU
        ssum = jnp.sum(y * mask, axis=0, keepdims=True)
        ssq = jnp.sum((y * y) * mask, axis=0, keepdims=True)
        m = ssum * (1.0 / count)
        v = ssq * (1.0 / count) - m * m
        y = (y - m) * lax.rsqrt(v + EPS) * g_ref[...] + be_ref[...]
        return jnp.maximum(y, 0.0)

    h = x_ref[...]              # (B*L, C) current activation, channels padded to C

    for blk in range(nblk):
        d = dils[blk]
        L1 = L + 2 * d          # conv1 output length per batch element
        L2 = L + 4 * d          # conv2 output length per batch element
        (w1_ref, b1_ref, g1_ref, be1_ref,
         w2_ref, b2_ref, g2_ref, be2_ref) = blk_refs[8 * blk:8 * (blk + 1)]

        # residual path: 1x1 conv only for the first block, identity otherwise
        if blk == 0:
            res = jnp.dot(h, wr_ref[...], preferred_element_type=jnp.float32) + br_ref[...]
        else:
            res = h

        # scatter the activation into the zero-padded conv1 slab (8-aligned starts)
        for b in range(B):
            xp_ref[pl.ds(b * S1 + PAD, L), :] = h[b * L:(b + 1) * L, :]

        # dilated conv1 as ONE matmul: three taps concatenated along lanes (K = 3*C)
        shifts = [PAD - 2 * d + k * d for k in range(3)]
        cat = jnp.concatenate([xp_ref[pl.ds(s, M1), :] for s in shifts], axis=1)
        y1 = jnp.dot(cat, w1_ref[...], preferred_element_type=jnp.float32) + b1_ref[...]
        y1 = batch_norm_relu(y1, (rix1 < L1).astype(jnp.float32), float(B * L1),
                             g1_ref, be1_ref)

        # scatter the valid conv1 rows into the zero-padded conv2 slab
        for b in range(B):
            yp_ref[pl.ds(b * S2 + PAD, L1), :] = y1[b * S1:b * S1 + L1, :]

        # dilated conv2 as ONE matmul
        cat = jnp.concatenate([yp_ref[pl.ds(s, M2), :] for s in shifts], axis=1)
        y2 = jnp.dot(cat, w2_ref[...], preferred_element_type=jnp.float32) + b2_ref[...]
        y2 = batch_norm_relu(y2, (rix2 < L2).astype(jnp.float32), float(B * L2),
                             g2_ref, be2_ref)

        # slice each batch element back to length L and add the residual
        y2_valid = jnp.concatenate([y2[b * S2:b * S2 + L, :] for b in range(B)], axis=0)
        h = y2_valid + res      # (B*L, C)

    # head: global average pool (block-diagonal matmul) + 2-layer MLP
    pooled = jnp.dot(pool_ref[...], h, preferred_element_type=jnp.float32)        # (B, C)
    z = jnp.dot(pooled, wm1_ref[...], preferred_element_type=jnp.float32) + bm1_ref[...]
    z = jnp.maximum(z, 0.0)
    o_ref[...] = jnp.dot(z, wm2_ref[...], preferred_element_type=jnp.float32) + bm2_ref[...]


def soh_tcn_forward(x, params, *, embed):
    """x: (B, L, input_dim) -- same input convention as SOHTCN.forward."""
    B, L, in_dim = x.shape
    C = embed
    assert in_dim <= C
    dils = tuple(blk["dilation"] for blk in params["blocks"])
    assert list(dils) == sorted(dils), "blocks must have non-decreasing dilation"
    d_max = max(dils)
    S1, S2 = _slab_strides(L, d_max)
    M1, M2 = B * S1, B * S2

    # channel-pad the input so every block shares Cin == C (zero channels are inert)
    x2d = x.reshape(B * L, in_dim).astype(jnp.float32)
    x2d = jnp.pad(x2d, ((0, 0), (0, C - in_dim)))

    # row-within-batch index vectors (drive the BN valid-row masks in-kernel)
    rix1 = jnp.asarray((np.arange(M1, dtype=np.int32) % S1).reshape(M1, 1))
    rix2 = jnp.asarray((np.arange(M2, dtype=np.int32) % S2).reshape(M2, 1))

    # block-diagonal mean-pooling matrix: pooled = pool @ h
    pool = np.zeros((B, B * L), dtype=np.float32)
    for b in range(B):
        pool[b, b * L:(b + 1) * L] = 1.0 / L
    pool = jnp.asarray(pool)

    blk0 = params["blocks"][0]
    inputs = [x2d, rix1, rix2, pool, blk0["wr"], blk0["br"]]
    for blk in params["blocks"]:
        inputs += [blk["w1f"], blk["b1"], blk["g1"], blk["be1"],
                   blk["w2f"], blk["b2"], blk["g2"], blk["be2"]]
    hd = params["head"]
    inputs += [hd["wm1"], hd["bm1"], hd["wm2"], hd["bm2"]]

    vmem = pl.BlockSpec(memory_space=pltpu.MemorySpace.VMEM)
    kern = functools.partial(sohtcn_kernel, B=B, L=L, dils=dils, S1=S1, S2=S2)
    return pl.pallas_call(
        kern,
        out_shape=jax.ShapeDtypeStruct((B, 30), jnp.float32),
        in_specs=[vmem] * len(inputs),
        out_specs=vmem,
        scratch_shapes=[
            pltpu.VMEM((M1 + PAD, C), jnp.float32),   # zero-padded conv1 input slab
            pltpu.VMEM((M2 + PAD, C), jnp.float32),   # zero-padded conv2 input slab
        ],
        compiler_params=pltpu.CompilerParams(vmem_limit_bytes=48 * 1024 * 1024),
    )(*inputs)


def init_params(key, in_dim, embed):
    C = embed
    keys = jax.random.split(key, 24)

    def nrm(k, shape, scale=0.1):
        return (scale * jax.random.normal(k, shape)).astype(jnp.float32)

    ki = 0
    blocks = []
    for i in range(3):
        cin = in_dim if i == 0 else C
        w1 = nrm(keys[ki], (3, cin, C)); ki += 1     # conv1 weight (K, Cin, Cout)
        b1 = nrm(keys[ki], (1, C)); ki += 1
        w2 = nrm(keys[ki], (3, C, C)); ki += 1       # conv2 weight
        b2 = nrm(keys[ki], (1, C)); ki += 1
        # zero-pad conv1 input channels up to C and fuse the 3 taps along the K dim
        w1p = jnp.zeros((3, C, C), jnp.float32).at[:, :cin, :].set(w1)
        blk = dict(
            w1f=w1p.reshape(3 * C, C), b1=b1,
            g1=jnp.ones((1, C), jnp.float32), be1=jnp.zeros((1, C), jnp.float32),
            w2f=w2.reshape(3 * C, C), b2=b2,
            g2=jnp.ones((1, C), jnp.float32), be2=jnp.zeros((1, C), jnp.float32),
            dilation=2 ** i)
        if i == 0:
            wr = nrm(keys[ki], (cin, C)); ki += 1    # 1x1 residual conv (only block 0)
            br = nrm(keys[ki], (1, C)); ki += 1
            blk["wr"] = jnp.zeros((C, C), jnp.float32).at[:cin, :].set(wr)
            blk["br"] = br
        blocks.append(blk)
    hd = dict(
        wm1=nrm(keys[ki + 0], (C, C // 2)),
        bm1=nrm(keys[ki + 1], (1, C // 2)),
        wm2=nrm(keys[ki + 2], (C // 2, 30)),
        bm2=nrm(keys[ki + 3], (1, 30)))
    return dict(blocks=blocks, head=hd)


# ---------------- pure-JAX (non-Pallas) reference of the same forward pass ----------------

def _ref_dilated_conv(x, w_fused, bias, d):
    cin = x.shape[-1]
    cpad = w_fused.shape[0] // 3
    w = w_fused.reshape(3, cpad, -1)[:, :cin, :]
    lin = x.shape[1]
    lout = lin + 2 * d
    xp = jnp.pad(x, ((0, 0), (2 * d, 2 * d), (0, 0)))
    hp = jax.lax.Precision.HIGHEST
    out = sum(jnp.einsum("blc,cd->bld", xp[:, k * d:k * d + lout, :], w[k], precision=hp)
              for k in range(3))
    return out + bias


def _ref_bn_relu(y, g, be):
    m = jnp.mean(y, axis=(0, 1), keepdims=True)
    v = jnp.mean((y - m) ** 2, axis=(0, 1), keepdims=True)
    return jnp.maximum((y - m) * lax.rsqrt(v + EPS) * g + be, 0.0)


def reference_forward(x, params):
    B, L, _ = x.shape
    hp = jax.lax.Precision.HIGHEST
    h = x.astype(jnp.float32)
    for i, blk in enumerate(params["blocks"]):
        d = blk["dilation"]
        if i == 0:
            res = jnp.einsum("blc,cd->bld", h, blk["wr"][:h.shape[-1], :],
                             precision=hp) + blk["br"]
        else:
            res = h
        y = _ref_dilated_conv(h, blk["w1f"], blk["b1"], d)
        y = _ref_bn_relu(y, blk["g1"], blk["be1"])
        y = _ref_dilated_conv(y, blk["w2f"], blk["b2"], d)
        y = _ref_bn_relu(y, blk["g2"], blk["be2"])
        h = y[:, :L, :] + res
    pooled = jnp.mean(h, axis=1)
    hd = params["head"]
    z = jnp.maximum(jnp.dot(pooled, hd["wm1"], precision=hp) + hd["bm1"], 0.0)
    return jnp.dot(z, hd["wm2"], precision=hp) + hd["bm2"]


if __name__ == "__main__":
    # small but structure-consistent shapes; embed=128 keeps channels lane-dense
    B, L, IN_DIM, EMBED = 2, 16, 5, 128
    key = jax.random.PRNGKey(0)
    k_param, k_x = jax.random.split(key)
    params = init_params(k_param, IN_DIM, EMBED)
    x = jax.random.normal(k_x, (B, L, IN_DIM), dtype=jnp.float32)

    out = jax.block_until_ready(soh_tcn_forward(x, params, embed=EMBED))
    ref = jax.block_until_ready(reference_forward(x, params))

    assert out.shape == (B, 30), out.shape
    assert bool(jnp.all(jnp.isfinite(out)))
    assert bool(jnp.allclose(out, ref, rtol=1e-2, atol=1e-2)), \
        float(jnp.max(jnp.abs(out - ref)))
    print("KERNEL_OK")
</pallas_src>

<mosaic_0001>
module attributes {stable_mosaic.version = 11 : i64} {
  func.func @sohtcn_kernel(%arg0: memref<32x128xf32, #tpu.memory_space<vmem>>, %arg1: memref<64x1xi32, #tpu.memory_space<vmem>>, %arg2: memref<80x1xi32, #tpu.memory_space<vmem>>, %arg3: memref<2x32xf32, #tpu.memory_space<vmem>>, %arg4: memref<128x128xf32, #tpu.memory_space<vmem>>, %arg5: memref<1x128xf32, #tpu.memory_space<vmem>>, %arg6: memref<384x128xf32, #tpu.memory_space<vmem>>, %arg7: memref<1x128xf32, #tpu.memory_space<vmem>>, %arg8: memref<1x128xf32, #tpu.memory_space<vmem>>, %arg9: memref<1x128xf32, #tpu.memory_space<vmem>>, %arg10: memref<384x128xf32, #tpu.memory_space<vmem>>, %arg11: memref<1x128xf32, #tpu.memory_space<vmem>>, %arg12: memref<1x128xf32, #tpu.memory_space<vmem>>, %arg13: memref<1x128xf32, #tpu.memory_space<vmem>>, %arg14: memref<384x128xf32, #tpu.memory_space<vmem>>, %arg15: memref<1x128xf32, #tpu.memory_space<vmem>>, %arg16: memref<1x128xf32, #tpu.memory_space<vmem>>, %arg17: memref<1x128xf32, #tpu.memory_space<vmem>>, %arg18: memref<384x128xf32, #tpu.memory_space<vmem>>, %arg19: memref<1x128xf32, #tpu.memory_space<vmem>>, %arg20: memref<1x128xf32, #tpu.memory_space<vmem>>, %arg21: memref<1x128xf32, #tpu.memory_space<vmem>>, %arg22: memref<384x128xf32, #tpu.memory_space<vmem>>, %arg23: memref<1x128xf32, #tpu.memory_space<vmem>>, %arg24: memref<1x128xf32, #tpu.memory_space<vmem>>, %arg25: memref<1x128xf32, #tpu.memory_space<vmem>>, %arg26: memref<384x128xf32, #tpu.memory_space<vmem>>, %arg27: memref<1x128xf32, #tpu.memory_space<vmem>>, %arg28: memref<1x128xf32, #tpu.memory_space<vmem>>, %arg29: memref<1x128xf32, #tpu.memory_space<vmem>>, %arg30: memref<128x64xf32, #tpu.memory_space<vmem>>, %arg31: memref<1x64xf32, #tpu.memory_space<vmem>>, %arg32: memref<64x30xf32, #tpu.memory_space<vmem>>, %arg33: memref<1x30xf32, #tpu.memory_space<vmem>>, %arg34: memref<2x30xf32, #tpu.memory_space<vmem>>, %arg35: memref<72x128xf32, #tpu.memory_space<vmem>>, %arg36: memref<88x128xf32, #tpu.memory_space<vmem>>) attributes {dimension_semantics = [], scalar_prefetch = 0 : i64, scratch_operands = 2 : i64, tpu.core_type = #tpu.core_type<tc>} {
    %cst = arith.constant 0.000000e+00 : f32
    %0 = vector.broadcast %cst : f32 to vector<72x128xf32>
    %c0 = arith.constant 0 : index
    %c0_0 = arith.constant 0 : index
    %1 = vector.load %arg35[%c0, %c0_0] : memref<72x128xf32, #tpu.memory_space<vmem>>, vector<72x128xf32>
    tpu.vector_store %arg35[%c0, %c0_0], %0 {strides = array<i32>} : memref<72x128xf32, #tpu.memory_space<vmem>>, vector<72x128xf32>,
    %cst_1 = arith.constant 0.000000e+00 : f32
    %2 = vector.broadcast %cst_1 : f32 to vector<88x128xf32>
    %c0_2 = arith.constant 0 : index
    %c0_3 = arith.constant 0 : index
    %3 = vector.load %arg36[%c0_2, %c0_3] : memref<88x128xf32, #tpu.memory_space<vmem>>, vector<88x128xf32>
    tpu.vector_store %arg36[%c0_2, %c0_3], %2 {strides = array<i32>} : memref<88x128xf32, #tpu.memory_space<vmem>>, vector<88x128xf32>,
    %c0_4 = arith.constant 0 : index
    %c0_5 = arith.constant 0 : index
    %4 = vector.load %arg1[%c0_4, %c0_5] : memref<64x1xi32, #tpu.memory_space<vmem>>, vector<64x1xi32>
    %c0_6 = arith.constant 0 : index
    %c0_7 = arith.constant 0 : index
    %5 = vector.load %arg2[%c0_6, %c0_7] : memref<80x1xi32, #tpu.memory_space<vmem>>, vector<80x1xi32>
    %c0_8 = arith.constant 0 : index
    %c0_9 = arith.constant 0 : index
    %6 = vector.load %arg0[%c0_8, %c0_9] : memref<32x128xf32, #tpu.memory_space<vmem>>, vector<32x128xf32>
    %c0_10 = arith.constant 0 : index
    %c0_11 = arith.constant 0 : index
    %7 = vector.load %arg4[%c0_10, %c0_11] : memref<128x128xf32, #tpu.memory_space<vmem>>, vector<128x128xf32>
    %cst_12 = arith.constant dense<0.000000e+00> : vector<32x128xf32>
    %8 = tpu.matmul %6, %7, %cst_12 {dimension_numbers = #tpu.dot_dimension_numbers<[1], [0], [0], [1], [0, 0, 1, 1], [], []>} : vector<32x128xf32>, vector<128x128xf32>, vector<32x128xf32> -> vector<32x128xf32>
    %c0_13 = arith.constant 0 : index
    %c0_14 = arith.constant 0 : index
    %9 = vector.load %arg5[%c0_13, %c0_14] : memref<1x128xf32, #tpu.memory_space<vmem>>, vector<1x128xf32>
    %10 = vector.broadcast %9 : vector<1x128xf32> to vector<32x128xf32>
    %11 = arith.addf %8, %10 : vector<32x128xf32>
    %12 = vector.extract_strided_slice %6 {offsets = [0, 0], sizes = [16, 128], strides = [1, 1]} : vector<32x128xf32> to vector<16x128xf32>
    %c8 = arith.constant 8 : index
    %c0_15 = arith.constant 0 : index
    %13 = vector.load %arg35[%c8, %c0_15] : memref<72x128xf32, #tpu.memory_space<vmem>>, vector<16x128xf32>
    tpu.vector_store %arg35[%c8, %c0_15], %12 {strides = array<i32>} : memref<72x128xf32, #tpu.memory_space<vmem>>, vector<16x128xf32>,
    %14 = vector.extract_strided_slice %6 {offsets = [16, 0], sizes = [16, 128], strides = [1, 1]} : vector<32x128xf32> to vector<16x128xf32>
    %c40 = arith.constant 40 : index
    %c0_16 = arith.constant 0 : index
    %15 = vector.load %arg35[%c40, %c0_16] : memref<72x128xf32, #tpu.memory_space<vmem>>, vector<16x128xf32>
    tpu.vector_store %arg35[%c40, %c0_16], %14 {strides = array<i32>} : memref<72x128xf32, #tpu.memory_space<vmem>>, vector<16x128xf32>,
    %c6 = arith.constant 6 : index
    %c0_17 = arith.constant 0 : index
    %16 = vector.load %arg35[%c6, %c0_17] : memref<72x128xf32, #tpu.memory_space<vmem>>, vector<64x128xf32>
    %c7 = arith.constant 7 : index
    %c0_18 = arith.constant 0 : index
    %17 = vector.load %arg35[%c7, %c0_18] : memref<72x128xf32, #tpu.memory_space<vmem>>, vector<64x128xf32>
    %c8_19 = arith.constant 8 : index
    %c0_20 = arith.constant 0 : index
    %18 = vector.load %arg35[%c8_19, %c0_20] : memref<72x128xf32, #tpu.memory_space<vmem>>, vector<64x128xf32>
    %19 = tpu.concatenate %16, %17, %18 in 1 : vector<64x128xf32>, vector<64x128xf32>, vector<64x128xf32> -> vector<64x384xf32>
    %c0_21 = arith.constant 0 : index
    %c0_22 = arith.constant 0 : index
    %20 = vector.load %arg6[%c0_21, %c0_22] : memref<384x128xf32, #tpu.memory_space<vmem>>, vector<384x128xf32>
    %cst_23 = arith.constant dense<0.000000e+00> : vector<64x128xf32>
    %21 = tpu.matmul %19, %20, %cst_23 {dimension_numbers = #tpu.dot_dimension_numbers<[1], [0], [0], [1], [0, 0, 1, 1], [], []>} : vector<64x384xf32>, vector<384x128xf32>, vector<64x128xf32> -> vector<64x128xf32>
    %c0_24 = arith.constant 0 : index
    %c0_25 = arith.constant 0 : index
    %22 = vector.load %arg7[%c0_24, %c0_25] : memref<1x128xf32, #tpu.memory_space<vmem>>, vector<1x128xf32>
    %23 = vector.broadcast %22 : vector<1x128xf32> to vector<64x128xf32>
    %24 = arith.addf %21, %23 : vector<64x128xf32>
    %c18_i32 = arith.constant 18 : i32
    %25 = vector.broadcast %c18_i32 : i32 to vector<64x1xi32>
    %26 = arith.cmpi slt, %4, %25 : vector<64x1xi32>
    %27 = arith.extui %26 : vector<64x1xi1> to vector<64x1xi32>
    %28 = arith.sitofp %27 : vector<64x1xi32> to vector<64x1xf32>
    %29 = vector.broadcast %28 : vector<64x1xf32> to vector<64x128xf32>
    %30 = arith.mulf %24, %29 : vector<64x128xf32>
    %cst_26 = arith.constant dense<0.000000e+00> : vector<128xf32>
    %31 = vector.multi_reduction <add>, %30, %cst_26 [0] : vector<64x128xf32> to vector<128xf32>
    %32 = vector.shape_cast %31 : vector<128xf32> to vector<1x128xf32>
    %33 = arith.mulf %24, %24 : vector<64x128xf32>
    %34 = vector.broadcast %28 : vector<64x1xf32> to vector<64x128xf32>
    %35 = arith.mulf %33, %34 : vector<64x128xf32>
    %cst_27 = arith.constant dense<0.000000e+00> : vector<128xf32>
    %36 = vector.multi_reduction <add>, %35, %cst_27 [0] : vector<64x128xf32> to vector<128xf32>
    %37 = vector.shape_cast %36 : vector<128xf32> to vector<1x128xf32>
    %cst_28 = arith.constant 0.027777778 : f32
    %38 = vector.broadcast %cst_28 : f32 to vector<1x128xf32>
    %39 = arith.mulf %32, %38 : vector<1x128xf32>
    %cst_29 = arith.constant 0.027777778 : f32
    %40 = vector.broadcast %cst_29 : f32 to vector<1x128xf32>
    %41 = arith.mulf %37, %40 : vector<1x128xf32>
    %42 = arith.mulf %39, %39 : vector<1x128xf32>
    %43 = arith.subf %41, %42 : vector<1x128xf32>
    %44 = vector.broadcast %39 : vector<1x128xf32> to vector<64x128xf32>
    %45 = arith.subf %24, %44 : vector<64x128xf32>
    %cst_30 = arith.constant 9.99999974E-6 : f32
    %46 = vector.broadcast %cst_30 : f32 to vector<1x128xf32>
    %47 = arith.addf %43, %46 : vector<1x128xf32>
    %48 = math.rsqrt %47 : vector<1x128xf32>
    %49 = vector.broadcast %48 : vector<1x128xf32> to vector<64x128xf32>
    %50 = arith.mulf %45, %49 : vector<64x128xf32>
    %c0_31 = arith.constant 0 : index
    %c0_32 = arith.constant 0 : index
    %51 = vector.load %arg8[%c0_31, %c0_32] : memref<1x128xf32, #tpu.memory_space<vmem>>, vector<1x128xf32>
    %52 = vector.broadcast %51 : vector<1x128xf32> to vector<64x128xf32>
    %53 = arith.mulf %50, %52 : vector<64x128xf32>
    %c0_33 = arith.constant 0 : index
    %c0_34 = arith.constant 0 : index
    %54 = vector.load %arg9[%c0_33, %c0_34] : memref<1x128xf32, #tpu.memory_space<vmem>>, vector<1x128xf32>
    %55 = vector.broadcast %54 : vector<1x128xf32> to vector<64x128xf32>
    %56 = arith.addf %53, %55 : vector<64x128xf32>
    %cst_35 = arith.constant 0.000000e+00 : f32
    %57 = vector.broadcast %cst_35 : f32 to vector<64x128xf32>
    %58 = arith.maximumf %56, %57 : vector<64x128xf32>
    %59 = vector.extract_strided_slice %58 {offsets = [0, 0], sizes = [18, 128], strides = [1, 1]} : vector<64x128xf32> to vector<18x128xf32>
    %c8_36 = arith.constant 8 : index
    %c0_37 = arith.constant 0 : index
    %60 = vector.load %arg36[%c8_36, %c0_37] : memref<88x128xf32, #tpu.memory_space<vmem>>, vector<18x128xf32>
    tpu.vector_store %arg36[%c8_36, %c0_37], %59 {strides = array<i32>} : memref<88x128xf32, #tpu.memory_space<vmem>>, vector<18x128xf32>,
    %61 = vector.extract_strided_slice %58 {offsets = [32, 0], sizes = [18, 128], strides = [1, 1]} : vector<64x128xf32> to vector<18x128xf32>
    %c48 = arith.constant 48 : index
    %c0_38 = arith.constant 0 : index
    %62 = vector.load %arg36[%c48, %c0_38] : memref<88x128xf32, #tpu.memory_space<vmem>>, vector<18x128xf32>
    tpu.vector_store %arg36[%c48, %c0_38], %61 {strides = array<i32>} : memref<88x128xf32, #tpu.memory_space<vmem>>, vector<18x128xf32>,
    %c6_39 = arith.constant 6 : index
    %c0_40 = arith.constant 0 : index
    %63 = vector.load %arg36[%c6_39, %c0_40] : memref<88x128xf32, #tpu.memory_space<vmem>>, vector<80x128xf32>
    %c7_41 = arith.constant 7 : index
    %c0_42 = arith.constant 0 : index
    %64 = vector.load %arg36[%c7_41, %c0_42] : memref<88x128xf32, #tpu.memory_space<vmem>>, vector<80x128xf32>
    %c8_43 = arith.constant 8 : index
    %c0_44 = arith.constant 0 : index
    %65 = vector.load %arg36[%c8_43, %c0_44] : memref<88x128xf32, #tpu.memory_space<vmem>>, vector<80x128xf32>
    %66 = tpu.concatenate %63, %64, %65 in 1 : vector<80x128xf32>, vector<80x128xf32>, vector<80x128xf32> -> vector<80x384xf32>
    %c0_45 = arith.constant 0 : index
    %c0_46 = arith.constant 0 : index
    %67 = vector.load %arg10[%c0_45, %c0_46] : memref<384x128xf32, #tpu.memory_space<vmem>>, vector<384x128xf32>
    %cst_47 = arith.constant dense<0.000000e+00> : vector<80x128xf32>
    %68 = tpu.matmul %66, %67, %cst_47 {dimension_numbers = #tpu.dot_dimension_numbers<[1], [0], [0], [1], [0, 0, 1, 1], [], []>} : vector<80x384xf32>, vector<384x128xf32>, vector<80x128xf32> -> vector<80x128xf32>
    %c0_48 = arith.constant 0 : index
    %c0_49 = arith.constant 0 : index
    %69 = vector.load %arg11[%c0_48, %c0_49] : memref<1x128xf32, #tpu.memory_space<vmem>>, vector<1x128xf32>
    %70 = vector.broadcast %69 : vector<1x128xf32> to vector<80x128xf32>
    %71 = arith.addf %68, %70 : vector<80x128xf32>
    %c20_i32 = arith.constant 20 : i32
    %72 = vector.broadcast %c20_i32 : i32 to vector<80x1xi32>
    %73 = arith.cmpi slt, %5, %72 : vector<80x1xi32>
    %74 = arith.extui %73 : vector<80x1xi1> to vector<80x1xi32>
    %75 = arith.sitofp %74 : vector<80x1xi32> to vector<80x1xf32>
    %76 = vector.broadcast %75 : vector<80x1xf32> to vector<80x128xf32>
    %77 = arith.mulf %71, %76 : vector<80x128xf32>
    %cst_50 = arith.constant dense<0.000000e+00> : vector<128xf32>
    %78 = vector.multi_reduction <add>, %77, %cst_50 [0] : vector<80x128xf32> to vector<128xf32>
    %79 = vector.shape_cast %78 : vector<128xf32> to vector<1x128xf32>
    %80 = arith.mulf %71, %71 : vector<80x128xf32>
    %81 = vector.broadcast %75 : vector<80x1xf32> to vector<80x128xf32>
    %82 = arith.mulf %80, %81 : vector<80x128xf32>
    %cst_51 = arith.constant dense<0.000000e+00> : vector<128xf32>
    %83 = vector.multi_reduction <add>, %82, %cst_51 [0] : vector<80x128xf32> to vector<128xf32>
    %84 = vector.shape_cast %83 : vector<128xf32> to vector<1x128xf32>
    %cst_52 = arith.constant 2.500000e-02 : f32
    %85 = vector.broadcast %cst_52 : f32 to vector<1x128xf32>
    %86 = arith.mulf %79, %85 : vector<1x128xf32>
    %cst_53 = arith.constant 2.500000e-02 : f32
    %87 = vector.broadcast %cst_53 : f32 to vector<1x128xf32>
    %88 = arith.mulf %84, %87 : vector<1x128xf32>
    %89 = arith.mulf %86, %86 : vector<1x128xf32>
    %90 = arith.subf %88, %89 : vector<1x128xf32>
    %91 = vector.broadcast %86 : vector<1x128xf32> to vector<80x128xf32>
    %92 = arith.subf %71, %91 : vector<80x128xf32>
    %cst_54 = arith.constant 9.99999974E-6 : f32
    %93 = vector.broadcast %cst_54 : f32 to vector<1x128xf32>
    %94 = arith.addf %90, %93 : vector<1x128xf32>
    %95 = math.rsqrt %94 : vector<1x128xf32>
    %96 = vector.broadcast %95 : vector<1x128xf32> to vector<80x128xf32>
    %97 = arith.mulf %92, %96 : vector<80x128xf32>
    %c0_55 = arith.constant 0 : index
    %c0_56 = arith.constant 0 : index
    %98 = vector.load %arg12[%c0_55, %c0_56] : memref<1x128xf32, #tpu.memory_space<vmem>>, vector<1x128xf32>
    %99 = vector.broadcast %98 : vector<1x128xf32> to vector<80x128xf32>
    %100 = arith.mulf %97, %99 : vector<80x128xf32>
    %c0_57 = arith.constant 0 : index
    %c0_58 = arith.constant 0 : index
    %101 = vector.load %arg13[%c0_57, %c0_58] : memref<1x128xf32, #tpu.memory_space<vmem>>, vector<1x128xf32>
    %102 = vector.broadcast %101 : vector<1x128xf32> to vector<80x128xf32>
    %103 = arith.addf %100, %102 : vector<80x128xf32>
    %cst_59 = arith.constant 0.000000e+00 : f32
    %104 = vector.broadcast %cst_59 : f32 to vector<80x128xf32>
    %105 = arith.maximumf %103, %104 : vector<80x128xf32>
    %106 = vector.extract_strided_slice %105 {offsets = [0, 0], sizes = [16, 128], strides = [1, 1]} : vector<80x128xf32> to vector<16x128xf32>
    %107 = vector.extract_strided_slice %105 {offsets = [40, 0], sizes = [16, 128], strides = [1, 1]} : vector<80x128xf32> to vector<16x128xf32>
    %108 = tpu.concatenate %106, %107 in 0 : vector<16x128xf32>, vector<16x128xf32> -> vector<32x128xf32>
    %109 = arith.addf %108, %11 : vector<32x128xf32>
    %110 = vector.extract_strided_slice %109 {offsets = [0, 0], sizes = [16, 128], strides = [1, 1]} : vector<32x128xf32> to vector<16x128xf32>
    %c8_60 = arith.constant 8 : index
    %c0_61 = arith.constant 0 : index
    %111 = vector.load %arg35[%c8_60, %c0_61] : memref<72x128xf32, #tpu.memory_space<vmem>>, vector<16x128xf32>
    tpu.vector_store %arg35[%c8_60, %c0_61], %110 {strides = array<i32>} : memref<72x128xf32, #tpu.memory_space<vmem>>, vector<16x128xf32>,
    %112 = vector.extract_strided_slice %109 {offsets = [16, 0], sizes = [16, 128], strides = [1, 1]} : vector<32x128xf32> to vector<16x128xf32>
    %c40_62 = arith.constant 40 : index
    %c0_63 = arith.constant 0 : index
    %113 = vector.load %arg35[%c40_62, %c0_63] : memref<72x128xf32, #tpu.memory_space<vmem>>, vector<16x128xf32>
    tpu.vector_store %arg35[%c40_62, %c0_63], %112 {strides = array<i32>} : memref<72x128xf32, #tpu.memory_space<vmem>>, vector<16x128xf32>,
    %c4 = arith.constant 4 : index
    %c0_64 = arith.constant 0 : index
    %114 = vector.load %arg35[%c4, %c0_64] : memref<72x128xf32, #tpu.memory_space<vmem>>, vector<64x128xf32>
    %c6_65 = arith.constant 6 : index
    %c0_66 = arith.constant 0 : index
    %115 = vector.load %arg35[%c6_65, %c0_66] : memref<72x128xf32, #tpu.memory_space<vmem>>, vector<64x128xf32>
    %c8_67 = arith.constant 8 : index
    %c0_68 = arith.constant 0 : index
    %116 = vector.load %arg35[%c8_67, %c0_68] : memref<72x128xf32, #tpu.memory_space<vmem>>, vector<64x128xf32>
    %117 = tpu.concatenate %114, %115, %116 in 1 : vector<64x128xf32>, vector<64x128xf32>, vector<64x128xf32> -> vector<64x384xf32>
    %c0_69 = arith.constant 0 : index
    %c0_70 = arith.constant 0 : index
    %118 = vector.load %arg14[%c0_69, %c0_70] : memref<384x128xf32, #tpu.memory_space<vmem>>, vector<384x128xf32>
    %cst_71 = arith.constant dense<0.000000e+00> : vector<64x128xf32>
    %119 = tpu.matmul %117, %118, %cst_71 {dimension_numbers = #tpu.dot_dimension_numbers<[1], [0], [0], [1], [0, 0, 1, 1], [], []>} : vector<64x384xf32>, vector<384x128xf32>, vector<64x128xf32> -> vector<64x128xf32>
    %c0_72 = arith.constant 0 : index
    %c0_73 = arith.constant 0 : index
    %120 = vector.load %arg15[%c0_72, %c0_73] : memref<1x128xf32, #tpu.memory_space<vmem>>, vector<1x128xf32>
    %121 = vector.broadcast %120 : vector<1x128xf32> to vector<64x128xf32>
    %122 = arith.addf %119, %121 : vector<64x128xf32>
    %c20_i32_74 = arith.constant 20 : i32
    %123 = vector.broadcast %c20_i32_74 : i32 to vector<64x1xi32>
    %124 = arith.cmpi slt, %4, %123 : vector<64x1xi32>
    %125 = arith.extui %124 : vector<64x1xi1> to vector<64x1xi32>
    %126 = arith.sitofp %125 : vector<64x1xi32> to vector<64x1xf32>
    %127 = vector.broadcast %126 : vector<64x1xf32> to vector<64x128xf32>
    %128 = arith.mulf %122, %127 : vector<64x128xf32>
    %cst_75 = arith.constant dense<0.000000e+00> : vector<128xf32>
    %129 = vector.multi_reduction <add>, %128, %cst_75 [0] : vector<64x128xf32> to vector<128xf32>
    %130 = vector.shape_cast %129 : vector<128xf32> to vector<1x128xf32>
    %131 = arith.mulf %122, %122 : vector<64x128xf32>
    %132 = vector.broadcast %126 : vector<64x1xf32> to vector<64x128xf32>
    %133 = arith.mulf %131, %132 : vector<64x128xf32>
    %cst_76 = arith.constant dense<0.000000e+00> : vector<128xf32>
    %134 = vector.multi_reduction <add>, %133, %cst_76 [0] : vector<64x128xf32> to vector<128xf32>
    %135 = vector.shape_cast %134 : vector<128xf32> to vector<1x128xf32>
    %cst_77 = arith.constant 2.500000e-02 : f32
    %136 = vector.broadcast %cst_77 : f32 to vector<1x128xf32>
    %137 = arith.mulf %130, %136 : vector<1x128xf32>
    %cst_78 = arith.constant 2.500000e-02 : f32
    %138 = vector.broadcast %cst_78 : f32 to vector<1x128xf32>
    %139 = arith.mulf %135, %138 : vector<1x128xf32>
    %140 = arith.mulf %137, %137 : vector<1x128xf32>
    %141 = arith.subf %139, %140 : vector<1x128xf32>
    %142 = vector.broadcast %137 : vector<1x128xf32> to vector<64x128xf32>
    %143 = arith.subf %122, %142 : vector<64x128xf32>
    %cst_79 = arith.constant 9.99999974E-6 : f32
    %144 = vector.broadcast %cst_79 : f32 to vector<1x128xf32>
    %145 = arith.addf %141, %144 : vector<1x128xf32>
    %146 = math.rsqrt %145 : vector<1x128xf32>
    %147 = vector.broadcast %146 : vector<1x128xf32> to vector<64x128xf32>
    %148 = arith.mulf %143, %147 : vector<64x128xf32>
    %c0_80 = arith.constant 0 : index
    %c0_81 = arith.constant 0 : index
    %149 = vector.load %arg16[%c0_80, %c0_81] : memref<1x128xf32, #tpu.memory_space<vmem>>, vector<1x128xf32>
    %150 = vector.broadcast %149 : vector<1x128xf32> to vector<64x128xf32>
    %151 = arith.mulf %148, %150 : vector<64x128xf32>
    %c0_82 = arith.constant 0 : index
    %c0_83 = arith.constant 0 : index
    %152 = vector.load %arg17[%c0_82, %c0_83] : memref<1x128xf32, #tpu.memory_space<vmem>>, vector<1x128xf32>
    %153 = vector.broadcast %152 : vector<1x128xf32> to vector<64x128xf32>
    %154 = arith.addf %151, %153 : vector<64x128xf32>
    %cst_84 = arith.constant 0.000000e+00 : f32
    %155 = vector.broadcast %cst_84 : f32 to vector<64x128xf32>
    %156 = arith.maximumf %154, %155 : vector<64x128xf32>
    %157 = vector.extract_strided_slice %156 {offsets = [0, 0], sizes = [20, 128], strides = [1, 1]} : vector<64x128xf32> to vector<20x128xf32>
    %c8_85 = arith.constant 8 : index
    %c0_86 = arith.constant 0 : index
    %158 = vector.load %arg36[%c8_85, %c0_86] : memref<88x128xf32, #tpu.memory_space<vmem>>, vector<20x128xf32>
    tpu.vector_store %arg36[%c8_85, %c0_86], %157 {strides = array<i32>} : memref<88x128xf32, #tpu.memory_space<vmem>>, vector<20x128xf32>,
    %159 = vector.extract_strided_slice %156 {offsets = [32, 0], sizes = [20, 128], strides = [1, 1]} : vector<64x128xf32> to vector<20x128xf32>
    %c48_87 = arith.constant 48 : index
    %c0_88 = arith.constant 0 : index
    %160 = vector.load %arg36[%c48_87, %c0_88] : memref<88x128xf32, #tpu.memory_space<vmem>>, vector<20x128xf32>
    tpu.vector_store %arg36[%c48_87, %c0_88], %159 {strides = array<i32>} : memref<88x128xf32, #tpu.memory_space<vmem>>, vector<20x128xf32>,
    %c4_89 = arith.constant 4 : index
    %c0_90 = arith.constant 0 : index
    %161 = vector.load %arg36[%c4_89, %c0_90] : memref<88x128xf32, #tpu.memory_space<vmem>>, vector<80x128xf32>
    %c6_91 = arith.constant 6 : index
    %c0_92 = arith.constant 0 : index
    %162 = vector.load %arg36[%c6_91, %c0_92] : memref<88x128xf32, #tpu.memory_space<vmem>>, vector<80x128xf32>
    %c8_93 = arith.constant 8 : index
    %c0_94 = arith.constant 0 : index
    %163 = vector.load %arg36[%c8_93, %c0_94] : memref<88x128xf32, #tpu.memory_space<vmem>>, vector<80x128xf32>
    %164 = tpu.concatenate %161, %162, %163 in 1 : vector<80x128xf32>, vector<80x128xf32>, vector<80x128xf32> -> vector<80x384xf32>
    %c0_95 = arith.constant 0 : index
    %c0_96 = arith.constant 0 : index
    %165 = vector.load %arg18[%c0_95, %c0_96] : memref<384x128xf32, #tpu.memory_space<vmem>>, vector<384x128xf32>
    %cst_97 = arith.constant dense<0.000000e+00> : vector<80x128xf32>
    %166 = tpu.matmul %164, %165, %cst_97 {dimension_numbers = #tpu.dot_dimension_numbers<[1], [0], [0], [1], [0, 0, 1, 1], [], []>} : vector<80x384xf32>, vector<384x128xf32>, vector<80x128xf32> -> vector<80x128xf32>
    %c0_98 = arith.constant 0 : index
    %c0_99 = arith.constant 0 : index
    %167 = vector.load %arg19[%c0_98, %c0_99] : memref<1x128xf32, #tpu.memory_space<vmem>>, vector<1x128xf32>
    %168 = vector.broadcast %167 : vector<1x128xf32> to vector<80x128xf32>
    %169 = arith.addf %166, %168 : vector<80x128xf32>
    %c24_i32 = arith.constant 24 : i32
    %170 = vector.broadcast %c24_i32 : i32 to vector<80x1xi32>
    %171 = arith.cmpi slt, %5, %170 : vector<80x1xi32>
    %172 = arith.extui %171 : vector<80x1xi1> to vector<80x1xi32>
    %173 = arith.sitofp %172 : vector<80x1xi32> to vector<80x1xf32>
    %174 = vector.broadcast %173 : vector<80x1xf32> to vector<80x128xf32>
    %175 = arith.mulf %169, %174 : vector<80x128xf32>
    %cst_100 = arith.constant dense<0.000000e+00> : vector<128xf32>
    %176 = vector.multi_reduction <add>, %175, %cst_100 [0] : vector<80x128xf32> to vector<128xf32>
    %177 = vector.shape_cast %176 : vector<128xf32> to vector<1x128xf32>
    %178 = arith.mulf %169, %169 : vector<80x128xf32>
    %179 = vector.broadcast %173 : vector<80x1xf32> to vector<80x128xf32>
    %180 = arith.mulf %178, %179 : vector<80x128xf32>
    %cst_101 = arith.constant dense<0.000000e+00> : vector<128xf32>
    %181 = vector.multi_reduction <add>, %180, %cst_101 [0] : vector<80x128xf32> to vector<128xf32>
    %182 = vector.shape_cast %181 : vector<128xf32> to vector<1x128xf32>
    %cst_102 = arith.constant 0.020833334 : f32
    %183 = vector.broadcast %cst_102 : f32 to vector<1x128xf32>
    %184 = arith.mulf %177, %183 : vector<1x128xf32>
    %cst_103 = arith.constant 0.020833334 : f32
    %185 = vector.broadcast %cst_103 : f32 to vector<1x128xf32>
    %186 = arith.mulf %182, %185 : vector<1x128xf32>
    %187 = arith.mulf %184, %184 : vector<1x128xf32>
    %188 = arith.subf %186, %187 : vector<1x128xf32>
    %189 = vector.broadcast %184 : vector<1x128xf32> to vector<80x128xf32>
    %190 = arith.subf %169, %189 : vector<80x128xf32>
    %cst_104 = arith.constant 9.99999974E-6 : f32
    %191 = vector.broadcast %cst_104 : f32 to vector<1x128xf32>
    %192 = arith.addf %188, %191 : vector<1x128xf32>
    %193 = math.rsqrt %192 : vector<1x128xf32>
    %194 = vector.broadcast %193 : vector<1x128xf32> to vector<80x128xf32>
    %195 = arith.mulf %190, %194 : vector<80x128xf32>
    %c0_105 = arith.constant 0 : index
    %c0_106 = arith.constant 0 : index
    %196 = vector.load %arg20[%c0_105, %c0_106] : memref<1x128xf32, #tpu.memory_space<vmem>>, vector<1x128xf32>
    %197 = vector.broadcast %196 : vector<1x128xf32> to vector<80x128xf32>
    %198 = arith.mulf %195, %197 : vector<80x128xf32>
    %c0_107 = arith.constant 0 : index
    %c0_108 = arith.constant 0 : index
    %199 = vector.load %arg21[%c0_107, %c0_108] : memref<1x128xf32, #tpu.memory_space<vmem>>, vector<1x128xf32>
    %200 = vector.broadcast %199 : vector<1x128xf32> to vector<80x128xf32>
    %201 = arith.addf %198, %200 : vector<80x128xf32>
    %cst_109 = arith.constant 0.000000e+00 : f32
    %202 = vector.broadcast %cst_109 : f32 to vector<80x128xf32>
    %203 = arith.maximumf %201, %202 : vector<80x128xf32>
    %204 = vector.extract_strided_slice %203 {offsets = [0, 0], sizes = [16, 128], strides = [1, 1]} : vector<80x128xf32> to vector<16x128xf32>
    %205 = vector.extract_strided_slice %203 {offsets = [40, 0], sizes = [16, 128], strides = [1, 1]} : vector<80x128xf32> to vector<16x128xf32>
    %206 = tpu.concatenate %204, %205 in 0 : vector<16x128xf32>, vector<16x128xf32> -> vector<32x128xf32>
    %207 = arith.addf %206, %109 : vector<32x128xf32>
    %208 = vector.extract_strided_slice %207 {offsets = [0, 0], sizes = [16, 128], strides = [1, 1]} : vector<32x128xf32> to vector<16x128xf32>
    %c8_110 = arith.constant 8 : index
    %c0_111 = arith.constant 0 : index
    %209 = vector.load %arg35[%c8_110, %c0_111] : memref<72x128xf32, #tpu.memory_space<vmem>>, vector<16x128xf32>
    tpu.vector_store %arg35[%c8_110, %c0_111], %208 {strides = array<i32>} : memref<72x128xf32, #tpu.memory_space<vmem>>, vector<16x128xf32>,
    %210 = vector.extract_strided_slice %207 {offsets = [16, 0], sizes = [16, 128], strides = [1, 1]} : vector<32x128xf32> to vector<16x128xf32>
    %c40_112 = arith.constant 40 : index
    %c0_113 = arith.constant 0 : index
    %211 = vector.load %arg35[%c40_112, %c0_113] : memref<72x128xf32, #tpu.memory_space<vmem>>, vector<16x128xf32>
    tpu.vector_store %arg35[%c40_112, %c0_113], %210 {strides = array<i32>} : memref<72x128xf32, #tpu.memory_space<vmem>>, vector<16x128xf32>,
    %c0_114 = arith.constant 0 : index
    %c0_115 = arith.constant 0 : index
    %212 = vector.load %arg35[%c0_114, %c0_115] : memref<72x128xf32, #tpu.memory_space<vmem>>, vector<64x128xf32>
    %c4_116 = arith.constant 4 : index
    %c0_117 = arith.constant 0 : index
    %213 = vector.load %arg35[%c4_116, %c0_117] : memref<72x128xf32, #tpu.memory_space<vmem>>, vector<64x128xf32>
    %c8_118 = arith.constant 8 : index
    %c0_119 = arith.constant 0 : index
    %214 = vector.load %arg35[%c8_118, %c0_119] : memref<72x128xf32, #tpu.memory_space<vmem>>, vector<64x128xf32>
    %215 = tpu.concatenate %212, %213, %214 in 1 : vector<64x128xf32>, vector<64x128xf32>, vector<64x128xf32> -> vector<64x384xf32>
    %c0_120 = arith.constant 0 : index
    %c0_121 = arith.constant 0 : index
    %216 = vector.load %arg22[%c0_120, %c0_121] : memref<384x128xf32, #tpu.memory_space<vmem>>, vector<384x128xf32>
    %cst_122 = arith.constant dense<0.000000e+00> : vector<64x128xf32>
    %217 = tpu.matmul %215, %216, %cst_122 {dimension_numbers = #tpu.dot_dimension_numbers<[1], [0], [0], [1], [0, 0, 1, 1], [], []>} : vector<64x384xf32>, vector<384x128xf32>, vector<64x128xf32> -> vector<64x128xf32>
    %c0_123 = arith.constant 0 : index
    %c0_124 = arith.constant 0 : index
    %218 = vector.load %arg23[%c0_123, %c0_124] : memref<1x128xf32, #tpu.memory_space<vmem>>, vector<1x128xf32>
    %219 = vector.broadcast %218 : vector<1x128xf32> to vector<64x128xf32>
    %220 = arith.addf %217, %219 : vector<64x128xf32>
    %c24_i32_125 = arith.constant 24 : i32
    %221 = vector.broadcast %c24_i32_125 : i32 to vector<64x1xi32>
    %222 = arith.cmpi slt, %4, %221 : vector<64x1xi32>
    %223 = arith.extui %222 : vector<64x1xi1> to vector<64x1xi32>
    %224 = arith.sitofp %223 : vector<64x1xi32> to vector<64x1xf32>
    %225 = vector.broadcast %224 : vector<64x1xf32> to vector<64x128xf32>
    %226 = arith.mulf %220, %225 : vector<64x128xf32>
    %cst_126 = arith.constant dense<0.000000e+00> : vector<128xf32>
    %227 = vector.multi_reduction <add>, %226, %cst_126 [0] : vector<64x128xf32> to vector<128xf32>
    %228 = vector.shape_cast %227 : vector<128xf32> to vector<1x128xf32>
    %229 = arith.mulf %220, %220 : vector<64x128xf32>
    %230 = vector.broadcast %224 : vector<64x1xf32> to vector<64x128xf32>
    %231 = arith.mulf %229, %230 : vector<64x128xf32>
    %cst_127 = arith.constant dense<0.000000e+00> : vector<128xf32>
    %232 = vector.multi_reduction <add>, %231, %cst_127 [0] : vector<64x128xf32> to vector<128xf32>
    %233 = vector.shape_cast %232 : vector<128xf32> to vector<1x128xf32>
    %cst_128 = arith.constant 0.020833334 : f32
    %234 = vector.broadcast %cst_128 : f32 to vector<1x128xf32>
    %235 = arith.mulf %228, %234 : vector<1x128xf32>
    %cst_129 = arith.constant 0.020833334 : f32
    %236 = vector.broadcast %cst_129 : f32 to vector<1x128xf32>
    %237 = arith.mulf %233, %236 : vector<1x128xf32>
    %238 = arith.mulf %235, %235 : vector<1x128xf32>
    %239 = arith.subf %237, %238 : vector<1x128xf32>
    %240 = vector.broadcast %235 : vector<1x128xf32> to vector<64x128xf32>
    %241 = arith.subf %220, %240 : vector<64x128xf32>
    %cst_130 = arith.constant 9.99999974E-6 : f32
    %242 = vector.broadcast %cst_130 : f32 to vector<1x128xf32>
    %243 = arith.addf %239, %242 : vector<1x128xf32>
    %244 = math.rsqrt %243 : vector<1x128xf32>
    %245 = vector.broadcast %244 : vector<1x128xf32> to vector<64x128xf32>
    %246 = arith.mulf %241, %245 : vector<64x128xf32>
    %c0_131 = arith.constant 0 : index
    %c0_132 = arith.constant 0 : index
    %247 = vector.load %arg24[%c0_131, %c0_132] : memref<1x128xf32, #tpu.memory_space<vmem>>, vector<1x128xf32>
    %248 = vector.broadcast %247 : vector<1x128xf32> to vector<64x128xf32>
    %249 = arith.mulf %246, %248 : vector<64x128xf32>
    %c0_133 = arith.constant 0 : index
    %c0_134 = arith.constant 0 : index
    %250 = vector.load %arg25[%c0_133, %c0_134] : memref<1x128xf32, #tpu.memory_space<vmem>>, vector<1x128xf32>
    %251 = vector.broadcast %250 : vector<1x128xf32> to vector<64x128xf32>
    %252 = arith.addf %249, %251 : vector<64x128xf32>
    %cst_135 = arith.constant 0.000000e+00 : f32
    %253 = vector.broadcast %cst_135 : f32 to vector<64x128xf32>
    %254 = arith.maximumf %252, %253 : vector<64x128xf32>
    %255 = vector.extract_strided_slice %254 {offsets = [0, 0], sizes = [24, 128], strides = [1, 1]} : vector<64x128xf32> to vector<24x128xf32>
    %c8_136 = arith.constant 8 : index
    %c0_137 = arith.constant 0 : index
    %256 = vector.load %arg36[%c8_136, %c0_137] : memref<88x128xf32, #tpu.memory_space<vmem>>, vector<24x128xf32>
    tpu.vector_store %arg36[%c8_136, %c0_137], %255 {strides = array<i32>} : memref<88x128xf32, #tpu.memory_space<vmem>>, vector<24x128xf32>,
    %257 = vector.extract_strided_slice %254 {offsets = [32, 0], sizes = [24, 128], strides = [1, 1]} : vector<64x128xf32> to vector<24x128xf32>
    %c48_138 = arith.constant 48 : index
    %c0_139 = arith.constant 0 : index
    %258 = vector.load %arg36[%c48_138, %c0_139] : memref<88x128xf32, #tpu.memory_space<vmem>>, vector<24x128xf32>
    tpu.vector_store %arg36[%c48_138, %c0_139], %257 {strides = array<i32>} : memref<88x128xf32, #tpu.memory_space<vmem>>, vector<24x128xf32>,
    %c0_140 = arith.constant 0 : index
    %c0_141 = arith.constant 0 : index
    %259 = vector.load %arg36[%c0_140, %c0_141] : memref<88x128xf32, #tpu.memory_space<vmem>>, vector<80x128xf32>
    %c4_142 = arith.constant 4 : index
    %c0_143 = arith.constant 0 : index
    %260 = vector.load %arg36[%c4_142, %c0_143] : memref<88x128xf32, #tpu.memory_space<vmem>>, vector<80x128xf32>
    %c8_144 = arith.constant 8 : index
    %c0_145 = arith.constant 0 : index
    %261 = vector.load %arg36[%c8_144, %c0_145] : memref<88x128xf32, #tpu.memory_space<vmem>>, vector<80x128xf32>
    %262 = tpu.concatenate %259, %260, %261 in 1 : vector<80x128xf32>, vector<80x128xf32>, vector<80x128xf32> -> vector<80x384xf32>
    %c0_146 = arith.constant 0 : index
    %c0_147 = arith.constant 0 : index
    %263 = vector.load %arg26[%c0_146, %c0_147] : memref<384x128xf32, #tpu.memory_space<vmem>>, vector<384x128xf32>
    %cst_148 = arith.constant dense<0.000000e+00> : vector<80x128xf32>
    %264 = tpu.matmul %262, %263, %cst_148 {dimension_numbers = #tpu.dot_dimension_numbers<[1], [0], [0], [1], [0, 0, 1, 1], [], []>} : vector<80x384xf32>, vector<384x128xf32>, vector<80x128xf32> -> vector<80x128xf32>
    %c0_149 = arith.constant 0 : index
    %c0_150 = arith.constant 0 : index
    %265 = vector.load %arg27[%c0_149, %c0_150] : memref<1x128xf32, #tpu.memory_space<vmem>>, vector<1x128xf32>
    %266 = vector.broadcast %265 : vector<1x128xf32> to vector<80x128xf32>
    %267 = arith.addf %264, %266 : vector<80x128xf32>
    %c32_i32 = arith.constant 32 : i32
    %268 = vector.broadcast %c32_i32 : i32 to vector<80x1xi32>
    %269 = arith.cmpi slt, %5, %268 : vector<80x1xi32>
    %270 = arith.extui %269 : vector<80x1xi1> to vector<80x1xi32>
    %271 = arith.sitofp %270 : vector<80x1xi32> to vector<80x1xf32>
    %272 = vector.broadcast %271 : vector<80x1xf32> to vector<80x128xf32>
    %273 = arith.mulf %267, %272 : vector<80x128xf32>
    %cst_151 = arith.constant dense<0.000000e+00> : vector<128xf32>
    %274 = vector.multi_reduction <add>, %273, %cst_151 [0] : vector<80x128xf32> to vector<128xf32>
    %275 = vector.shape_cast %274 : vector<128xf32> to vector<1x128xf32>
    %276 = arith.mulf %267, %267 : vector<80x128xf32>
    %277 = vector.broadcast %271 : vector<80x1xf32> to vector<80x128xf32>
    %278 = arith.mulf %276, %277 : vector<80x128xf32>
    %cst_152 = arith.constant dense<0.000000e+00> : vector<128xf32>
    %279 = vector.multi_reduction <add>, %278, %cst_152 [0] : vector<80x128xf32> to vector<128xf32>
    %280 = vector.shape_cast %279 : vector<128xf32> to vector<1x128xf32>
    %cst_153 = arith.constant 1.562500e-02 : f32
    %281 = vector.broadcast %cst_153 : f32 to vector<1x128xf32>
    %282 = arith.mulf %275, %281 : vector<1x128xf32>
    %cst_154 = arith.constant 1.562500e-02 : f32
    %283 = vector.broadcast %cst_154 : f32 to vector<1x128xf32>
    %284 = arith.mulf %280, %283 : vector<1x128xf32>
    %285 = arith.mulf %282, %282 : vector<1x128xf32>
    %286 = arith.subf %284, %285 : vector<1x128xf32>
    %287 = vector.broadcast %282 : vector<1x128xf32> to vector<80x128xf32>
    %288 = arith.subf %267, %287 : vector<80x128xf32>
    %cst_155 = arith.constant 9.99999974E-6 : f32
    %289 = vector.broadcast %cst_155 : f32 to vector<1x128xf32>
    %290 = arith.addf %286, %289 : vector<1x128xf32>
    %291 = math.rsqrt %290 : vector<1x128xf32>
    %292 = vector.broadcast %291 : vector<1x128xf32> to vector<80x128xf32>
    %293 = arith.mulf %288, %292 : vector<80x128xf32>
    %c0_156 = arith.constant 0 : index
    %c0_157 = arith.constant 0 : index
    %294 = vector.load %arg28[%c0_156, %c0_157] : memref<1x128xf32, #tpu.memory_space<vmem>>, vector<1x128xf32>
    %295 = vector.broadcast %294 : vector<1x128xf32> to vector<80x128xf32>
    %296 = arith.mulf %293, %295 : vector<80x128xf32>
    %c0_158 = arith.constant 0 : index
    %c0_159 = arith.constant 0 : index
    %297 = vector.load %arg29[%c0_158, %c0_159] : memref<1x128xf32, #tpu.memory_space<vmem>>, vector<1x128xf32>
    %298 = vector.broadcast %297 : vector<1x128xf32> to vector<80x128xf32>
    %299 = arith.addf %296, %298 : vector<80x128xf32>
    %cst_160 = arith.constant 0.000000e+00 : f32
    %300 = vector.broadcast %cst_160 : f32 to vector<80x128xf32>
    %301 = arith.maximumf %299, %300 : vector<80x128xf32>
    %302 = vector.extract_strided_slice %301 {offsets = [0, 0], sizes = [16, 128], strides = [1, 1]} : vector<80x128xf32> to vector<16x128xf32>
    %303 = vector.extract_strided_slice %301 {offsets = [40, 0], sizes = [16, 128], strides = [1, 1]} : vector<80x128xf32> to vector<16x128xf32>
    %304 = tpu.concatenate %302, %303 in 0 : vector<16x128xf32>, vector<16x128xf32> -> vector<32x128xf32>
    %305 = arith.addf %304, %207 : vector<32x128xf32>
    %c0_161 = arith.constant 0 : index
    %c0_162 = arith.constant 0 : index
    %306 = vector.load %arg3[%c0_161, %c0_162] : memref<2x32xf32, #tpu.memory_space<vmem>>, vector<2x32xf32>
    %cst_163 = arith.constant dense<0.000000e+00> : vector<2x128xf32>
    %307 = tpu.matmul %306, %305, %cst_163 {dimension_numbers = #tpu.dot_dimension_numbers<[1], [0], [0], [1], [0, 0, 1, 1], [], []>} : vector<2x32xf32>, vector<32x128xf32>, vector<2x128xf32> -> vector<2x128xf32>
    %c0_164 = arith.constant 0 : index
    %c0_165 = arith.constant 0 : index
    %308 = vector.load %arg30[%c0_164, %c0_165] : memref<128x64xf32, #tpu.memory_space<vmem>>, vector<128x64xf32>
    %cst_166 = arith.constant dense<0.000000e+00> : vector<2x64xf32>
    %309 = tpu.matmul %307, %308, %cst_166 {dimension_numbers = #tpu.dot_dimension_numbers<[1], [0], [0], [1], [0, 0, 1, 1], [], []>} : vector<2x128xf32>, vector<128x64xf32>, vector<2x64xf32> -> vector<2x64xf32>
    %c0_167 = arith.constant 0 : index
    %c0_168 = arith.constant 0 : index
    %310 = vector.load %arg31[%c0_167, %c0_168] : memref<1x64xf32, #tpu.memory_space<vmem>>, vector<1x64xf32>
    %311 = vector.broadcast %310 : vector<1x64xf32> to vector<2x64xf32>
    %312 = arith.addf %309, %311 : vector<2x64xf32>
    %cst_169 = arith.constant 0.000000e+00 : f32
    %313 = vector.broadcast %cst_169 : f32 to vector<2x64xf32>
    %314 = arith.maximumf %312, %313 : vector<2x64xf32>
    %c0_170 = arith.constant 0 : index
    %c0_171 = arith.constant 0 : index
    %315 = vector.load %arg32[%c0_170, %c0_171] : memref<64x30xf32, #tpu.memory_space<vmem>>, vector<64x30xf32>
    %cst_172 = arith.constant dense<0.000000e+00> : vector<2x30xf32>
    %316 = tpu.matmul %314, %315, %cst_172 {dimension_numbers = #tpu.dot_dimension_numbers<[1], [0], [0], [1], [0, 0, 1, 1], [], []>} : vector<2x64xf32>, vector<64x30xf32>, vector<2x30xf32> -> vector<2x30xf32>
    %c0_173 = arith.constant 0 : index
    %c0_174 = arith.constant 0 : index
    %317 = vector.load %arg33[%c0_173, %c0_174] : memref<1x30xf32, #tpu.memory_space<vmem>>, vector<1x30xf32>
    %318 = vector.broadcast %317 : vector<1x30xf32> to vector<2x30xf32>
    %319 = arith.addf %316, %318 : vector<2x30xf32>
    %c0_175 = arith.constant 0 : index
    %c0_176 = arith.constant 0 : index
    %320 = vector.load %arg34[%c0_175, %c0_176] : memref<2x30xf32, #tpu.memory_space<vmem>>, vector<2x30xf32>
    tpu.vector_store %arg34[%c0_175, %c0_176], %319 {strides = array<i32>} : memref<2x30xf32, #tpu.memory_space<vmem>>, vector<2x30xf32>,
    return
  }
}

</mosaic_0001>

<bundles_post_ra>
// kernel: tpu_custom_call.1
= control target key start
LH: loop header
LB: loop body
LE: loop exit
PB: predicated region body
PF: predicated region fallthrough
CT: control target
= control target key end

     0   :  { %s3339_s6 = smov 1   ;;  %s3340_s10 = smov 2   ;;  %s4318_s0 = inlined_call_operand.smem [shape: u32[35], index: -1, kind: input, shape index: {}] }
   0x1   :  { %s3392_s5 = sld [smem:[%s4318_s0]]   ;;  %s3341_s14 = smov 3  }
   0x2   :  { %s3397_s9 = sld [smem:[%s4318_s0 + %s3339_s6]]   ;;  %s3342_s18 = smov 4  }
   0x3   :  { %s3402_s13 = sld [smem:[%s4318_s0 + %s3340_s10]]   ;;  %s3343_s22 = smov 5  }
   0x4   :  { %s3407_s17 = sld [smem:[%s4318_s0 + %s3341_s14]]   ;;  %s3344_s26 = smov 6  }
   0x5   :  { %s3412_s21 = sld [smem:[%s4318_s0 + %s3342_s18]]   ;;  %s3345_s30 = smov 7  }
   0x6   :  { %s3417_s25 = sld [smem:[%s4318_s0 + %s3343_s22]]   ;;  %s3346_s4 = smov 8  }
   0x7   :  { %s3422_s29 = sld [smem:[%s4318_s0 + %s3344_s26]]   ;;  %s3347_s10 = smov 9  }
   0x8   :  { %s3427_s3 = sld [smem:[%s4318_s0 + %s3345_s30]]   ;;  %s3348_s15 = smov 10  }
   0x9   :  { %s3432_s8 = sld [smem:[%s4318_s0 + %s3346_s4]]   ;;  %s3349_s20 = smov 11  }
   0xa   :  { %4320 = sst [smem:[#allocation21_spill]] %s3407_s17  ;;  %s3350_s26 = smov 12  }
   0xb   :  { %s3437_s14 = sld [smem:[%s4318_s0 + %s3347_s10]]   ;;  %s3351_s1 = smov 13  }
   0xc   :  { %4321 = sst [smem:[#allocation22_spill]] %s3417_s25  ;;  %s3352_s7 = smov 14  }
   0xd   :  { %s3442_s19 = sld [smem:[%s4318_s0 + %s3348_s15]]   ;;  %s3353_s15 = smov 15  }
   0xe   :  { %s3447_s24 = sld [smem:[%s4318_s0 + %s3349_s20]]   ;;  %s3354_s22 = smov 16  }
   0xf   :  { %s3452_s30 = sld [smem:[%s4318_s0 + %s3350_s26]]   ;;  %s3355_s28 = smov 17  }
  0x10   :  { %s3457_s6 = sld [smem:[%s4318_s0 + %s3351_s1]]  }
  0x11   :  { %s3462_s12 = sld [smem:[%s4318_s0 + %s3352_s7]]   ;;  %s3356_s7 = smov 18  }
  0x12   :  { %s3467_s20 = sld [smem:[%s4318_s0 + %s3353_s15]]   ;;  %s3357_s15 = smov 19  }
  0x13   :  { %s3472_s27 = sld [smem:[%s4318_s0 + %s3354_s22]]   ;;  %s3358_s22 = smov 20  }
  0x14   :  { %s3477_s4 = sld [smem:[%s4318_s0 + %s3355_s28]]   ;;  %s3359_s28 = smov 21  }
  0x15   :  { %4322 = sst [smem:[#allocation23_spill]] %s3452_s30 }
  0x16   :  { %4323 = sst [smem:[#allocation24_spill]] %s3457_s6 }
  0x17   :  { %s3482_s17 = sld [smem:[%s4318_s0 + %s3356_s7]]   ;;  %s3360_s7 = smov 22  }
  0x18   :  { %4324 = sst [smem:[#allocation25_spill]] %s3467_s20 }
  0x19   :  { %4325 = sst [smem:[#allocation26_spill]] %s3472_s27 }
  0x1a   :  { %4326 = sst [smem:[#allocation27_spill]] %s3477_s4 }
  0x1b   :  { %s3487_s20 = sld [smem:[%s4318_s0 + %s3357_s15]]   ;;  %s3361_s15 = smov 23  }
  0x1c   :  { %s3492_s27 = sld [smem:[%s4318_s0 + %s3358_s22]]   ;;  %s3362_s22 = smov 24  }
  0x1d   :  { %s3497_s4 = sld [smem:[%s4318_s0 + %s3359_s28]]   ;;  %s3363_s28 = smov 25  }
  0x1e   :  { %s3502_s25 = sld [smem:[%s4318_s0 + %s3360_s7]]   ;;  %s3364_s7 = smov 26  }
  0x1f   :  { %s3522_s6 = sld [smem:[%s4318_s0 + %s3364_s7]]   ;;  %s3368_s7 = smov 30  }
  0x20   :  { %s3542_s30 = sld [smem:[%s4318_s0 + %s3368_s7]]   ;;  %s3372_s7 = smov 34  }
  0x21   :  { %4327 = sst [smem:[#allocation28_spill]] %s3487_s20 }
  0x22   :  { %4328 = sst [smem:[#allocation29_spill]] %s3492_s27 }
  0x23   :  { %4329 = sst [smem:[#allocation30_spill]] %s3497_s4 }
  0x24   :  { %s3507_s20 = sld [smem:[%s4318_s0 + %s3361_s15]]   ;;  %s3365_s15 = smov 27  }
  0x25   :  { %s3512_s27 = sld [smem:[%s4318_s0 + %s3362_s22]]   ;;  %s3366_s22 = smov 28  }
  0x26   :  { %s3517_s4 = sld [smem:[%s4318_s0 + %s3363_s28]]   ;;  %s3367_s28 = smov 29  }
  0x27   :  { %4336 = sst [smem:[#allocation37_spill]] %s3542_s30 }
  0x28   :  { %s3562_s30 = sld [smem:[%s4318_s0 + %s3372_s7]]  }
  0x2a   :  { %4330 = sst [smem:[#allocation31_spill]] %s3507_s20 }
  0x2b   :  { %4331 = sst [smem:[#allocation32_spill]] %s3512_s27 }
  0x2c   :  { %4332 = sst [smem:[#allocation33_spill]] %s3517_s4 }
  0x2d   :  { %s3527_s20 = sld [smem:[%s4318_s0 + %s3365_s15]]   ;;  %s3369_s15 = smov 31  }
  0x2e   :  { %s3532_s27 = sld [smem:[%s4318_s0 + %s3366_s22]]   ;;  %s3370_s22 = smov 32  }
  0x2f   :  { %s3537_s4 = sld [smem:[%s4318_s0 + %s3367_s28]]   ;;  %s3371_s28 = smov 33  }
  0x33   :  { %4333 = sst [smem:[#allocation34_spill]] %s3527_s20 }
  0x34   :  { %4334 = sst [smem:[#allocation35_spill]] %s3532_s27 }
  0x35   :  { %4335 = sst [smem:[#allocation36_spill]] %s3537_s4 }
  0x36   :  { %s3547_s20 = sld [smem:[%s4318_s0 + %s3369_s15]]  }
  0x37   :  { %s3552_s27 = sld [smem:[%s4318_s0 + %s3370_s22]]  }
  0x38   :  { %s3557_s4 = sld [smem:[%s4318_s0 + %s3371_s28]]  }
  0x39   :  { %74 = vsyncpa [#allocation5], 0 }
  0x3a   :  { %75 = vsyncpa [#allocation8], 0 }
  0x3b   :  { %76 = vsyncpa [#allocation11], 0 }
  0x3c   :  { %77 = vsyncpa [#allocation14], 0 }
  0x3d   :  { %78 = vsyncpa [#allocation6], 0  ;;  %s114_s15 = sshll.u32 %s3442_s19, 4  ;;  %s3373_s16 = smov [#allocation7]   ;;  %s115_s15 = int_to_ptr.hbm [resolvable:$true] %s114_s15 }
  0x3e   :  { %s116_s18 = sshll.u32 %s3373_s16, 4  ;;  %s152_s22 = sshll.u32 %s3482_s17, 4  ;;  %s117_s18 = int_to_ptr.vmem [resolvable:$true] %s116_s18  ;;  %s153_s22 = int_to_ptr.hbm [resolvable:$true] %s152_s22 }
  0x3f   :  { %s3161_s23 = sshra.s32 %s115_s15, 4  ;;  %s3165_s0 = scalar_lea.hbm %s3442_s19, 384  ;;  %s3162_s23 = int_to_ptr.hbm [resolvable:$true] %s3161_s23 }
  0x40   :  { %s3163_s26 = scalar_lea.hbm %s3162_s23, 384  ;;  %p3166_p1 = scmp.lt.s32.totalorder %s3162_s23, %s3442_s19 }
  0x41   :  { %p3164_p0 = scmp.ne.s32.totalorder %s3162_s23, %s3163_s26  ;;  %p3167_p2 = scmp.lt.s32.totalorder %s3165_s0, %s3163_s26 }
  0x43   :  { %p3168_p3 = por %p3167_p2, %p3166_p1 }
  0x45   :  { %p3169_p4 = pnand %p3168_p3, %p3164_p0 }
  0x47   :  { %3172 = shalt.err (!%p3169_p4)
}
  0x48   :  { %s3374_s28 = smov 128   ;;  %s3375_s1 = smov 8  }
  0x49   :  { %122 = dma.hbm_to_vmem [thread:$0]  %s115_s15, 6144, %s117_s18, [#allocation8], %s3374_s28, %s3374_s28, %s3375_s1  }
  0x4a   :  { %s3376_s2 = smov [#allocation10]   ;;  %s95_s10 = sshll.u32 %s3422_s29, 4  ;;  %s3572_s10 = int_to_ptr.hbm [resolvable:$true] %s95_s10 }
  0x4b   :  { %s154_s7 = sshll.u32 %s3376_s2, 4  ;;  %s3185_s19 = sshra.s32 %s153_s22, 4  ;;  %s155_s7 = int_to_ptr.vmem [resolvable:$true] %s154_s7  ;;  %s3186_s19 = int_to_ptr.hbm [resolvable:$true] %s3185_s19 }
  0x4c   :  { %s3187_s11 = scalar_lea.hbm %s3186_s19, 384  ;;  %s3189_s16 = scalar_lea.hbm %s3482_s17, 384 }
  0x4d   :  { %p3188_p5 = scmp.ne.s32.totalorder %s3186_s19, %s3187_s11  ;;  %p3190_p6 = scmp.lt.s32.totalorder %s3186_s19, %s3482_s17 }
  0x4e   :  { %p3191_p7 = scmp.lt.s32.totalorder %s3189_s16, %s3187_s11 }
  0x50   :  { %p3192_p8 = por %p3191_p7, %p3190_p6 }
  0x52   :  { %p3193_p9 = pnand %p3192_p8, %p3188_p5 }
  0x54   :  { %3196 = shalt.err (!%p3193_p9)
}
  0x55   :  { %160 = dma.hbm_to_vmem [thread:$0]  %s153_s22, 6144, %s155_s7, [#allocation11], %s3374_s28, %s3374_s28, %s3375_s1  }
  0x56   :  { %s133_s15 = sshll.u32 %s3462_s12, 4  ;;  %s3377_s18 = smov [#allocation4]   ;;  %s3580_s15 = int_to_ptr.hbm [resolvable:$true] %s133_s15 }
  0x57   :  { %s97_s23 = sshll.u32 %s3377_s18, 4  ;;  %s3209_s26 = sshra.s32 %s3572_s10, 4  ;;  %s98_s23 = int_to_ptr.vmem [resolvable:$true] %s97_s23  ;;  %s3210_s26 = int_to_ptr.hbm [resolvable:$true] %s3209_s26 }
  0x58   :  { %s3211_s17 = scalar_lea.hbm %s3210_s26, 384  ;;  %s3213_s0 = scalar_lea.hbm %s3422_s29, 384 }
  0x59   :  { %p3212_p10 = scmp.ne.s32.totalorder %s3210_s26, %s3211_s17  ;;  %p3214_p11 = scmp.lt.s32.totalorder %s3210_s26, %s3422_s29 }
  0x5a   :  { %p3215_p12 = scmp.lt.s32.totalorder %s3213_s0, %s3211_s17 }
  0x5c   :  { %p3216_p13 = por %p3215_p12, %p3214_p11 }
  0x5e   :  { %p3217_p0 = pnand %p3216_p13, %p3212_p10 }
  0x60   :  { %3220 = shalt.err (!%p3217_p0)
}
  0x61   :  { %103 = dma.hbm_to_vmem [thread:$0]  %s3572_s10, 6144, %s98_s23, [#allocation5], %s3374_s28, %s3374_s28, %s3375_s1  }
  0x62   :  { %s3378_s22 = smov [#allocation9]   ;;  %s171_s7 = sshll.u32 %s3502_s25, 4  ;;  %s3590_s7 = int_to_ptr.hbm [resolvable:$true] %s171_s7 }
  0x63   :  { %s135_s2 = sshll.u32 %s3378_s22, 4  ;;  %s3233_s29 = sshra.s32 %s3580_s15, 4  ;;  %s136_s2 = int_to_ptr.vmem [resolvable:$true] %s135_s2  ;;  %s3234_s29 = int_to_ptr.hbm [resolvable:$true] %s3233_s29 }
  0x64   :  { %s3235_s19 = scalar_lea.hbm %s3234_s29, 384  ;;  %s3237_s11 = scalar_lea.hbm %s3462_s12, 384 }
  0x65   :  { %p3236_p1 = scmp.ne.s32.totalorder %s3234_s29, %s3235_s19  ;;  %p3238_p2 = scmp.lt.s32.totalorder %s3234_s29, %s3462_s12 }
  0x66   :  { %p3239_p3 = scmp.lt.s32.totalorder %s3237_s11, %s3235_s19 }
  0x68   :  { %p3240_p4 = por %p3239_p3, %p3238_p2 }
  0x6a   :  { %p3241_p5 = pnand %p3240_p4, %p3236_p1 }
  0x6c   :  { %3244 = shalt.err (!%p3241_p5)
}
  0x6d   :  { %141 = dma.hbm_to_vmem [thread:$0]  %s3580_s15, 6144, %s136_s2, [#allocation8], %s3374_s28, %s3374_s28, %s3375_s1  }
  0x6e   :  { %s190_s10 = sshll.u32 %s3522_s6, 4  ;;  %s3379_s16 = smov [#allocation12]   ;;  %s3600_s10 = int_to_ptr.hbm [resolvable:$true] %s190_s10 }
  0x6f   :  { %s173_s18 = sshll.u32 %s3379_s16, 4  ;;  %s3257_s12 = sshra.s32 %s3590_s7, 4  ;;  %s174_s18 = int_to_ptr.vmem [resolvable:$true] %s173_s18  ;;  %s3258_s12 = int_to_ptr.hbm [resolvable:$true] %s3257_s12 }
  0x70   :  { %s3259_s23 = scalar_lea.hbm %s3258_s12, 384  ;;  %s3261_s26 = scalar_lea.hbm %s3502_s25, 384 }
  0x71   :  { %p3260_p6 = scmp.ne.s32.totalorder %s3258_s12, %s3259_s23  ;;  %p3262_p7 = scmp.lt.s32.totalorder %s3258_s12, %s3502_s25 }
  0x72   :  { %p3263_p8 = scmp.lt.s32.totalorder %s3261_s26, %s3259_s23 }
  0x74   :  { %p3264_p9 = por %p3263_p8, %p3262_p7 }
  0x76   :  { %p3265_p10 = pnand %p3264_p9, %p3260_p6 }
  0x78   :  { %3268 = shalt.err (!%p3265_p10)
}
  0x79   :  { %179 = dma.hbm_to_vmem [thread:$0]  %s3590_s7, 6144, %s174_s18, [#allocation11], %s3374_s28, %s3374_s28, %s3375_s1  }
  0x7a   :  { %s3380_s15 = smov [#allocation13]   ;;  %s3281_s0 = sshra.s32 %s3600_s10, 4  ;;  %s3282_s0 = int_to_ptr.hbm [resolvable:$true] %s3281_s0 }
  0x7b   :  { %s192_s17 = sshll.u32 %s3380_s15, 4  ;;  %s3283_s22 = scalar_lea.hbm %s3282_s0, 384  ;;  %s193_s17 = int_to_ptr.vmem [resolvable:$true] %s192_s17 }
  0x7c   :  { %p3284_p11 = scmp.ne.s32.totalorder %s3282_s0, %s3283_s22  ;;  %s3285_s25 = scalar_lea.hbm %s3522_s6, 384 }
  0x7d   :  { %p3286_p12 = scmp.lt.s32.totalorder %s3282_s0, %s3522_s6  ;;  %p3287_p13 = scmp.lt.s32.totalorder %s3285_s25, %s3283_s22 }
  0x7f   :  { %p3288_p0 = por %p3287_p13, %p3286_p12 }
  0x81   :  { %p3289_p1 = pnand %p3288_p0, %p3284_p11 }
  0x83   :  { %3292 = shalt.err (!%p3289_p1)
}
  0x84   :  { %198 = dma.hbm_to_vmem [thread:$0]  %s3600_s10, 6144, %s193_s17, [#allocation14], %s3374_s28, %s3374_s28, %s3375_s1  }
  0x85   :  { %3329 = dma.done.wait [#allocation5], 6144  }
  0x86   :  { %3330 = vsyncadd [#allocation5], 4294961152 }
  0x87   :  { %3331 = dma.done.wait [#allocation8], 12288  }
  0x88   :  { %3332 = vsyncadd [#allocation8], 4294955008 }
  0x89   :  { %3333 = dma.done.wait [#allocation11], 12288  }
  0x8a   :  { %3334 = vsyncadd [#allocation11], 4294955008 }
  0x8b   :  { %3335 = dma.done.wait [#allocation14], 6144  }
  0x8c   :  { %3336 = vsyncadd [#allocation14], 4294961152  ;;  %v3381_v0 = vmov 0   ;;  %v3382_v1 = vmov 0.0   ;;  %v387_v2 = vld [vmem:[#allocation4 + $0xf8] sm:$0xff]  ;;  %v386_v3 = vld [vmem:[#allocation4 + $0xf0] sm:$0xff] }
  0x8d   :  { %2977 = vset.pattern.permute.xlu0 %v3381_v0  ;;  %237 = vst [vmem:[#allocation2] sm:$0xff] %v3382_v1  ;;  %2988 = vset.pattern.permute.xlu1 %v3381_v0  ;;  %v403_v4 = vld [vmem:[#allocation4 + $0x178] sm:$0xff]  ;;  %v402_v6 = vld [vmem:[#allocation4 + $0x170] sm:$0xff]  ;;  %v385_v7 = vld [vmem:[#allocation4 + $0xe8] sm:$0xff]  ;;  %s4345_s6 = sld [smem:[#allocation30_spill]]  ;;  %s3383_s16 = smov [#allocation15]  }
  0x8e   :  { %240 = vst [vmem:[#allocation2 + $0x18] sm:$0xff] %v3382_v1  ;;  %2999 = vset.pattern.permute.xlu2 %v3381_v0  ;;  %449 = vmatpush.msra.mxu2 %v387_v2  ;;  %v371_v5 = vld [vmem:[#allocation4 + $0x78] sm:$0xff]  ;;  %v370_v8 = vld [vmem:[#allocation4 + $0x70] sm:$0xff]  ;;  %v401_v9 = vld [vmem:[#allocation4 + $0x168] sm:$0xff]  ;;  %s4346_s28 = sld [smem:[#allocation31_spill]]  ;;  %s2795_s18 = sshll.u32 %s3383_s16, 4  ;;  %s2796_s18 = int_to_ptr.vmem [resolvable:$true] %s2795_s18 }
  0x8f   :  { %241 = vst [vmem:[#allocation2 + $0x20] sm:$0xff] %v3382_v1  ;;  %490 = vmatpush.msra.mxu3 %v403_v4  ;;  %408 = vmatpush.msra.mxu1 %v371_v5  ;;  %v369_v10 = vld [vmem:[#allocation4 + $0x68] sm:$0xff]  ;;  %v384_v11 = vld [vmem:[#allocation4 + $0xe0] sm:$0xff]  ;;  %v383_v14 = vld [vmem:[#allocation4 + $0xd8] sm:$0xff]  ;;  %s4347_s1 = sld [smem:[#allocation32_spill]]  ;;  %s2797_s12 = sshll.u32 %s3562_s30, 4  ;;  %s2798_s12 = int_to_ptr.hbm [resolvable:$true] %s2797_s12 }
  0x90   :  { %244 = vst [vmem:[#allocation2 + $0x38] sm:$0xff] %v3382_v1  ;;  %450 = vmatpush.msra.mxu2 %v386_v3  ;;  %v400_v12 = vld [vmem:[#allocation4 + $0x160] sm:$0xff]  ;;  %v399_v15 = vld [vmem:[#allocation4 + $0x158] sm:$0xff]  ;;  %v382_v17 = vld [vmem:[#allocation4 + $0xd0] sm:$0xff]  ;;  %s4348_s2 = sld [smem:[#allocation33_spill]]  ;;  %s3321_s23 = scalar_lea.hbm %s3562_s30, 2 }
  0x91   :  { %245 = vst [vmem:[#allocation2 + $0x40] sm:$0xff] %v3382_v1  ;;  %491 = vmatpush.msra.mxu3 %v402_v6  ;;  %409 = vmatpush.msra.mxu1 %v370_v8  ;;  %v368_v13 = vld [vmem:[#allocation4 + $0x60] sm:$0xff]  ;;  %v367_v16 = vld [vmem:[#allocation4 + $0x58] sm:$0xff]  ;;  %v398_v18 = vld [vmem:[#allocation4 + $0x150] sm:$0xff]  ;;  %s4349_s7 = sld [smem:[#allocation34_spill]] }
  0x92   :  { %246 = vst [vmem:[#allocation3] sm:$0xff] %v3382_v1  ;;  %451 = vmatpush.msra.mxu2 %v385_v7  ;;  %v366_v19 = vld [vmem:[#allocation4 + $0x50] sm:$0xff]  ;;  %v381_v20 = vld [vmem:[#allocation4 + $0xc8] sm:$0xff]  ;;  %v380_v22 = vld [vmem:[#allocation4 + $0xc0] sm:$0xff]  ;;  %s4350_s29 = sld [smem:[#allocation35_spill]] }
  0x93   :  { %249 = vst [vmem:[#allocation3 + $0x18] sm:$0xff] %v3382_v1  ;;  %492 = vmatpush.msra.mxu3 %v401_v9  ;;  %410 = vmatpush.msra.mxu1 %v369_v10  ;;  %v397_v21 = vld [vmem:[#allocation4 + $0x148] sm:$0xff]  ;;  %v396_v24 = vld [vmem:[#allocation4 + $0x140] sm:$0xff]  ;;  %v379_v28 = vld [vmem:[#allocation4 + $0xb8] sm:$0xff]  ;;  %s4351_s19 = sld [smem:[#allocation36_spill]] }
  0x94   :  { %250 = vst [vmem:[#allocation3 + $0x20] sm:$0xff] %v3382_v1  ;;  %452 = vmatpush.msra.mxu2 %v384_v11  ;;  %v365_v23 = vld [vmem:[#allocation4 + $0x48] sm:$0xff]  ;;  %v3629_v25 = vld [vmem:[%s3397_s9] sm:$0xff]  ;;  %v378_v29 = vld [vmem:[#allocation4 + $0xb0] sm:$0xff]  ;;  %s4352_s11 = sld [smem:[#allocation21_spill]] }
  0x95   :  { %251 = vst [vmem:[#allocation3 + $0x28] sm:$0xff] %v3382_v1  ;;  %493 = vmatpush.msra.mxu3 %v400_v12  ;;  %411 = vmatpush.msra.mxu1 %v368_v13  ;;  %v3632_v26 = vld [vmem:[%s3397_s9 + $0x8] sm:$0xff]  ;;  %v364_v27 = vld [vmem:[#allocation4 + $0x40] sm:$0xff]  ;;  %vm531_vm0 = vcmp.lt.s32.totalorder %v3629_v25, 18  ;;  %v395_v30 = vld [vmem:[#allocation4 + $0x138] sm:$0xff]  ;;  %vm1317_vm10 = vcmp.lt.s32.totalorder %v3629_v25, 20 }
  0x96   :  { %254 = vst [vmem:[#allocation3 + $0x40] sm:$0xff] %v3382_v1  ;;  %453 = vmatpush.msra.mxu2 %v383_v14  ;;  %vm532_vm1 = vcmp.lt.s32.totalorder %v3632_v26, 18  ;;  %v2844_v31 = vsel %vm531_vm0, 1.0, %v3382_v1  ;;  %v363_v33 = vld [vmem:[#allocation4 + $0x38] sm:$0xff]  ;;  %v394_v34 = vld [vmem:[#allocation4 + $0x130] sm:$0xff]  ;;  %v3639_v36 = vld [vmem:[%s3392_s5] sm:$0xff] }
  0x97   :  { %255 = vst [vmem:[#allocation3 + $0x48] sm:$0xff] %v3382_v1  ;;  %494 = vmatpush.msra.mxu3 %v399_v15  ;;  %412 = vmatpush.msra.mxu1 %v367_v16  ;;  %v2845_v32 = vsel %vm532_vm1, 1.0, %v3382_v1  ;;  %v377_v37 = vld [vmem:[#allocation4 + $0xa8] sm:$0xff]  ;;  %v362_v38 = vld [vmem:[#allocation4 + $0x30] sm:$0xff]  ;;  %v261_v40 = vld [vmem:[%s3397_s9 + $0x20] sm:$0xff]  ;;  %vm1318_vm13 = vcmp.lt.s32.totalorder %v3632_v26, 20 }
  0x98   :  { %256 = vst [vmem:[#allocation3 + $0x50] sm:$0xff] %v3382_v1  ;;  %454 = vmatpush.msra.mxu2 %v382_v17  ;;  %v2978_v35 = vpack.i.bf16 %v2845_v32, %v2844_v31  ;;  %v393_v39 = vld [vmem:[#allocation4 + $0x128] sm:$0xff]  ;;  %vm535_vm2 = vcmp.lt.s32.totalorder %v261_v40, 18  ;;  %v3645_v42 = vld [vmem:[%s3397_s9 + $0x10] sm:$0xff]  ;;  %v3648_v43 = vld [vmem:[%s3397_s9 + $0x18] sm:$0xff]  ;;  %s4353_s10 = sld [smem:[#allocation37_spill]] }
  0x99   :  { %495 = vmatpush.msra.mxu3 %v398_v18  ;;  %413 = vmatpush.msra.mxu1 %v366_v19  ;;  %328 = vst [vmem:[#allocation2 + $0x8] sm:$0xff] %v3639_v36  ;;  %v262_v41 = vld [vmem:[%s3397_s9 + $0x28] sm:$0xff]  ;;  %v2848_v45 = vsel %vm535_vm2, 1.0, %v3382_v1  ;;  %vm533_vm4 = vcmp.lt.s32.totalorder %v3645_v42, 18  ;;  %vm534_vm5 = vcmp.lt.s32.totalorder %v3648_v43, 18  ;;  %v3661_v50 = vld [vmem:[%s3397_s9 + $0x30] sm:$0xff] }
  0x9a   :  { %455 = vmatpush.msra.mxu2 %v381_v20  ;;  %v361_v44 = vld [vmem:[#allocation4 + $0x28] sm:$0xff]  ;;  %2979 = vperm.xlu0 %2977, %v2978_v35   ;;  %vm536_vm3 = vcmp.lt.s32.totalorder %v262_v41, 18  ;;  %v2846_v48 = vsel %vm533_vm4, 1.0, %v3382_v1  ;;  %v2847_v49 = vsel %vm534_vm5, 1.0, %v3382_v1  ;;  %v3664_v51 = vld [vmem:[%s3397_s9 + $0x38] sm:$0xff]  ;;  %v376_v52 = vld [vmem:[#allocation4 + $0xa0] sm:$0xff] }
  0x9b   :  { %496 = vmatpush.msra.mxu3 %v397_v21  ;;  %414 = vmatpush.msra.mxu1 %v365_v23  ;;  %v3654_v46 = vld [vmem:[%s3392_s5 + $0x8] sm:$0xff]  ;;  %v2849_v47 = vsel %vm536_vm3, 1.0, %v3382_v1  ;;  %v392_v53 = vld [vmem:[#allocation4 + $0x120] sm:$0xff]  ;;  %vm537_vm6 = vcmp.lt.s32.totalorder %v3661_v50, 18  ;;  %vm538_vm7 = vcmp.lt.s32.totalorder %v3664_v51, 18  ;;  %v375_v58 = vld [vmem:[#allocation4 + $0x98] sm:$0xff]  ;;  %v2983_v60 = vpack.i.bf16 %v2847_v49, %v2846_v48 }
  0x9c   :  { %456 = vmatpush.msra.mxu2 %v380_v22  ;;  %329 = vst [vmem:[#allocation2 + $0x10] sm:$0xff] %v3654_v46  ;;  %v2989_v54 = vpack.i.bf16 %v2849_v47, %v2848_v45  ;;  %v360_v55 = vld [vmem:[#allocation4 + $0x20] sm:$0xff]  ;;  %v3672_v57 = vld [vmem:[%s3402_s13 + $0x28] sm:$0xff]  ;;  %v391_v59 = vld [vmem:[#allocation4 + $0x118] sm:$0xff]  ;;  %v2850_v62 = vsel %vm537_vm6, 1.0, %v3382_v1  ;;  %v2851_v63 = vsel %vm538_vm7, 1.0, %v3382_v1 }
  0x9d   :  { %497 = vmatpush.msra.mxu3 %v396_v24  ;;  %415 = vmatpush.msra.mxu1 %v364_v27  ;;  %v3669_v56 = vld [vmem:[%s3402_s13 + $0x20] sm:$0xff]  ;;  %v359_v61 = vld [vmem:[#allocation4 + $0x18] sm:$0xff]  ;;  %v3677_v0 = vld [vmem:[%s3392_s5 + $0x10] sm:$0xff]  ;;  %vm932_vm9 = vcmp.lt.s32.totalorder %v3672_v57, 20  ;;  %v2994_v10 = vpack.i.bf16 %v2851_v63, %v2850_v62  ;;  %v2862_v18 = vsel %vm1317_vm10, 1.0, %v3382_v1  ;;  %v2863_v23 = vsel %vm1318_vm13, 1.0, %v3382_v1 }
  0x9e   :  { %457 = vmatpush.msra.mxu2 %v379_v28  ;;  %2990 = vperm.xlu1 %2988, %v2989_v54   ;;  %v374_v2 = vld [vmem:[#allocation4 + $0x90] sm:$0xff]  ;;  %vm931_vm8 = vcmp.lt.s32.totalorder %v3669_v56, 20  ;;  %330 = vst [vmem:[#allocation2 + $0x28] sm:$0xff] %v3677_v0  ;;  %v3686_v6 = vld [vmem:[%s3402_s13 + $0x38] sm:$0xff]  ;;  %v373_v7 = vld [vmem:[#allocation4 + $0x88] sm:$0xff]  ;;  %v2857_v12 = vsel %vm932_vm9, 1.0, %v3382_v1  ;;  %v3025_v28 = vpack.i.bf16 %v2863_v23, %v2862_v18 }
  0x9f   :  { %498 = vmatpush.msra.mxu3 %v395_v30  ;;  %416 = vmatpush.msra.mxu1 %v363_v33  ;;  %v390_v3 = vld [vmem:[#allocation4 + $0x110] sm:$0xff]  ;;  %v389_v8 = vld [vmem:[#allocation4 + $0x108] sm:$0xff]  ;;  %v2856_v11 = vsel %vm931_vm8, 1.0, %v3382_v1  ;;  %v372_v13 = vld [vmem:[#allocation4 + $0x80] sm:$0xff]  ;;  %vm934_vm12 = vcmp.lt.s32.totalorder %v3686_v6, 20  ;;  %vm1319_vm14 = vcmp.lt.s32.totalorder %v3645_v42, 20 }
  0xa0   :  { %458 = vmatpush.msra.mxu2 %v378_v29  ;;  %v358_v4 = vld [vmem:[#allocation4 + $0x10] sm:$0xff]  ;;  %v357_v9 = vld [vmem:[#allocation4 + $0x8] sm:$0xff]  ;;  %v388_v14 = vld [vmem:[#allocation4 + $0x100] sm:$0xff]  ;;  %v3010_v17 = vpack.i.bf16 %v2857_v12, %v2856_v11  ;;  %v2859_v21 = vsel %vm934_vm12, 1.0, %v3382_v1  ;;  %vm1320_vm15 = vcmp.lt.s32.totalorder %v3648_v43, 20  ;;  %v2864_v30 = vsel %vm1319_vm14, 1.0, %v3382_v1 }
  0xa1   :  { %499 = vmatpush.msra.mxu3 %v394_v34  ;;  %417 = vmatpush.msra.mxu1 %v362_v38  ;;  %v3683_v5 = vld [vmem:[%s3402_s13 + $0x30] sm:$0xff]  ;;  %v340_v15 = vld [vmem:[#allocation2 + $0x7] sm:$0xff]  ;;  %v3704_v22 = vld [vmem:[%s3392_s5 + $0x18] sm:$0xff]  ;;  %v2865_v31 = vsel %vm1320_vm15, 1.0, %v3382_v1  ;;  %vm1323_vm0 = vcmp.lt.s32.totalorder %v3661_v50, 20  ;;  %vm1324_vm1 = vcmp.lt.s32.totalorder %v3664_v51, 20 }
  0xa2   :  { %459 = vmatpush.msra.mxu2 %v377_v37  ;;  %2984 = vperm.xlu0 %2977, %v2983_v60   ;;  %vm933_vm11 = vcmp.lt.s32.totalorder %v3683_v5, 20  ;;  %v356_v16 = vld [vmem:[#allocation4] sm:$0xff]  ;;  %331 = vst [vmem:[#allocation2 + $0x30] sm:$0xff] %v3704_v22  ;;  %v3720_v33 = vld [vmem:[%s3402_s13 + $0x8] sm:$0xff]  ;;  %v3030_v34 = vpack.i.bf16 %v2865_v31, %v2864_v30  ;;  %v2868_v35 = vsel %vm1323_vm0, 1.0, %v3382_v1  ;;  %v2869_v37 = vsel %vm1324_vm1, 1.0, %v3382_v1 }
  0xa3   :  { %500 = vmatpush.msra.mxu3 %v393_v39  ;;  %418 = vmatpush.msra.mxu1 %v361_v44  ;;  %v332_v19 = vld [vmem:[#allocation2 + $0x6] sm:$0xff]  ;;  %v2858_v20 = vsel %vm933_vm11, 1.0, %v3382_v1  ;;  %v341_v27 = vld [vmem:[#allocation2 + $0xf] sm:$0xff]  ;;  %vm1714_vm3 = vcmp.lt.s32.totalorder %v3720_v33, 24  ;;  %v342_v38 = vld [vmem:[#allocation2 + $0x17] sm:$0xff]  ;;  %v3040_v39 = vpack.i.bf16 %v2869_v37, %v2868_v35  ;;  %vm1717_vm4 = vcmp.lt.s32.totalorder %v3669_v56, 24 }
  0xa4   :  { %460 = vmatpush.msra.mxu2 %v376_v52  ;;  %v3015_v24 = vpack.i.bf16 %v2859_v21, %v2858_v20  ;;  %v333_v29 = vld [vmem:[#allocation2 + $0xe] sm:$0xff]  ;;  %v3717_v32 = vld [vmem:[%s3402_s13] sm:$0xff]  ;;  %v334_v40 = vld [vmem:[#allocation2 + $0x16] sm:$0xff]  ;;  %v2871_v44 = vsel %vm1714_vm3, 1.0, %v3382_v1  ;;  %vm1718_vm5 = vcmp.lt.s32.totalorder %v3672_v57, 24  ;;  %v2874_v47 = vsel %vm1717_vm4, 1.0, %v3382_v1 }
  0xa5   :  { %501 = vmatpush.msra.mxu3 %v392_v53  ;;  %419 = vmatpush.msra.mxu1 %v360_v55  ;;  %vm1713_vm2 = vcmp.lt.s32.totalorder %v3717_v32, 24  ;;  %v2875_v48 = vsel %vm1718_vm5, 1.0, %v3382_v1  ;;  %vm1719_vm6 = vcmp.lt.s32.totalorder %v3683_v5, 24  ;;  %vm1720_vm7 = vcmp.lt.s32.totalorder %v3686_v6, 24  ;;  %v343_v49 = vld [vmem:[#allocation2 + $0x1f] sm:$0xff]  ;;  %s4337_s5 = sld [smem:[#allocation23_spill]] }
  0xa6   :  { %461 = vmatpush.msra.mxu2 %v375_v58  ;;  %2995 = vperm.xlu1 %2988, %v2994_v10   ;;  %v2870_v41 = vsel %vm1713_vm2, 1.0, %v3382_v1  ;;  %v3055_v52 = vpack.i.bf16 %v2875_v48, %v2874_v47  ;;  %v335_v53 = vld [vmem:[#allocation2 + $0x1e] sm:$0xff]  ;;  %v2876_v54 = vsel %vm1719_vm6, 1.0, %v3382_v1  ;;  %v2877_v55 = vsel %vm1720_vm7, 1.0, %v3382_v1  ;;  %v336_v63 = vld [vmem:[#allocation2 + $0x26] sm:$0xff] }
  0xa7   :  { %502 = vmatpush.msra.mxu3 %v391_v59  ;;  %420 = vmatpush.msra.mxu1 %v359_v61  ;;  %v3045_v45 = vpack.i.bf16 %v2871_v44, %v2870_v41  ;;  %vm2103_vm8 = vcmp.lt.s32.totalorder %v3629_v25, 24  ;;  %vm2104_vm9 = vcmp.lt.s32.totalorder %v3632_v26, 24  ;;  %v3060_v58 = vpack.i.bf16 %v2877_v55, %v2876_v54  ;;  %v344_v61 = vld [vmem:[#allocation2 + $0x27] sm:$0xff] }
  0xa8   :  { %462 = vmatpush.msra.mxu2 %v374_v2  ;;  %v2880_v59 = vsel %vm2103_vm8, 1.0, %v3382_v1  ;;  %v2881_v60 = vsel %vm2104_vm9, 1.0, %v3382_v1  ;;  %vm2105_vm10 = vcmp.lt.s32.totalorder %v3645_v42, 24  ;;  %vm2106_vm11 = vcmp.lt.s32.totalorder %v3648_v43, 24 }
  0xa9   :  { %503 = vmatpush.msra.mxu3 %v390_v3  ;;  %421 = vmatpush.msra.mxu1 %v358_v4  ;;  %v3070_v62 = vpack.i.bf16 %v2881_v60, %v2880_v59  ;;  %v2882_v2 = vsel %vm2105_vm10, 1.0, %v3382_v1  ;;  %v2883_v25 = vsel %vm2106_vm11, 1.0, %v3382_v1  ;;  %vm2109_vm12 = vcmp.lt.s32.totalorder %v3661_v50, 24  ;;  %v345_v3 = vld [vmem:[#allocation2 + $0x2f] sm:$0xff]  ;;  %v346_v11 = vld [vmem:[#allocation2 + $0x37] sm:$0xff] }
  0xaa   :  { %463 = vmatpush.msra.mxu2 %v373_v7  ;;  %3011 = vperm.xlu0 %2977, %v3010_v17   ;;  %vm2110_vm13 = vcmp.lt.s32.totalorder %v3664_v51, 24  ;;  %v3075_v26 = vpack.i.bf16 %v2883_v25, %v2882_v2  ;;  %v2886_v42 = vsel %vm2109_vm12, 1.0, %v3382_v1  ;;  %vm2499_vm14 = vcmp.lt.s32.totalorder %v3717_v32, 32  ;;  %v337_v7 = vld [vmem:[#allocation2 + $0x2e] sm:$0xff] }
  0xab   :  { %504 = vmatpush.msra.mxu3 %v389_v8  ;;  %422 = vmatpush.msra.mxu1 %v357_v9  ;;  %v2887_v43 = vsel %vm2110_vm13, 1.0, %v3382_v1  ;;  %vm2500_vm15 = vcmp.lt.s32.totalorder %v3720_v33, 32  ;;  %v2888_v8 = vsel %vm2499_vm14, 1.0, %v3382_v1  ;;  %vm2503_vm0 = vcmp.lt.s32.totalorder %v3669_v56, 32  ;;  %v288_v2 = vld [vmem:[%s3412_s21 + $0x48] sm:$0xff] }
  0xac   :  { %464 = vmatpush.msra.mxu2 %v372_v13  ;;  %v3085_v4 = vpack.i.bf16 %v2887_v43, %v2886_v42  ;;  %v2889_v50 = vsel %vm2500_vm15, 1.0, %v3382_v1  ;;  %vm2504_vm1 = vcmp.lt.s32.totalorder %v3672_v57, 32  ;;  %v2892_v9 = vsel %vm2503_vm0, 1.0, %v3382_v1  ;;  %v338_v13 = vld [vmem:[#allocation2 + $0x36] sm:$0xff]  ;;  %v287_v43 = vld [vmem:[%s3412_s21 + $0x40] sm:$0xff] }
  0xad   :  { %505 = vmatpush.msra.mxu3 %v388_v14  ;;  %465 = vmatmul.f32.vlgmr.msra.gmra.mxu2 %v340_v15  ;;  %v3090_v51 = vpack.i.bf16 %v2889_v50, %v2888_v8  ;;  %v2893_v10 = vsel %vm2504_vm1, 1.0, %v3382_v1  ;;  %vm2505_vm2 = vcmp.lt.s32.totalorder %v3683_v5, 32  ;;  %vm2506_vm3 = vcmp.lt.s32.totalorder %v3686_v6, 32  ;;  %v347_v15 = vld [vmem:[#allocation2 + $0x3f] sm:$0xff] }
  0xae   :  { %506 = vmatmul.f32.vlgmr.msra.gmra.mxu3 %v3639_v36  ;;  %423 = vmatpush.msra.mxu1 %v356_v16  ;;  %v3100_v12 = vpack.i.bf16 %v2893_v10, %v2892_v9  ;;  %v2894_v14 = vsel %vm2505_vm2, 1.0, %v3382_v1  ;;  %v2895_v56 = vsel %vm2506_vm3, 1.0, %v3382_v1  ;;  %v339_v5 = vld [vmem:[#allocation2 + $0x3e] sm:$0xff]  ;;  %vm927_vm7 = vcmp.lt.s32.totalorder %v3717_v32, 20 }
  0xaf   :  { %424 = vmatmul.f32.vlgmr.msra.gmra.mxu1 %v332_v19  ;;  %3016 = vperm.xlu1 %2988, %v3015_v24   ;;  %v3105_v57 = vpack.i.bf16 %v2895_v56, %v2894_v14  ;;  %v286_v10 = vld [vmem:[%s3412_s21 + $0x38] sm:$0xff]  ;;  %vm928_vm8 = vcmp.lt.s32.totalorder %v3720_v33, 20 }
  0xb2   :  { %3026 = vperm.xlu0 %2977, %v3025_v28   ;;  %v294_v28 = vld [vmem:[%s3412_s21 + $0x78] sm:$0xff] }
  0xb3   :  { %299 = vmatpush.msra.mxu0 %v294_v28 }
  0xb5   :  { %468 = vmatmul.f32.gmra.mxu2 %v341_v27 }
  0xb6   :  { %509 = vmatmul.f32.gmra.mxu3 %v3654_v46 }
  0xb7   :  { %427 = vmatmul.f32.gmra.mxu1 %v333_v29  ;;  %3031 = vperm.xlu1 %2988, %v3030_v34   ;;  %v3769_v34 = vld [vmem:[%s3427_s3] ss:$0 sm:$0xff]  ;;  %s4341_s3 = sld [smem:[#allocation26_spill]] }
  0xba   :  { %3041 = vperm.xlu0 %2977, %v3040_v39   ;;  %v292_v39 = vld [vmem:[%s3412_s21 + $0x68] sm:$0xff] }
  0xbd   :  { %471 = vmatmul.f32.gmra.mxu2 %v342_v38 }
  0xbe   :  { %512 = vmatmul.f32.gmra.mxu3 %v3382_v1 }
  0xbf   :  { %430 = vmatmul.f32.gmra.mxu1 %v334_v40  ;;  %3046 = vperm.xlu1 %2988, %v3045_v45   ;;  %v291_v45 = vld [vmem:[%s3412_s21 + $0x60] sm:$0xff] }
  0xc2   :  { %3056 = vperm.xlu0 %2977, %v3055_v52   ;;  %v290_v52 = vld [vmem:[%s3412_s21 + $0x58] sm:$0xff] }
  0xc5   :  { %474 = vmatmul.f32.gmra.mxu2 %v343_v49 }
  0xc6   :  { %515 = vmatmul.f32.gmra.mxu3 %v3382_v1 }
  0xc7   :  { %433 = vmatmul.f32.gmra.mxu1 %v335_v53  ;;  %3061 = vperm.xlu1 %2988, %v3060_v58   ;;  %v289_v58 = vld [vmem:[%s3412_s21 + $0x50] sm:$0xff] }
  0xca   :  { %3071 = vperm.xlu0 %2977, %v3070_v62  }
  0xcd   :  { %477 = vmatmul.f32.gmra.mxu2 %v344_v61 }
  0xce   :  { %518 = vmatmul.f32.gmra.mxu3 %v3677_v0 }
  0xcf   :  { %436 = vmatmul.f32.gmra.mxu1 %v336_v63  ;;  %3076 = vperm.xlu1 %2988, %v3075_v26  }
  0xd2   :  { %3086 = vperm.xlu0 %2977, %v3085_v4  }
  0xd5   :  { %480 = vmatmul.f32.gmra.mxu2 %v345_v3 }
  0xd6   :  { %521 = vmatmul.f32.gmra.mxu3 %v3704_v22 }
  0xd7   :  { %439 = vmatmul.f32.gmra.mxu1 %v337_v7  ;;  %3091 = vperm.xlu1 %2988, %v3090_v51  }
  0xda   :  { %3101 = vperm.xlu0 %2977, %v3100_v12  }
  0xdd   :  { %483 = vmatmul.f32.gmra.mxu2 %v346_v11 }
  0xde   :  { %524 = vmatmul.f32.gmra.mxu3 %v3382_v1 }
  0xdf   :  { %442 = vmatmul.f32.gmra.mxu1 %v338_v13  ;;  %3106 = vperm.xlu1 %2988, %v3105_v57  }
  0xe5   :  { %486 = vmatmul.f32.gmra.mxu2 %v347_v15  ;;  %v285_v15 = vld [vmem:[%s3412_s21 + $0x30] sm:$0xff] }
  0xe6   :  { %527 = vmatmul.f32.gmra.mxu3 %v3382_v1  ;;  %v293_v1 = vld [vmem:[%s3412_s21 + $0x70] sm:$0xff] }
  0xe7   :  { %445 = vmatmul.f32.gmra.mxu1 %v339_v5  ;;  %300 = vmatpush.msra.mxu0 %v293_v1 }
  0xe9   :  { %301 = vmatpush.msra.mxu0 %v292_v39 }
  0xeb   :  { %302 = vmatpush.msra.mxu0 %v291_v45 }
  0xed   :  { %303 = vmatpush.msra.mxu0 %v290_v52 }
  0xef   :  { %304 = vmatpush.msra.mxu0 %v289_v58 }
  0xf1   :  { %305 = vmatpush.msra.mxu0 %v288_v2 }
  0xf3   :  { %306 = vmatpush.msra.mxu0 %v287_v43 }
  0xf5   :  { %307 = vmatpush.msra.mxu0 %v286_v10 }
  0xf7   :  { %308 = vmatpush.msra.mxu0 %v285_v15 }
 0x10c   :  { %v2980_v40 = vpop.permute.xlu0 %2979 }
 0x10d   :  { %v2982_v3 = vunpack.i.h.bf16 %v2980_v40  ;;  %v2981_v11 = vunpack.i.l.bf16 %v2980_v40 }
 0x110   :  { %v3789_v4 = vpop.permute.xlu1 %2990 }
 0x114   :  { %v2985_v7 = vpop.permute.xlu0 %2984 }
 0x115   :  { %v2986_v12 = vunpack.i.l.bf16 %v2985_v7  ;;  %v2987_v5 = vunpack.i.h.bf16 %v2985_v7  ;;  %v779_v7 = vld [vmem:[#allocation7 + $0x168] sm:$0xff] }
 0x12c   :  { %v425_v6 = vpop.f32.mrf.mxu1 }
 0x12d   :  { %v426_v41 = vadd.f32 %v3769_v34, %v425_v6 }
 0x130   :  { %v466_v16 = vpop.f32.mrf.mxu2 }
 0x131   :  { %v507_v17 = vpop.f32.mrf.mxu3  ;;  %v467_v53 = vadd.f32 %v466_v16, %v426_v41 }
 0x133   :  { %v3784_v25 = vadd.f32 %v507_v17, %v467_v53 }
 0x134   :  { %v428_v18 = vpop.f32.mrf.mxu1 }
 0x135   :  { %v429_v35 = vadd.f32 %v3769_v34, %v428_v18  ;;  %v616_v14 = vmul.f32 %v3784_v25, %v3784_v25 }
 0x138   :  { %v469_v19 = vpop.f32.mrf.mxu2 }
 0x139   :  { %v510_v20 = vpop.f32.mrf.mxu3  ;;  %v470_v47 = vadd.f32 %v469_v19, %v429_v35  ;;  %v2993_v35 = vunpack.i.h.bf16 %v3789_v4 }
 0x13b   :  { %v3780_v59 = vadd.f32 %v510_v20, %v470_v47  ;;  %v781_v47 = vld [vmem:[#allocation7 + $0x178] sm:$0xff] }
 0x13c   :  { %v431_v21 = vpop.f32.mrf.mxu1  ;;  %880 = vmatpush.msrb.mxu2 %v781_v47  ;;  %v761_v47 = vld [vmem:[#allocation7 + $0xd8] sm:$0xff] }
 0x13d   :  { %v432_v44 = vadd.f32 %v3769_v34, %v431_v21  ;;  %v617_v8 = vmul.f32 %v3780_v59, %v3780_v59  ;;  %v596_v6 = vmul.f32 %v2982_v3, %v3780_v59  ;;  %v284_v21 = vld [vmem:[%s3412_s21 + $0x28] sm:$0xff] }
 0x13e   :  { %309 = vmatpush.msra.mxu0 %v284_v21 }
 0x13f   :  { %v625_v16 = vmul.f32 %v2982_v3, %v617_v8  ;;  %v280_v8 = vld [vmem:[%s3412_s21 + $0x8] sm:$0xff] }
 0x140   :  { %v472_v23 = vpop.f32.mrf.mxu2 }
 0x141   :  { %v513_v24 = vpop.f32.mrf.mxu3  ;;  %v473_v54 = vadd.f32 %v472_v23, %v432_v44  ;;  %v2992_v23 = vunpack.i.l.bf16 %v3789_v4 }
 0x143   :  { %v3786_v26 = vadd.f32 %v513_v24, %v473_v54  ;;  %v595_v24 = vmul.f32 %v2981_v11, %v3784_v25  ;;  %v2996_v54 = vpop.permute.xlu1 %2995 }
 0x144   :  { %v434_v27 = vpop.f32.mrf.mxu1 }
 0x145   :  { %v435_v48 = vadd.f32 %v3769_v34, %v434_v27  ;;  %v618_v56 = vmul.f32 %v3786_v26, %v3786_v26  ;;  %v597_v27 = vmul.f32 %v2986_v12, %v3786_v26 }
 0x148   :  { %v475_v29 = vpop.f32.mrf.mxu2 }
 0x149   :  { %v516_v30 = vpop.f32.mrf.mxu3  ;;  %v476_v60 = vadd.f32 %v475_v29, %v435_v48  ;;  %v624_v29 = vmul.f32 %v2981_v11, %v616_v14  ;;  %v282_v48 = vld [vmem:[%s3412_s21 + $0x18] sm:$0xff]  ;;  %v778_v11 = vld [vmem:[#allocation7 + $0x160] sm:$0xff] }
 0x14b   :  { %v517_v50 = vadd.f32 %v516_v30, %v476_v60  ;;  %v626_v30 = vmul.f32 %v2986_v12, %v618_v56  ;;  %v632_v40 = vadd.f32 %v625_v16, %v624_v29  ;;  %v780_v60 = vld [vmem:[#allocation7 + $0x170] sm:$0xff]  ;;  %v279_v12 = vld [vmem:[%s3412_s21] sm:$0xff]  ;;  %v777_v16 = vld [vmem:[#allocation7 + $0x158] sm:$0xff] }
 0x14c   :  { %v437_v31 = vpop.f32.mrf.mxu1  ;;  %881 = vmatpush.msrb.mxu2 %v780_v60 }
 0x14d   :  { %v438_v55 = vadd.f32 %v3769_v34, %v437_v31  ;;  %v619_v17 = vmul.f32 %v517_v50, %v517_v50  ;;  %v283_v31 = vld [vmem:[%s3412_s21 + $0x20] sm:$0xff] }
 0x14e   :  { %310 = vmatpush.msra.mxu0 %v283_v31  ;;  %882 = vmatpush.msrb.mxu2 %v779_v7  ;;  %v775_v31 = vld [vmem:[#allocation7 + $0x148] sm:$0xff]  ;;  %v770_v7 = vld [vmem:[#allocation7 + $0x120] sm:$0xff] }
 0x14f   :  { %v627_v41 = vmul.f32 %v2987_v5, %v619_v17  ;;  %v749_v17 = vld [vmem:[#allocation7 + $0x78] sm:$0xff] }
 0x150   :  { %v478_v37 = vpop.f32.mrf.mxu2  ;;  %311 = vmatpush.msra.mxu0 %v282_v48  ;;  %883 = vmatpush.msrb.mxu2 %v778_v11  ;;  %v745_v48 = vld [vmem:[#allocation7 + $0x58] sm:$0xff]  ;;  %v756_v11 = vld [vmem:[#allocation7 + $0xb0] sm:$0xff] }
 0x151   :  { %v519_v38 = vpop.f32.mrf.mxu3  ;;  %v479_v42 = vadd.f32 %v478_v37, %v438_v55  ;;  %v603_v37 = vadd.f32 %v596_v6, %v595_v24  ;;  %v633_v55 = vadd.f32 %v632_v40, %v626_v30  ;;  %v765_v6 = vld [vmem:[#allocation7 + $0xf8] sm:$0xff]  ;;  %v776_v24 = vld [vmem:[#allocation7 + $0x150] sm:$0xff]  ;;  %v774_v40 = vld [vmem:[#allocation7 + $0x140] sm:$0xff] }
 0x152   :  { %833 = vmatpush.msrb.mxu1 %v765_v6  ;;  %884 = vmatpush.msrb.mxu2 %v777_v16  ;;  %v767_v6 = vld [vmem:[#allocation7 + $0x108] sm:$0xff] }
 0x153   :  { %v3799_v57 = vadd.f32 %v519_v38, %v479_v42  ;;  %v598_v38 = vmul.f32 %v2987_v5, %v517_v50  ;;  %v634_v43 = vadd.f32 %v633_v55, %v627_v41  ;;  %v746_v41 = vld [vmem:[#allocation7 + $0x60] sm:$0xff]  ;;  %v744_v55 = vld [vmem:[#allocation7 + $0x50] sm:$0xff] }
 0x154   :  { %v440_v49 = vpop.f32.mrf.mxu1  ;;  %885 = vmatpush.msrb.mxu2 %v776_v24  ;;  %v736_v24 = vld [vmem:[#allocation7 + $0x10] sm:$0xff] }
 0x155   :  { %v441_v61 = vadd.f32 %v3769_v34, %v440_v49  ;;  %v620_v1 = vmul.f32 %v3799_v57, %v3799_v57  ;;  %v604_v49 = vadd.f32 %v603_v37, %v597_v27  ;;  %v599_v52 = vmul.f32 %v2992_v23, %v3799_v57  ;;  %v748_v27 = vld [vmem:[#allocation7 + $0x70] sm:$0xff] }
 0x156   :  { %886 = vmatpush.msrb.mxu2 %v775_v31 }
 0x157   :  { %v628_v58 = vmul.f32 %v2992_v23, %v620_v1  ;;  %v764_v23 = vld [vmem:[#allocation7 + $0xf0] sm:$0xff]  ;;  %v763_v1 = vld [vmem:[#allocation7 + $0xe8] sm:$0xff] }
 0x158   :  { %v481_v62 = vpop.f32.mrf.mxu2  ;;  %834 = vmatpush.msrb.mxu1 %v764_v23  ;;  %887 = vmatpush.msrb.mxu2 %v774_v40  ;;  %v753_v23 = vld [vmem:[#allocation7 + $0x98] sm:$0xff] }
 0x159   :  { %v522_v63 = vpop.f32.mrf.mxu3  ;;  %v482_v51 = vadd.f32 %v481_v62, %v441_v61  ;;  %v281_v61 = vld [vmem:[%s3412_s21 + $0x10] sm:$0xff]  ;;  %v2997_v62 = vunpack.i.l.bf16 %v2996_v54  ;;  %v635_v10 = vadd.f32 %v634_v43, %v628_v58  ;;  %v771_v43 = vld [vmem:[#allocation7 + $0x128] sm:$0xff]  ;;  %s4340_s21 = sld [smem:[#allocation25_spill]] }
 0x15a   :  { %312 = vmatpush.msra.mxu0 %v281_v61  ;;  %835 = vmatpush.msrb.mxu1 %v763_v1  ;;  %v772_v58 = vld [vmem:[#allocation7 + $0x130] sm:$0xff]  ;;  %v734_v1 = vld [vmem:[#allocation7] sm:$0xff] }
 0x15b   :  { %v3803_v18 = vadd.f32 %v522_v63, %v482_v51  ;;  %v605_v63 = vadd.f32 %v604_v49, %v598_v38  ;;  %v762_v38 = vld [vmem:[#allocation7 + $0xe0] sm:$0xff]  ;;  %v773_v49 = vld [vmem:[#allocation7 + $0x138] sm:$0xff] }
 0x15c   :  { %v443_v9 = vpop.f32.mrf.mxu1  ;;  %313 = vmatpush.msra.mxu0 %v280_v8  ;;  %836 = vmatpush.msrb.mxu1 %v762_v38  ;;  %v757_v8 = vld [vmem:[#allocation7 + $0xb8] sm:$0xff] }
 0x15d   :  { %v444_v13 = vadd.f32 %v3769_v34, %v443_v9  ;;  %v621_v44 = vmul.f32 %v3803_v18, %v3803_v18  ;;  %v600_v2 = vmul.f32 %v2993_v35, %v3803_v18  ;;  %v606_v50 = vadd.f32 %v605_v63, %v599_v52  ;;  %888 = vmatpush.msrb.mxu2 %v773_v49  ;;  %v743_v63 = vld [vmem:[#allocation7 + $0x48] sm:$0xff] }
 0x15e   :  { %314 = vmatpush.msra.mxu0 %v279_v12  ;;  %837 = vmatpush.msrb.mxu1 %v761_v47  ;;  %v740_v12 = vld [vmem:[#allocation7 + $0x30] sm:$0xff]  ;;  %v3116_v47 = vld [vmem:[%s3432_s8] ss:$0 sm:$0xff]  ;;  %s4342_s8 = sld [smem:[#allocation27_spill]] }
 0x15f   :  { %v607_v14 = vadd.f32 %v606_v50, %v600_v2  ;;  %315 = vmatmul.f32.vlgmr.msra.gmra.mxu0 %v3639_v36  ;;  %889 = vmatpush.msrb.mxu2 %v772_v58  ;;  %v741_v50 = vld [vmem:[#allocation7 + $0x38] sm:$0xff] }
 0x160   :  { %v484_v19 = vpop.f32.mrf.mxu2  ;;  %786 = vmatpush.msrb.mxu0 %v749_v17  ;;  %v738_v17 = vld [vmem:[#allocation7 + $0x20] sm:$0xff] }
 0x161   :  { %v525_v20 = vpop.f32.mrf.mxu3  ;;  %v485_v28 = vadd.f32 %v484_v19, %v444_v13  ;;  %v2998_v13 = vunpack.i.h.bf16 %v2996_v54  ;;  %v760_v54 = vld [vmem:[#allocation7 + $0xd0] sm:$0xff]  ;;  %890 = vmatpush.msrb.mxu2 %v771_v43 }
 0x162   :  { %787 = vmatpush.msrb.mxu0 %v748_v27  ;;  %838 = vmatpush.msrb.mxu1 %v760_v54  ;;  %v752_v27 = vld [vmem:[#allocation7 + $0x90] sm:$0xff] }
 0x163   :  { %v3813_v39 = vadd.f32 %v525_v20, %v485_v28  ;;  %891 = vmatpush.msrb.mxu2 %v770_v7 }
 0x164   :  { %v446_v45 = vpop.f32.mrf.mxu1 }
 0x165   :  { %v447_v53 = vadd.f32 %v3769_v34, %v446_v45  ;;  %v622_v42 = vmul.f32 %v3813_v39, %v3813_v39  ;;  %v629_v34 = vmul.f32 %v2993_v35, %v621_v44  ;;  %v601_v51 = vmul.f32 %v2997_v62, %v3813_v39  ;;  %v747_v35 = vld [vmem:[#allocation7 + $0x68] sm:$0xff] }
 0x166   :  { %788 = vmatpush.msrb.mxu0 %v747_v35 }
 0x167   :  { %v630_v56 = vmul.f32 %v2997_v62, %v622_v42  ;;  %v636_v5 = vadd.f32 %v635_v10, %v629_v34  ;;  %v608_v20 = vadd.f32 %v607_v14, %v601_v51  ;;  %318 = vmatmul.f32.gmra.mxu0 %v3654_v46  ;;  %v759_v62 = vld [vmem:[#allocation7 + $0xc8] sm:$0xff]  ;;  %v758_v34 = vld [vmem:[#allocation7 + $0xc0] sm:$0xff]  ;;  %v769_v51 = vld [vmem:[#allocation7 + $0x118] sm:$0xff] }
 0x168   :  { %v487_v3 = vpop.f32.mrf.mxu2  ;;  %789 = vmatpush.msrb.mxu0 %v746_v41  ;;  %839 = vmatpush.msrb.mxu1 %v759_v62 }
 0x169   :  { %v528_v4 = vpop.f32.mrf.mxu3  ;;  %v488_v9 = vadd.f32 %v487_v3, %v447_v53  ;;  %v637_v30 = vadd.f32 %v636_v5, %v630_v56  ;;  %v742_v3 = vld [vmem:[#allocation7 + $0x40] sm:$0xff]  ;;  %892 = vmatpush.msrb.mxu2 %v769_v51  ;;  %v755_v5 = vld [vmem:[#allocation7 + $0xa8] sm:$0xff] }
 0x16a   :  { %790 = vmatpush.msrb.mxu0 %v745_v48  ;;  %840 = vmatpush.msrb.mxu1 %v758_v34 }
 0x16b   :  { %v529_v15 = vadd.f32 %v528_v4, %v488_v9 }
 0x16c   :  { %791 = vmatpush.msrb.mxu0 %v744_v55  ;;  %841 = vmatpush.msrb.mxu1 %v757_v8 }
 0x16d   :  { %v602_v19 = vmul.f32 %v2998_v13, %v529_v15  ;;  %v623_v21 = vmul.f32 %v529_v15, %v529_v15  ;;  %v739_v15 = vld [vmem:[#allocation7 + $0x28] sm:$0xff] }
 0x16e   :  { %792 = vmatpush.msrb.mxu0 %v743_v63  ;;  %842 = vmatpush.msrb.mxu1 %v756_v11 }
 0x16f   :  { %v609_v28 = vadd.f32 %v608_v20, %v602_v19  ;;  %v631_v29 = vmul.f32 %v2998_v13, %v623_v21  ;;  %321 = vmatmul.f32.gmra.mxu0 %v3677_v0  ;;  %v768_v13 = vld [vmem:[#allocation7 + $0x110] sm:$0xff]  ;;  %v754_v0 = vld [vmem:[#allocation7 + $0xa0] sm:$0xff]  ;;  %v737_v21 = vld [vmem:[#allocation7 + $0x18] sm:$0xff] }
 0x170   :  { %793 = vmatpush.msrb.mxu0 %v742_v3  ;;  %843 = vmatpush.msrb.mxu1 %v755_v5  ;;  %v766_v20 = vld [vmem:[#allocation7 + $0x100] sm:$0xff] }
 0x171   :  { %v610_v36 = vrot.slane %v609_v28, 4  ;;  %v638_v37 = vadd.f32 %v637_v30, %v631_v29  ;;  %893 = vmatpush.msrb.mxu2 %v768_v13  ;;  %v735_v29 = vld [vmem:[#allocation7 + $0x8] sm:$0xff]  ;;  %v750_v30 = vld [vmem:[#allocation7 + $0x80] sm:$0xff]  ;;  %v3866_v13 = vld [vmem:[%s3402_s13 + $0x10] sm:$0xff] }
 0x172   :  { %794 = vmatpush.msrb.mxu0 %v741_v50  ;;  %844 = vmatpush.msrb.mxu1 %v754_v0  ;;  %vm929_vm9 = vcmp.lt.s32.totalorder %v3866_v13, 20  ;;  %v3876_v0 = vld [vmem:[%s3402_s13 + $0x40] sm:$0xff]  ;;  %vm1715_vm15 = vcmp.lt.s32.totalorder %v3866_v13, 24 }
 0x173   :  { %v611_v44 = vadd.f32 %v610_v36, %v609_v28  ;;  %v639_v45 = vrot.slane %v638_v37, 4  ;;  %894 = vmatpush.msrb.mxu2 %v767_v6  ;;  %v751_v28 = vld [vmem:[#allocation7 + $0x88] sm:$0xff]  ;;  %vm935_vm11 = vcmp.lt.s32.totalorder %v3876_v0, 20  ;;  %vm1721_vm1 = vcmp.lt.s32.totalorder %v3876_v0, 24 }
 0x174   :  { %795 = vmatpush.msrb.mxu0 %v740_v12  ;;  %845 = vmatpush.msrb.mxu1 %v753_v23 }
 0x175   :  { %v612_v52 = vrot.slane %v611_v44, 2  ;;  %v640_v53 = vadd.f32 %v639_v45, %v638_v37  ;;  %895 = vmatpush.msrb.mxu2 %v766_v20 }
 0x176   :  { %796 = vmatpush.msrb.mxu0 %v739_v15  ;;  %846 = vmatpush.msrb.mxu1 %v752_v27 }
 0x177   :  { %v613_v60 = vadd.f32 %v612_v52, %v611_v44  ;;  %v641_v61 = vrot.slane %v640_v53, 2  ;;  %324 = vmatmul.f32.gmra.mxu0 %v3704_v22 }
 0x178   :  { %797 = vmatpush.msrb.mxu0 %v738_v17  ;;  %847 = vmatpush.msrb.mxu1 %v751_v28  ;;  %v3149_v28 = vld [vmem:[%s3397_s9 + $0x20] sm:$0xff] }
 0x179   :  { %v614_v2 = vrot.slane %v613_v60, 1  ;;  %v642_v42 = vadd.f32 %v641_v61, %v640_v53  ;;  %vm1321_vm13 = vcmp.lt.s32.totalorder %v3149_v28, 20  ;;  %vm2107_vm3 = vcmp.lt.s32.totalorder %v3149_v28, 24 }
 0x17a   :  { %798 = vmatpush.msrb.mxu0 %v737_v21  ;;  %848 = vmatpush.msrb.mxu1 %v750_v30 }
 0x17b   :  { %v615_v46 = vadd.f32 %v614_v2, %v613_v60  ;;  %v643_v4 = vrot.slane %v642_v42, 1 }
 0x17c   :  { %799 = vmatpush.msrb.mxu0 %v736_v24 }
 0x17d   :  { %v644_v9 = vadd.f32 %v643_v4, %v642_v42  ;;  %v3829_v10 = vmul.f32 0.027777778, %v615_v46 }
 0x17e   :  { %800 = vmatpush.msrb.mxu0 %v735_v29  ;;  %v3150_v29 = vld [vmem:[%s3397_s9 + $0x28] sm:$0xff]  ;;  %s4338_s9 = sld [smem:[#allocation24_spill]] }
 0x17f   :  { %v646_v14 = vmul.f32 0.027777778, %v644_v9  ;;  %v647_v56 = vmul.f32 %v3829_v10, %v3829_v10  ;;  %v649_v40 = vsub.f32 %v3784_v25, %v3829_v10  ;;  %v650_v41 = vsub.f32 %v3780_v59, %v3829_v10  ;;  %v3117_v59 = vld [vmem:[%s3437_s14] ss:$0 sm:$0xff]  ;;  %s4343_s14 = sld [smem:[#allocation28_spill]] }
 0x180   :  { %801 = vmatpush.msrb.mxu0 %v734_v1  ;;  %v651_v44 = vsub.f32 %v3786_v26, %v3829_v10  ;;  %v652_v45 = vsub.f32 %v3799_v57, %v3829_v10  ;;  %v653_v48 = vsub.f32 %v3803_v18, %v3829_v10  ;;  %v654_v49 = vsub.f32 %v3813_v39, %v3829_v10  ;;  %v3857_v9 = vld [vmem:[#allocation2] sm:$0xff] }
 0x181   :  { %v648_v16 = vsub.f32 %v646_v14, %v647_v56  ;;  %v2852_v10 = vsel %vm927_vm7, 1.0, %v3857_v9  ;;  %v2853_v11 = vsel %vm928_vm8, 1.0, %v3857_v9  ;;  %v3869_v14 = vld [vmem:[%s3402_s13 + $0x18] sm:$0xff]  ;;  %v2854_v56 = vsel %vm929_vm9, 1.0, %v3857_v9 }
 0x182   :  { %v3000_v12 = vpack.i.bf16 %v2853_v11, %v2852_v10  ;;  %vm930_vm10 = vcmp.lt.s32.totalorder %v3869_v14, 20  ;;  %v2860_v20 = vsel %vm935_vm11, 1.0, %v3857_v9  ;;  %vm1322_vm14 = vcmp.lt.s32.totalorder %v3150_v29, 20 }
 0x183   :  { %v655_v19 = vadd.f32 1e-05, %v648_v16  ;;  %v2855_v15 = vsel %vm930_vm10, 1.0, %v3857_v9  ;;  %v2866_v30 = vsel %vm1321_vm13, 1.0, %v3857_v9  ;;  %v2867_v1 = vsel %vm1322_vm14, 1.0, %v3857_v9 }
 0x184   :  { %3001 = vperm.xlu2 %2999, %v3000_v12   ;;  %v3005_v5 = vpack.i.bf16 %v2855_v15, %v2854_v56  ;;  %vm1716_vm0 = vcmp.lt.s32.totalorder %v3869_v14, 24  ;;  %vm2507_vm7 = vcmp.lt.s32.totalorder %v3876_v0, 32 }
 0x185   :  { %3136 = vrsqrt.f32 %v655_v19  ;;  %vm662_vm5 = vweird.f32 %v655_v19 }
 0x18b   :  { %v3137_v31 = vpop.eup %3136 }
 0x18c   :  { %v657_v35 = vmul.f32 %v3137_v31, %v655_v19  ;;  %vm663_vm4 = vweird.f32 %v3137_v31  ;;  %3006 = vperm.xlu2 %2999, %v3005_v5   ;;  %v3879_v19 = vld [vmem:[%s3402_s13 + $0x48] sm:$0xff]  ;;  %s4339_s13 = sld [smem:[#allocation22_spill]] }
 0x18d   :  { %vm664_vm6 = vmor %vm662_vm5, %vm663_vm4  ;;  %vm936_vm12 = vcmp.lt.s32.totalorder %v3879_v19, 20  ;;  %vm1722_vm2 = vcmp.lt.s32.totalorder %v3879_v19, 24  ;;  %vm2108_vm4 = vcmp.lt.s32.totalorder %v3150_v29, 24  ;;  %vm2501_vm5 = vcmp.lt.s32.totalorder %v3866_v13, 32 }
 0x18e   :  { %v658_v36 = vmul.f32 %v3137_v31, %v657_v35  ;;  %v2861_v21 = vsel %vm936_vm12, 1.0, %v3857_v9  ;;  %v707_v35 = vld [vmem:[#allocation3 + $0x1e] sm:$0xff]  ;;  %vm2508_vm8 = vcmp.lt.s32.totalorder %v3879_v19, 32  ;;  %v3924_v19 = vld [vmem:[%s3447_s24] ss:$0 sm:$0xff]  ;;  %s4344_s24 = sld [smem:[#allocation29_spill]] }
 0x18f   :  { %v3020_v23 = vpack.i.bf16 %v2861_v21, %v2860_v20 }
 0x190   :  { %v659_v22 = vmul.f32 0.5, %v658_v36  ;;  %v717_v36 = vld [vmem:[#allocation3 + $0x1f] sm:$0xff] }
 0x192   :  { %v660_v37 = vsub.f32 1.5, %v659_v22  ;;  %v2872_v22 = vsel %vm1715_vm15, 1.0, %v3857_v9 }
 0x194   :  { %v661_v38 = vmul.f32 %v3137_v31, %v660_v37  ;;  %3021 = vperm.xlu2 %2999, %v3020_v23   ;;  %v2873_v37 = vsel %vm1716_vm0, 1.0, %v3857_v9 }
 0x196   :  { %v665_v52 = vsel %vm664_vm6, %v3137_v31, %v661_v38  ;;  %v3035_v31 = vpack.i.bf16 %v2867_v1, %v2866_v30  ;;  %v3050_v38 = vpack.i.bf16 %v2873_v37, %v2872_v22  ;;  %vm2502_vm6 = vcmp.lt.s32.totalorder %v3869_v14, 32 }
 0x197   :  { %v666_v53 = vmul.f32 %v665_v52, %v649_v40  ;;  %v667_v25 = vmul.f32 %v665_v52, %v650_v41  ;;  %v668_v54 = vmul.f32 %v665_v52, %v651_v44  ;;  %v669_v55 = vmul.f32 %v665_v52, %v652_v45  ;;  %v708_v40 = vld [vmem:[#allocation3 + $0x26] sm:$0xff] }
 0x198   :  { %v670_v58 = vmul.f32 %v665_v52, %v653_v48  ;;  %v671_v60 = vmul.f32 %v665_v52, %v654_v49  ;;  %v718_v41 = vld [vmem:[#allocation3 + $0x27] sm:$0xff]  ;;  %v2878_v44 = vsel %vm1721_vm1, 1.0, %v3857_v9  ;;  %v2879_v45 = vsel %vm1722_vm2, 1.0, %v3857_v9 }
 0x199   :  { %v676_v26 = vmul.f32 %v3116_v47, %v666_v53  ;;  %v677_v61 = vmul.f32 %v3116_v47, %v667_v25  ;;  %v678_v62 = vmul.f32 %v3116_v47, %v668_v54  ;;  %v679_v57 = vmul.f32 %v3116_v47, %v669_v55 }
 0x19a   :  { %v680_v63 = vmul.f32 %v3116_v47, %v670_v58  ;;  %v681_v2 = vmul.f32 %v3116_v47, %v671_v60  ;;  %v3065_v47 = vpack.i.bf16 %v2879_v45, %v2878_v44  ;;  %v2884_v52 = vsel %vm2107_vm3, 1.0, %v3857_v9 }
 0x19b   :  { %v686_v42 = vadd.f32 %v3117_v59, %v676_v26  ;;  %v687_v43 = vadd.f32 %v3117_v59, %v677_v61  ;;  %v688_v18 = vadd.f32 %v3117_v59, %v678_v62  ;;  %v3849_v34 = vadd.f32 %v3117_v59, %v679_v57 }
 0x19c   :  { %v3851_v39 = vadd.f32 %v3117_v59, %v680_v63  ;;  %v691_v3 = vadd.f32 %v3117_v59, %v681_v2  ;;  %3036 = vperm.xlu2 %2999, %v3035_v31   ;;  %v2885_v53 = vsel %vm2108_vm4, 1.0, %v3857_v9  ;;  %v2890_v58 = vsel %vm2501_vm5, 1.0, %v3857_v9 }
 0x19d   :  { %v692_v46 = vmax.f32 %v686_v42, 0.0  ;;  %v693_v4 = vmax.f32 %v687_v43, 0.0  ;;  %v694_v7 = vmax.f32 %v688_v18, 0.0  ;;  %v695_v8 = vmax.f32 %v3849_v34, 0.0  ;;  %v712_v42 = vld [vmem:[#allocation3 + $0x46] sm:$0xff]  ;;  %v713_v18 = vld [vmem:[#allocation3 + $0x4e] sm:$0xff] }
 0x19e   :  { %v696_v50 = vmax.f32 %v3851_v39, 0.0  ;;  %v697_v51 = vmax.f32 %v691_v3, 0.0  ;;  %v3080_v25 = vpack.i.bf16 %v2885_v53, %v2884_v52  ;;  %v2891_v60 = vsel %vm2502_vm6, 1.0, %v3857_v9  ;;  %v722_v43 = vld [vmem:[#allocation3 + $0x47] sm:$0xff]  ;;  %v723_v34 = vld [vmem:[#allocation3 + $0x4f] sm:$0xff] }
 0x19f   :  { %698 = vst [vmem:[#allocation3 + $0x8] sm:$0xff] %v692_v46  ;;  %896 = vmatmul.f32.vlgmr.msrb.gmra.mxu2 %v692_v46  ;;  %v3095_v26 = vpack.i.bf16 %v2891_v60, %v2890_v58  ;;  %v2896_v57 = vsel %vm2507_vm7, 1.0, %v3857_v9  ;;  %v2897_v63 = vsel %vm2508_vm8, 1.0, %v3857_v9  ;;  %vm2687_vm8 = vcmask 261120  }
 0x1a0   :  { %699 = vst [vmem:[#allocation3 + $0x10] sm:$0xff] %v693_v4  ;;  %v3110_v2 = vpack.i.bf16 %v2897_v63, %v2896_v57 }
 0x1a1   :  { %700 = vst [vmem:[#allocation3 + $0x18] sm:$0x3] %v694_v7 }
 0x1a2   :  { %701 = vst [vmem:[#allocation3 + $0x30] sm:$0xff] %v695_v8 }
 0x1a3   :  { %702 = vst [vmem:[#allocation3 + $0x38] sm:$0xff] %v696_v50 }
 0x1a4   :  { %703 = vst [vmem:[#allocation3 + $0x40] sm:$0x3] %v697_v51  ;;  %3051 = vperm.xlu2 %2999, %v3050_v38  }
 0x1a6   :  { %v704_v32 = vld [vmem:[#allocation3 + $0x6] sm:$0xff] }
 0x1a7   :  { %v714_v33 = vld [vmem:[#allocation3 + $0x7] sm:$0xff]  ;;  %802 = vmatmul.f32.vlgmr.msrb.gmra.mxu0 %v704_v32  ;;  %899 = vmatmul.f32.gmra.mxu2 %v693_v4  ;;  %v715_v16 = vld [vmem:[#allocation3 + $0xf] sm:$0xff] }
 0x1a8   :  { %849 = vmatmul.f32.vlgmr.msrb.gmra.mxu1 %v714_v33  ;;  %v705_v6 = vld [vmem:[#allocation3 + $0xe] sm:$0xff]  ;;  %v726_v17 = vld [vmem:[#allocation3 + $0x18] sm:$0xff] }
 0x1a9   :  { %v706_v24 = vld [vmem:[#allocation3 + $0x16] sm:$0xff]  ;;  %v709_v48 = vld [vmem:[#allocation3 + $0x2e] sm:$0xff] }
 0x1aa   :  { %v716_v27 = vld [vmem:[#allocation3 + $0x17] sm:$0xff]  ;;  %v719_v49 = vld [vmem:[#allocation3 + $0x2f] sm:$0xff] }
 0x1ab   :  { %v710_v54 = vld [vmem:[#allocation3 + $0x36] sm:$0xff]  ;;  %v731_v59 = vld [vmem:[#allocation3 + $0x40] sm:$0xff] }
 0x1ac   :  { %3066 = vperm.xlu2 %2999, %v3065_v47   ;;  %v720_v55 = vld [vmem:[#allocation3 + $0x37] sm:$0xff]  ;;  %v721_v62 = vld [vmem:[#allocation3 + $0x3f] sm:$0xff] }
 0x1ad   :  { %v711_v61 = vld [vmem:[#allocation3 + $0x3e] sm:$0xff] }
 0x1af   :  { %805 = vmatmul.f32.gmra.mxu0 %v705_v6  ;;  %902 = vmatmul.f32.gmra.mxu2 %v726_v17 }
 0x1b0   :  { %852 = vmatmul.f32.gmra.mxu1 %v715_v16 }
 0x1b4   :  { %3081 = vperm.xlu2 %2999, %v3080_v25  }
 0x1b7   :  { %808 = vmatmul.f32.gmra.mxu0 %v706_v24  ;;  %905 = vmatmul.f32.gmra.mxu2 %v3857_v9 }
 0x1b8   :  { %855 = vmatmul.f32.gmra.mxu1 %v716_v27 }
 0x1bc   :  { %3096 = vperm.xlu2 %2999, %v3095_v26  }
 0x1bf   :  { %811 = vmatmul.f32.gmra.mxu0 %v707_v35  ;;  %908 = vmatmul.f32.gmra.mxu2 %v3857_v9 }
 0x1c0   :  { %858 = vmatmul.f32.gmra.mxu1 %v717_v36 }
 0x1c4   :  { %3111 = vperm.xlu2 %2999, %v3110_v2  }
 0x1c7   :  { %814 = vmatmul.f32.gmra.mxu0 %v708_v40  ;;  %911 = vmatmul.f32.gmra.mxu2 %v695_v8 }
 0x1c8   :  { %861 = vmatmul.f32.gmra.mxu1 %v718_v41 }
 0x1cf   :  { %817 = vmatmul.f32.gmra.mxu0 %v709_v48  ;;  %914 = vmatmul.f32.gmra.mxu2 %v696_v50 }
 0x1d0   :  { %864 = vmatmul.f32.gmra.mxu1 %v719_v49 }
 0x1d7   :  { %820 = vmatmul.f32.gmra.mxu0 %v710_v54  ;;  %917 = vmatmul.f32.gmra.mxu2 %v731_v59 }
 0x1d8   :  { %867 = vmatmul.f32.gmra.mxu1 %v720_v55 }
 0x1dc   :  { %v3915_v39 = vpop.f32.mrf.mxu0 }
 0x1de   :  { %v3002_v21 = vpop.permute.xlu2 %3001 }
 0x1df   :  { %823 = vmatmul.f32.gmra.mxu0 %v711_v61  ;;  %920 = vmatmul.f32.gmra.mxu2 %v3857_v9  ;;  %v3004_v44 = vunpack.i.h.bf16 %v3002_v21  ;;  %v3003_v54 = vunpack.i.l.bf16 %v3002_v21 }
 0x1e0   :  { %870 = vmatmul.f32.gmra.mxu1 %v721_v62 }
 0x1e4   :  { %v3917_v3 = vpop.f32.mrf.mxu0 }
 0x1e6   :  { %v3007_v52 = vpop.permute.xlu2 %3006 }
 0x1e7   :  { %826 = vmatmul.f32.gmra.mxu0 %v712_v42  ;;  %923 = vmatmul.f32.gmra.mxu2 %v3857_v9  ;;  %v3008_v55 = vunpack.i.l.bf16 %v3007_v52  ;;  %v3009_v61 = vunpack.i.h.bf16 %v3007_v52 }
 0x1e8   :  { %873 = vmatmul.f32.gmra.mxu1 %v722_v43  ;;  %v3012_v43 = vpop.permute.xlu0 %3011 }
 0x1ec   :  { %v3919_v46 = vpop.f32.mrf.mxu0 }
 0x1ef   :  { %829 = vmatmul.f32.gmra.mxu0 %v713_v18 }
 0x1f0   :  { %876 = vmatmul.f32.gmra.mxu1 %v723_v34 }
 0x1f4   :  { %v3921_v4 = vpop.f32.mrf.mxu0 }
 0x222   :  { %v897_v7 = vpop.f32.mrf.mxu2 }
 0x224   :  { %v803_v8 = vpop.f32.mrf.mxu0 }
 0x225   :  { %v850_v50 = vpop.f32.mrf.mxu1  ;;  %v804_v23 = vadd.f32 %v3924_v19, %v803_v8 }
 0x227   :  { %v851_v31 = vadd.f32 %v850_v50, %v804_v23  ;;  %v3013_v50 = vunpack.i.l.bf16 %v3012_v43 }
 0x229   :  { %v3934_v40 = vadd.f32 %v897_v7, %v851_v31 }
 0x22a   :  { %v900_v51 = vpop.f32.mrf.mxu2 }
 0x22b   :  { %v1032_v60 = vmul.f32 %v3934_v40, %v3934_v40  ;;  %v1007_v18 = vmul.f32 %v3003_v54, %v3934_v40 }
 0x22c   :  { %v806_v10 = vpop.f32.mrf.mxu0 }
 0x22d   :  { %v853_v11 = vpop.f32.mrf.mxu1  ;;  %v807_v20 = vadd.f32 %v3924_v19, %v806_v10 }
 0x22f   :  { %v854_v30 = vadd.f32 %v853_v11, %v807_v20 }
 0x231   :  { %v3931_v22 = vadd.f32 %v900_v51, %v854_v30  ;;  %v1042_v51 = vmul.f32 %v3003_v54, %v1032_v60 }
 0x232   :  { %v903_v12 = vpop.f32.mrf.mxu2 }
 0x233   :  { %v1033_v53 = vmul.f32 %v3931_v22, %v3931_v22  ;;  %v1008_v62 = vmul.f32 %v3004_v44, %v3931_v22 }
 0x234   :  { %v809_v32 = vpop.f32.mrf.mxu0 }
 0x235   :  { %v856_v33 = vpop.f32.mrf.mxu1  ;;  %v810_v27 = vadd.f32 %v3924_v19, %v809_v32  ;;  %v1043_v2 = vmul.f32 %v3004_v44, %v1033_v53 }
 0x237   :  { %v857_v35 = vadd.f32 %v856_v33, %v810_v27 }
 0x239   :  { %v904_v45 = vadd.f32 %v903_v12, %v857_v35  ;;  %v1017_v12 = vadd.f32 %v1008_v62, %v1007_v18 }
 0x23a   :  { %v906_v13 = vpop.f32.mrf.mxu2 }
 0x23b   :  { %v1034_v57 = vmul.f32 %v904_v45, %v904_v45  ;;  %v1009_v34 = vmul.f32 %v3008_v55, %v904_v45 }
 0x23c   :  { %v812_v14 = vpop.f32.mrf.mxu0 }
 0x23d   :  { %v859_v56 = vpop.f32.mrf.mxu1  ;;  %v813_v1 = vadd.f32 %v3924_v19, %v812_v14  ;;  %v1044_v32 = vmul.f32 %v3008_v55, %v1034_v57 }
 0x23f   :  { %v860_v37 = vadd.f32 %v859_v56, %v813_v1 }
 0x241   :  { %v907_v59 = vadd.f32 %v906_v13, %v860_v37 }
 0x242   :  { %v909_v15 = vpop.f32.mrf.mxu2 }
 0x243   :  { %v1035_v7 = vmul.f32 %v907_v59, %v907_v59  ;;  %v1010_v33 = vmul.f32 %v3009_v61, %v907_v59 }
 0x244   :  { %v815_v5 = vpop.f32.mrf.mxu0 }
 0x245   :  { %v862_v6 = vpop.f32.mrf.mxu1  ;;  %v816_v36 = vadd.f32 %v3924_v19, %v815_v5  ;;  %v1052_v5 = vadd.f32 %v1043_v2, %v1042_v51  ;;  %v1045_v20 = vmul.f32 %v3009_v61, %v1035_v7 }
 0x247   :  { %v863_v47 = vadd.f32 %v862_v6, %v816_v36 }
 0x249   :  { %v910_v63 = vadd.f32 %v909_v15, %v863_v47  ;;  %v3014_v15 = vunpack.i.h.bf16 %v3012_v43  ;;  %v3022_v47 = vpop.permute.xlu2 %3021 }
 0x24a   :  { %v912_v16 = vpop.f32.mrf.mxu2 }
 0x24b   :  { %v1036_v13 = vmul.f32 %v910_v63, %v910_v63 }
 0x24c   :  { %v818_v17 = vpop.f32.mrf.mxu0 }
 0x24d   :  { %v865_v0 = vpop.f32.mrf.mxu1  ;;  %v819_v38 = vadd.f32 %v3924_v19, %v818_v17  ;;  %v1046_v1 = vmul.f32 %v3013_v50, %v1036_v13 }
 0x24f   :  { %v866_v58 = vadd.f32 %v865_v0, %v819_v38  ;;  %v1018_v0 = vadd.f32 %v1017_v12, %v1009_v34  ;;  %v1157_v12 = vld [vmem:[#allocation9 + $0x78] sm:$0xff] }
 0x250   :  { %1194 = vmatpush.msrb.mxu3 %v1157_v12 }
 0x251   :  { %v3944_v8 = vadd.f32 %v912_v16, %v866_v58  ;;  %v1011_v16 = vmul.f32 %v3013_v50, %v910_v63  ;;  %v1019_v30 = vadd.f32 %v1018_v0, %v1010_v33  ;;  %v1171_v0 = vld [vmem:[#allocation9 + $0xe8] sm:$0xff] }
 0x252   :  { %v915_v24 = vpop.f32.mrf.mxu2 }
 0x253   :  { %v1037_v21 = vmul.f32 %v3944_v8, %v3944_v8  ;;  %v1012_v31 = vmul.f32 %v3014_v15, %v3944_v8  ;;  %v1020_v38 = vadd.f32 %v1019_v30, %v1011_v16  ;;  %v1169_v30 = vld [vmem:[#allocation9 + $0xd8] sm:$0xff] }
 0x254   :  { %v821_v28 = vpop.f32.mrf.mxu0 }
 0x255   :  { %v868_v29 = vpop.f32.mrf.mxu1  ;;  %v822_v25 = vadd.f32 %v3924_v19, %v821_v28  ;;  %v3017_v28 = vpop.permute.xlu1 %3016  ;;  %v1047_v44 = vmul.f32 %v3014_v15, %v1037_v21  ;;  %v1021_v53 = vadd.f32 %v1020_v38, %v1012_v31  ;;  %v1154_v21 = vld [vmem:[#allocation9 + $0x60] sm:$0xff]  ;;  %v1151_v38 = vld [vmem:[#allocation9 + $0x48] sm:$0xff] }
 0x256   :  { %v3018_v35 = vunpack.i.l.bf16 %v3017_v28  ;;  %v3019_v45 = vunpack.i.h.bf16 %v3017_v28 }
 0x257   :  { %v869_v42 = vadd.f32 %v868_v29, %v822_v25  ;;  %v1053_v29 = vadd.f32 %v1052_v5, %v1044_v32  ;;  %v1173_v32 = vld [vmem:[#allocation9 + $0xf8] sm:$0xff] }
 0x258   :  { %1235 = vmatpush.msra.mxu0 %v1173_v32 }
 0x259   :  { %v3946_v6 = vadd.f32 %v915_v24, %v869_v42  ;;  %v1054_v37 = vadd.f32 %v1053_v29, %v1045_v20  ;;  %v3024_v42 = vunpack.i.h.bf16 %v3022_v47  ;;  %v1153_v29 = vld [vmem:[#allocation9 + $0x58] sm:$0xff] }
 0x25a   :  { %v918_v41 = vpop.f32.mrf.mxu2 }
 0x25b   :  { %v1038_v24 = vmul.f32 %v3946_v6, %v3946_v6  ;;  %v1055_v52 = vadd.f32 %v1054_v37, %v1046_v1 }
 0x25c   :  { %v824_v48 = vpop.f32.mrf.mxu0 }
 0x25d   :  { %v871_v49 = vpop.f32.mrf.mxu1  ;;  %v825_v26 = vadd.f32 %v3924_v19, %v824_v48  ;;  %v1013_v48 = vmul.f32 %v3018_v35, %v3946_v6  ;;  %v1048_v55 = vmul.f32 %v3018_v35, %v1038_v24  ;;  %v1152_v35 = vld [vmem:[#allocation9 + $0x50] sm:$0xff] }
 0x25e   :  { %v1168_v24 = vld [vmem:[#allocation9 + $0xd0] sm:$0xff] }
 0x25f   :  { %v872_v10 = vadd.f32 %v871_v49, %v825_v26  ;;  %v3023_v49 = vunpack.i.l.bf16 %v3022_v47  ;;  %v1056_v26 = vadd.f32 %v1055_v52, %v1047_v44  ;;  %v1022_v62 = vadd.f32 %v1021_v53, %v1013_v48  ;;  %v1167_v44 = vld [vmem:[#allocation9 + $0xc8] sm:$0xff]  ;;  %v1150_v48 = vld [vmem:[#allocation9 + $0x40] sm:$0xff]  ;;  %v1149_v53 = vld [vmem:[#allocation9 + $0x38] sm:$0xff] }
 0x261   :  { %v919_v23 = vadd.f32 %v918_v41, %v872_v10  ;;  %v1057_v18 = vadd.f32 %v1056_v26, %v1048_v55  ;;  %v1147_v26 = vld [vmem:[#allocation9 + $0x28] sm:$0xff] }
 0x262   :  { %v921_v11 = vpop.f32.mrf.mxu2 }
 0x263   :  { %v1039_v41 = vmul.f32 %v919_v23, %v919_v23  ;;  %v1014_v59 = vmul.f32 %v3019_v45, %v919_v23  ;;  %v1170_v23 = vld [vmem:[#allocation9 + $0xe0] sm:$0xff] }
 0x264   :  { %v827_v14 = vpop.f32.mrf.mxu0 }
 0x265   :  { %v874_v56 = vpop.f32.mrf.mxu1  ;;  %v828_v17 = vadd.f32 %v3924_v19, %v827_v14  ;;  %v1049_v57 = vmul.f32 %v3019_v45, %v1039_v41  ;;  %v1023_v43 = vadd.f32 %v1022_v62, %v1014_v59  ;;  %v1156_v14 = vld [vmem:[#allocation9 + $0x70] sm:$0xff]  ;;  %v1166_v41 = vld [vmem:[#allocation9 + $0xc0] sm:$0xff] }
 0x266   :  { %1195 = vmatpush.msrb.mxu3 %v1156_v14  ;;  %v1148_v59 = vld [vmem:[#allocation9 + $0x30] sm:$0xff] }
 0x267   :  { %v875_v27 = vadd.f32 %v874_v56, %v828_v17  ;;  %v1058_v50 = vadd.f32 %v1057_v18, %v1049_v57  ;;  %v1172_v56 = vld [vmem:[#allocation9 + $0xf0] sm:$0xff]  ;;  %v1155_v17 = vld [vmem:[#allocation9 + $0x68] sm:$0xff]  ;;  %v1146_v57 = vld [vmem:[#allocation9 + $0x20] sm:$0xff] }
 0x268   :  { %1236 = vmatpush.msra.mxu0 %v1172_v56  ;;  %1196 = vmatpush.msrb.mxu3 %v1155_v17  ;;  %v1160_v18 = vld [vmem:[#allocation9 + $0x90] sm:$0xff] }
 0x269   :  { %v922_v36 = vadd.f32 %v921_v11, %v875_v27 }
 0x26a   :  { %v924_v61 = vpop.f32.mrf.mxu2  ;;  %1237 = vmatpush.msra.mxu0 %v1171_v0  ;;  %1197 = vmatpush.msrb.mxu3 %v1154_v21  ;;  %v3120_v0 = vld [vmem:[%s4337_s5] ss:$0 sm:$0xff] }
 0x26b   :  { %v1040_v58 = vmul.f32 %v922_v36, %v922_v36  ;;  %v1015_v63 = vmul.f32 %v3023_v49, %v922_v36 }
 0x26c   :  { %v830_v25 = vpop.f32.mrf.mxu0  ;;  %1238 = vmatpush.msra.mxu0 %v1170_v23  ;;  %1198 = vmatpush.msrb.mxu3 %v1153_v29  ;;  %v3118_v29 = vld [vmem:[%s4339_s13] ss:$0 sm:$0xff] }
 0x26d   :  { %v877_v54 = vpop.f32.mrf.mxu1  ;;  %v831_v60 = vadd.f32 %v3924_v19, %v830_v25  ;;  %v1050_v34 = vmul.f32 %v3023_v49, %v1040_v58  ;;  %v1024_v51 = vadd.f32 %v1023_v43, %v1015_v63  ;;  %v1165_v25 = vld [vmem:[#allocation9 + $0xb8] sm:$0xff]  ;;  %v1164_v58 = vld [vmem:[#allocation9 + $0xb0] sm:$0xff]  ;;  %v1162_v63 = vld [vmem:[#allocation9 + $0xa0] sm:$0xff] }
 0x26e   :  { %1239 = vmatpush.msra.mxu0 %v1169_v30  ;;  %1199 = vmatpush.msrb.mxu3 %v1152_v35  ;;  %v1144_v43 = vld [vmem:[#allocation9 + $0x10] sm:$0xff]  ;;  %v1186_v35 = vld [vmem:[#allocation9 + $0x160] sm:$0xff] }
 0x26f   :  { %v878_v2 = vadd.f32 %v877_v54, %v831_v60  ;;  %v1059_v33 = vadd.f32 %v1058_v50, %v1050_v34  ;;  %v1143_v34 = vld [vmem:[#allocation9 + $0x8] sm:$0xff]  ;;  %v1142_v50 = vld [vmem:[#allocation9] sm:$0xff] }
 0x270   :  { %1240 = vmatpush.msra.mxu0 %v1168_v24  ;;  %1200 = vmatpush.msrb.mxu3 %v1151_v38  ;;  %v320_v38 = vadd.f32 %v3118_v29, %v3917_v3  ;;  %v1184_v3 = vld [vmem:[#allocation9 + $0x150] sm:$0xff] }
 0x271   :  { %v925_v7 = vadd.f32 %v924_v61, %v878_v2  ;;  %v1163_v61 = vld [vmem:[#allocation9 + $0xa8] sm:$0xff]  ;;  %v1145_v2 = vld [vmem:[#allocation9 + $0x18] sm:$0xff] }
 0x272   :  { %1241 = vmatpush.msra.mxu0 %v1167_v44  ;;  %1201 = vmatpush.msrb.mxu3 %v1150_v48  ;;  %v323_v44 = vadd.f32 %v3118_v29, %v3919_v46 }
 0x273   :  { %v1016_v10 = vmul.f32 %v3024_v42, %v925_v7  ;;  %v1041_v11 = vmul.f32 %v925_v7, %v925_v7  ;;  %v1159_v7 = vld [vmem:[#allocation9 + $0x88] sm:$0xff] }
 0x274   :  { %1242 = vmatpush.msra.mxu0 %v1166_v41  ;;  %1202 = vmatpush.msrb.mxu3 %v1149_v53 }
 0x275   :  { %v1025_v13 = vadd.f32 %v1024_v51, %v1016_v10  ;;  %v1051_v19 = vmul.f32 %v3024_v42, %v1041_v11  ;;  %v1161_v42 = vld [vmem:[#allocation9 + $0x98] sm:$0xff]  ;;  %v1158_v51 = vld [vmem:[#allocation9 + $0x80] sm:$0xff] }
 0x276   :  { %1243 = vmatpush.msra.mxu0 %v1165_v25  ;;  %1203 = vmatpush.msrb.mxu3 %v1148_v59  ;;  %v1182_v59 = vld [vmem:[#allocation9 + $0x140] sm:$0xff] }
 0x277   :  { %v1026_v15 = vrot.slane %v1025_v13, 4  ;;  %v1060_v5 = vadd.f32 %v1059_v33, %v1051_v19  ;;  %v1189_v33 = vld [vmem:[#allocation9 + $0x178] sm:$0xff] }
 0x278   :  { %1244 = vmatpush.msra.mxu0 %v1164_v58  ;;  %1204 = vmatpush.msrb.mxu3 %v1147_v26  ;;  %v1181_v26 = vld [vmem:[#allocation9 + $0x138] sm:$0xff] }
 0x279   :  { %v1027_v20 = vadd.f32 %v1026_v15, %v1025_v13  ;;  %v1061_v16 = vrot.slane %v1060_v5, 4  ;;  %v1188_v13 = vld [vmem:[#allocation9 + $0x170] sm:$0xff] }
 0x27a   :  { %1245 = vmatpush.msra.mxu0 %v1163_v61  ;;  %1205 = vmatpush.msrb.mxu3 %v1146_v57  ;;  %v1180_v61 = vld [vmem:[#allocation9 + $0x130] sm:$0xff] }
 0x27b   :  { %v1028_v27 = vrot.slane %v1027_v20, 2  ;;  %v1062_v28 = vadd.f32 %v1061_v16, %v1060_v5 }
 0x27c   :  { %1246 = vmatpush.msra.mxu0 %v1162_v63  ;;  %1206 = vmatpush.msrb.mxu3 %v1145_v2  ;;  %v1179_v63 = vld [vmem:[#allocation9 + $0x128] sm:$0xff]  ;;  %v1178_v2 = vld [vmem:[#allocation9 + $0x120] sm:$0xff] }
 0x27d   :  { %v1029_v1 = vadd.f32 %v1028_v27, %v1027_v20  ;;  %v1063_v31 = vrot.slane %v1062_v28, 2 }
 0x27e   :  { %1247 = vmatpush.msra.mxu0 %v1161_v42  ;;  %1207 = vmatpush.msrb.mxu3 %v1144_v43  ;;  %v1121_v42 = vld [vmem:[#allocation2 + $0x1c] sm:$0xff] }
 0x27f   :  { %v1030_v36 = vrot.slane %v1029_v1, 1  ;;  %v1064_v37 = vadd.f32 %v1063_v31, %v1062_v28  ;;  %v3121_v28 = vld [vmem:[%s4338_s9] ss:$0 sm:$0xff] }
 0x280   :  { %1248 = vmatpush.msra.mxu0 %v1160_v18  ;;  %1208 = vmatpush.msrb.mxu3 %v1143_v34  ;;  %v1129_v43 = vld [vmem:[#allocation2 + $0x1e] sm:$0xff]  ;;  %v1176_v34 = vld [vmem:[#allocation9 + $0x110] sm:$0xff] }
 0x281   :  { %v1031_v45 = vadd.f32 %v1030_v36, %v1029_v1  ;;  %v1065_v47 = vrot.slane %v1064_v37, 1  ;;  %v1177_v18 = vld [vmem:[#allocation9 + $0x118] sm:$0xff] }
 0x282   :  { %1249 = vmatpush.msra.mxu0 %v1159_v7  ;;  %1209 = vmatpush.msrb.mxu3 %v1142_v50  ;;  %v1175_v7 = vld [vmem:[#allocation9 + $0x108] sm:$0xff]  ;;  %v1174_v50 = vld [vmem:[#allocation9 + $0x100] sm:$0xff] }
 0x283   :  { %v1066_v49 = vadd.f32 %v1065_v47, %v1064_v37  ;;  %v3956_v52 = vmul.f32 0.025, %v1031_v45  ;;  %v317_v37 = vadd.f32 %v3118_v29, %v3915_v39  ;;  %v1185_v39 = vld [vmem:[#allocation9 + $0x158] sm:$0xff] }
 0x284   :  { %1250 = vmatpush.msra.mxu0 %v1158_v51  ;;  %1276 = vmatpush.msra.mxu3 %v1189_v33 }
 0x285   :  { %v1068_v54 = vmul.f32 0.025, %v1066_v49  ;;  %v1069_v55 = vmul.f32 %v3956_v52, %v3956_v52  ;;  %v1071_v56 = vsub.f32 %v3934_v40, %v3956_v52  ;;  %v1072_v15 = vsub.f32 %v3931_v22, %v3956_v52  ;;  %v1187_v22 = vld [vmem:[#allocation9 + $0x168] sm:$0xff] }
 0x286   :  { %1277 = vmatpush.msra.mxu3 %v1188_v13  ;;  %v1073_v5 = vsub.f32 %v3944_v8, %v3956_v52  ;;  %v1074_v17 = vsub.f32 %v3946_v6, %v3956_v52  ;;  %v326_v49 = vadd.f32 %v3118_v29, %v3921_v4  ;;  %v1125_v13 = vld [vmem:[#allocation2 + $0x3c] sm:$0xff] }
 0x287   :  { %v1070_v60 = vsub.f32 %v1068_v54, %v1069_v55  ;;  %v1183_v55 = vld [vmem:[#allocation9 + $0x148] sm:$0xff] }
 0x288   :  { %1278 = vmatpush.msra.mxu3 %v1187_v22  ;;  %v1534_v22 = vld [vmem:[#allocation10 + $0x70] sm:$0xff] }
 0x289   :  { %v1075_v62 = vadd.f32 1e-05, %v1070_v60 }
 0x28a   :  { %1279 = vmatpush.msra.mxu3 %v1186_v35 }
 0x28b   :  { %3138 = vrsqrt.f32 %v1075_v62  ;;  %vm1082_vm10 = vweird.f32 %v1075_v62 }
 0x28c   :  { %1280 = vmatpush.msra.mxu3 %v1185_v39  ;;  %v3027_v39 = vpop.permute.xlu0 %3026 }
 0x28e   :  { %1281 = vmatpush.msra.mxu3 %v1184_v3 }
 0x290   :  { %1282 = vmatpush.msra.mxu3 %v1183_v55 }
 0x291   :  { %v3139_v10 = vpop.eup %3138 }
 0x292   :  { %v1077_v11 = vmul.f32 %v3139_v10, %v1075_v62  ;;  %vm1083_vm9 = vweird.f32 %v3139_v10  ;;  %1283 = vmatpush.msra.mxu3 %v1182_v59  ;;  %v3029_v59 = vunpack.i.h.bf16 %v3027_v39 }
 0x293   :  { %vm1084_vm11 = vmor %vm1082_vm10, %vm1083_vm9  ;;  %vm2764_vm9 = vcmask 523264   ;;  %vm2788_vm10 = vcmask 238592  }
 0x294   :  { %v1078_v12 = vmul.f32 %v3139_v10, %v1077_v11  ;;  %1284 = vmatpush.msra.mxu3 %v1181_v26 }
 0x296   :  { %v1079_v32 = vmul.f32 0.5, %v1078_v12  ;;  %1285 = vmatpush.msra.mxu3 %v1180_v61  ;;  %v3028_v61 = vunpack.i.l.bf16 %v3027_v39 }
 0x298   :  { %v1080_v19 = vsub.f32 1.5, %v1079_v32  ;;  %1286 = vmatpush.msra.mxu3 %v1179_v63 }
 0x29a   :  { %v1081_v14 = vmul.f32 %v3139_v10, %v1080_v19  ;;  %1287 = vmatpush.msra.mxu3 %v1178_v2  ;;  %v1133_v19 = vld [vmem:[#allocation2 + $0x3e] sm:$0xff] }
 0x29c   :  { %v1085_v20 = vsel %vm1084_vm11, %v3139_v10, %v1081_v14  ;;  %1288 = vmatpush.msra.mxu3 %v1177_v18 }
 0x29d   :  { %v1086_v16 = vmul.f32 %v1085_v20, %v1071_v56  ;;  %v1087_v21 = vmul.f32 %v1085_v20, %v1072_v15  ;;  %v1088_v23 = vmul.f32 %v1085_v20, %v1073_v5  ;;  %v1089_v27 = vmul.f32 %v1085_v20, %v1074_v17 }
 0x29e   :  { %1289 = vmatpush.msra.mxu3 %v1176_v34 }
 0x29f   :  { %v1094_v30 = vmul.f32 %v3120_v0, %v1086_v16  ;;  %v1095_v40 = vmul.f32 %v3120_v0, %v1087_v21  ;;  %v1096_v1 = vmul.f32 %v3120_v0, %v1088_v23  ;;  %v1097_v31 = vmul.f32 %v3120_v0, %v1089_v27 }
 0x2a0   :  { %1290 = vmatpush.msra.mxu3 %v1175_v7 }
 0x2a1   :  { %v1102_v8 = vadd.f32 %v3121_v28, %v1094_v30  ;;  %v1103_v24 = vadd.f32 %v3121_v28, %v1095_v40  ;;  %v1104_v36 = vadd.f32 %v3121_v28, %v1096_v1  ;;  %v1105_v6 = vadd.f32 %v3121_v28, %v1097_v31  ;;  %v1551_v40 = vld [vmem:[#allocation10 + $0xf8] sm:$0xff]  ;;  %v1550_v31 = vld [vmem:[#allocation10 + $0xf0] sm:$0xff] }
 0x2a2   :  { %1291 = vmatpush.msra.mxu3 %v1174_v50  ;;  %1619 = vmatpush.msra.mxu2 %v1551_v40 }
 0x2a3   :  { %v1106_v45 = vmax.f32 %v1102_v8, 0.0  ;;  %v1107_v47 = vmax.f32 %v1103_v24, 0.0  ;;  %v1108_v48 = vmax.f32 %v1104_v36, 0.0  ;;  %v1109_v41 = vmax.f32 %v1105_v6, 0.0  ;;  %v3122_v24 = vld [vmem:[%s4340_s21] ss:$0 sm:$0xff] }
 0x2a4   :  { %1620 = vmatpush.msra.mxu2 %v1550_v31 }
 0x2a5   :  { %v3975_v52 = vadd.f32 %v1106_v45, %v317_v37  ;;  %v3977_v53 = vadd.f32 %v1107_v47, %v320_v38  ;;  %v3979_v25 = vadd.f32 %v1108_v48, %v323_v44  ;;  %v3981_v54 = vadd.f32 %v1109_v41, %v326_v49 }
 0x2a7   :  { %1114 = vst [vmem:[#allocation2 + $0x8] sm:$0xff] %v3975_v52 }
 0x2a8   :  { %1115 = vst [vmem:[#allocation2 + $0x10] sm:$0xff] %v3977_v53 }
 0x2a9   :  { %1116 = vst [vmem:[#allocation2 + $0x28] sm:$0xff] %v3979_v25 }
 0x2aa   :  { %1117 = vst [vmem:[#allocation2 + $0x30] sm:$0xff] %v3981_v54 }
 0x2ae   :  { %v1118_v46 = vld [vmem:[#allocation2 + $0x4] sm:$0xff] }
 0x2af   :  { %v1126_v4 = vld [vmem:[#allocation2 + $0x6] sm:$0xff]  ;;  %1210 = vmatmul.f32.vlgmr.msrb.gmra.mxu3 %v1118_v46  ;;  %v1127_v60 = vld [vmem:[#allocation2 + $0xe] sm:$0xff]  ;;  %v1128_v57 = vld [vmem:[#allocation2 + $0x16] sm:$0xff] }
 0x2b0   :  { %1251 = vmatmul.f32.vlgmr.msra.gmra.mxu0 %v1126_v4  ;;  %v1119_v58 = vld [vmem:[#allocation2 + $0xc] sm:$0xff]  ;;  %v1120_v62 = vld [vmem:[#allocation2 + $0x14] sm:$0xff]  ;;  %v1122_v51 = vld [vmem:[#allocation2 + $0x24] sm:$0xff] }
 0x2b1   :  { %v1130_v10 = vld [vmem:[#allocation2 + $0x26] sm:$0xff]  ;;  %v1131_v12 = vld [vmem:[#allocation2 + $0x2e] sm:$0xff]  ;;  %v1132_v33 = vld [vmem:[#allocation2 + $0x36] sm:$0xff] }
 0x2b2   :  { %v1123_v11 = vld [vmem:[#allocation2 + $0x2c] sm:$0xff]  ;;  %v1124_v32 = vld [vmem:[#allocation2 + $0x34] sm:$0xff] }
 0x2b7   :  { %1213 = vmatmul.f32.gmra.mxu3 %v1119_v58 }
 0x2b8   :  { %1254 = vmatmul.f32.gmra.mxu0 %v1127_v60 }
 0x2bf   :  { %1216 = vmatmul.f32.gmra.mxu3 %v1120_v62  ;;  %v3032_v62 = vpop.permute.xlu1 %3031 }
 0x2c0   :  { %1257 = vmatmul.f32.gmra.mxu0 %v1128_v57  ;;  %v3033_v2 = vunpack.i.l.bf16 %v3032_v62  ;;  %v3034_v34 = vunpack.i.h.bf16 %v3032_v62 }
 0x2c7   :  { %1219 = vmatmul.f32.gmra.mxu3 %v1121_v42 }
 0x2c8   :  { %1260 = vmatmul.f32.gmra.mxu0 %v1129_v43 }
 0x2cf   :  { %1222 = vmatmul.f32.gmra.mxu3 %v1122_v51  ;;  %v3037_v51 = vpop.permute.xlu2 %3036 }
 0x2d0   :  { %1263 = vmatmul.f32.gmra.mxu0 %v1130_v10 }
 0x2d7   :  { %1225 = vmatmul.f32.gmra.mxu3 %v1123_v11 }
 0x2d8   :  { %1266 = vmatmul.f32.gmra.mxu0 %v1131_v12 }
 0x2df   :  { %1228 = vmatmul.f32.gmra.mxu3 %v1124_v32 }
 0x2e0   :  { %1269 = vmatmul.f32.gmra.mxu0 %v1132_v33  ;;  %v3038_v33 = vunpack.i.l.bf16 %v3037_v51 }
 0x2e7   :  { %1231 = vmatmul.f32.gmra.mxu3 %v1125_v13 }
 0x2e8   :  { %1272 = vmatmul.f32.gmra.mxu0 %v1133_v19 }
 0x2ef   :  { %1292 = vmatmul.f32.vlgmr.msra.gmra.mxu3 %v3975_v52 }
 0x2f7   :  { %1295 = vmatmul.f32.gmra.mxu3 %v3977_v53 }
 0x2ff   :  { %1298 = vmatmul.f32.gmra.mxu3 %v3857_v9 }
 0x307   :  { %1301 = vmatmul.f32.gmra.mxu3 %v3857_v9 }
 0x30f   :  { %1304 = vmatmul.f32.gmra.mxu3 %v3979_v25 }
 0x317   :  { %1307 = vmatmul.f32.gmra.mxu3 %v3981_v54 }
 0x31f   :  { %1310 = vmatmul.f32.gmra.mxu3 %v3857_v9 }
 0x327   :  { %1313 = vmatmul.f32.gmra.mxu3 %v3857_v9  ;;  %v1535_v9 = vld [vmem:[#allocation10 + $0x78] sm:$0xff] }
 0x328   :  { %1572 = vmatpush.msra.mxu1 %v1535_v9 }
 0x32a   :  { %1573 = vmatpush.msra.mxu1 %v1534_v22  ;;  %v1566_v22 = vld [vmem:[#allocation10 + $0x170] sm:$0xff] }
 0x32d   :  { %v1252_v20 = vpop.f32.mrf.mxu0 }
 0x332   :  { %v1211_v14 = vpop.f32.mrf.mxu3 }
 0x333   :  { %v1212_v38 = vadd.f32 %v3122_v24, %v1211_v14 }
 0x335   :  { %v1255_v23 = vpop.f32.mrf.mxu0  ;;  %v1253_v48 = vadd.f32 %v1252_v20, %v1212_v38 }
 0x33a   :  { %v1214_v56 = vpop.f32.mrf.mxu3 }
 0x33b   :  { %v1215_v36 = vadd.f32 %v3122_v24, %v1214_v56 }
 0x33d   :  { %v1258_v28 = vpop.f32.mrf.mxu0  ;;  %v1256_v45 = vadd.f32 %v1255_v23, %v1215_v36  ;;  %v1567_v23 = vld [vmem:[#allocation10 + $0x178] sm:$0xff] }
 0x33e   :  { %1666 = vmatpush.msrb.mxu0 %v1567_v23 }
 0x340   :  { %1667 = vmatpush.msrb.mxu0 %v1566_v22  ;;  %v1527_v22 = vld [vmem:[#allocation10 + $0x38] sm:$0xff] }
 0x342   :  { %v1217_v15 = vpop.f32.mrf.mxu3 }
 0x343   :  { %v1218_v44 = vadd.f32 %v3122_v24, %v1217_v15 }
 0x345   :  { %v1261_v30 = vpop.f32.mrf.mxu0  ;;  %v1259_v49 = vadd.f32 %v1258_v28, %v1218_v44 }
 0x34a   :  { %v1220_v5 = vpop.f32.mrf.mxu3 }
 0x34b   :  { %v1221_v47 = vadd.f32 %v3122_v24, %v1220_v5 }
 0x34d   :  { %v1264_v35 = vpop.f32.mrf.mxu0  ;;  %v1262_v46 = vadd.f32 %v1261_v30, %v1221_v47 }
 0x352   :  { %v1223_v17 = vpop.f32.mrf.mxu3 }
 0x353   :  { %v1224_v52 = vadd.f32 %v3122_v24, %v1223_v17 }
 0x355   :  { %v1267_v37 = vpop.f32.mrf.mxu0  ;;  %v1265_v26 = vadd.f32 %v1264_v35, %v1224_v52 }
 0x35a   :  { %v1226_v0 = vpop.f32.mrf.mxu3 }
 0x35b   :  { %v1227_v3 = vadd.f32 %v3122_v24, %v1226_v0  ;;  %v3039_v0 = vunpack.i.h.bf16 %v3037_v51 }
 0x35d   :  { %v1270_v58 = vpop.f32.mrf.mxu0  ;;  %v1268_v18 = vadd.f32 %v1267_v37, %v1227_v3 }
 0x362   :  { %v1229_v16 = vpop.f32.mrf.mxu3 }
 0x363   :  { %v1230_v4 = vadd.f32 %v3122_v24, %v1229_v16 }
 0x365   :  { %v1271_v50 = vadd.f32 %v1270_v58, %v1230_v4  ;;  %v1273_v28 = vpop.f32.mrf.mxu0 }
 0x36a   :  { %v3995_v21 = vpop.f32.mrf.mxu3 }
 0x36b   :  { %v1233_v20 = vadd.f32 %v3122_v24, %v3995_v21 }
 0x36d   :  { %v1274_v24 = vadd.f32 %v1273_v28, %v1233_v20  ;;  %v1545_v20 = vld [vmem:[#allocation10 + $0xc8] sm:$0xff] }
 0x36e   :  { %v1557_v28 = vld [vmem:[#allocation10 + $0x128] sm:$0xff] }
 0x372   :  { %v1293_v27 = vpop.f32.mrf.mxu3 }
 0x373   :  { %v4000_v53 = vadd.f32 %v1293_v27, %v1253_v48  ;;  %v3042_v27 = vpop.permute.xlu0 %3041 }
 0x374   :  { %v3043_v9 = vunpack.i.l.bf16 %v3042_v27  ;;  %v3044_v47 = vunpack.i.h.bf16 %v3042_v27 }
 0x375   :  { %v1402_v57 = vmul.f32 %v4000_v53, %v4000_v53  ;;  %v1381_v10 = vmul.f32 %v3028_v61, %v4000_v53 }
 0x377   :  { %v1410_v13 = vmul.f32 %v3028_v61, %v1402_v57  ;;  %v1549_v57 = vld [vmem:[#allocation10 + $0xe8] sm:$0xff] }
 0x378   :  { %1621 = vmatpush.msra.mxu2 %v1549_v57 }
 0x37a   :  { %v1296_v29 = vpop.f32.mrf.mxu3 }
 0x37b   :  { %v3998_v41 = vadd.f32 %v1296_v29, %v1256_v45 }
 0x37d   :  { %v1403_v55 = vmul.f32 %v3998_v41, %v3998_v41  ;;  %v1382_v42 = vmul.f32 %v3029_v59, %v3998_v41 }
 0x37f   :  { %v1411_v7 = vmul.f32 %v3029_v59, %v1403_v55  ;;  %v1389_v56 = vadd.f32 %v1382_v42, %v1381_v10 }
 0x381   :  { %v1418_v16 = vadd.f32 %v1411_v7, %v1410_v13  ;;  %v1532_v7 = vld [vmem:[#allocation10 + $0x60] sm:$0xff] }
 0x382   :  { %v1299_v1 = vpop.f32.mrf.mxu3 }
 0x383   :  { %v4002_v25 = vadd.f32 %v1299_v1, %v1259_v49  ;;  %v1564_v49 = vld [vmem:[#allocation10 + $0x160] sm:$0xff] }
 0x385   :  { %v1404_v63 = vmul.f32 %v4002_v25, %v4002_v25  ;;  %v1383_v11 = vmul.f32 %v3033_v2, %v4002_v25 }
 0x387   :  { %v1412_v19 = vmul.f32 %v3033_v2, %v1404_v63  ;;  %v1390_v29 = vadd.f32 %v1389_v56, %v1383_v11  ;;  %v1533_v63 = vld [vmem:[#allocation10 + $0x68] sm:$0xff]  ;;  %v1547_v11 = vld [vmem:[#allocation10 + $0xd8] sm:$0xff]  ;;  %v1530_v56 = vld [vmem:[#allocation10 + $0x50] sm:$0xff] }
 0x388   :  { %v1561_v2 = vld [vmem:[#allocation10 + $0x148] sm:$0xff]  ;;  %1574 = vmatpush.msra.mxu1 %v1533_v63 }
 0x389   :  { %v1419_v31 = vadd.f32 %v1418_v16, %v1412_v19  ;;  %v1529_v16 = vld [vmem:[#allocation10 + $0x48] sm:$0xff] }
 0x38a   :  { %v1302_v8 = vpop.f32.mrf.mxu3  ;;  %1575 = vmatpush.msra.mxu1 %v1532_v7 }
 0x38b   :  { %v1303_v60 = vadd.f32 %v1302_v8, %v1262_v46  ;;  %v1563_v46 = vld [vmem:[#allocation10 + $0x158] sm:$0xff] }
 0x38d   :  { %v1405_v12 = vmul.f32 %v1303_v60, %v1303_v60  ;;  %v1384_v15 = vmul.f32 %v3034_v34, %v1303_v60  ;;  %v1562_v60 = vld [vmem:[#allocation10 + $0x150] sm:$0xff] }
 0x38f   :  { %v1413_v30 = vmul.f32 %v3034_v34, %v1405_v12  ;;  %v1391_v35 = vadd.f32 %v1390_v29, %v1384_v15  ;;  %v1548_v34 = vld [vmem:[#allocation10 + $0xe0] sm:$0xff]  ;;  %v1531_v12 = vld [vmem:[#allocation10 + $0x58] sm:$0xff]  ;;  %v1558_v15 = vld [vmem:[#allocation10 + $0x130] sm:$0xff] }
 0x390   :  { %1622 = vmatpush.msra.mxu2 %v1548_v34  ;;  %1576 = vmatpush.msra.mxu1 %v1531_v12  ;;  %v1544_v29 = vld [vmem:[#allocation10 + $0xc0] sm:$0xff] }
 0x391   :  { %v1420_v37 = vadd.f32 %v1419_v31, %v1413_v30  ;;  %v1528_v30 = vld [vmem:[#allocation10 + $0x40] sm:$0xff]  ;;  %v1543_v31 = vld [vmem:[#allocation10 + $0xb8] sm:$0xff] }
 0x392   :  { %v1305_v6 = vpop.f32.mrf.mxu3  ;;  %1623 = vmatpush.msra.mxu2 %v1547_v11  ;;  %1577 = vmatpush.msra.mxu1 %v1530_v56 }
 0x393   :  { %v4011_v43 = vadd.f32 %v1305_v6, %v1265_v26  ;;  %v1565_v6 = vld [vmem:[#allocation10 + $0x168] sm:$0xff] }
 0x394   :  { %1668 = vmatpush.msrb.mxu0 %v1565_v6  ;;  %1578 = vmatpush.msra.mxu1 %v1529_v16  ;;  %v1554_v6 = vld [vmem:[#allocation10 + $0x110] sm:$0xff] }
 0x395   :  { %v1406_v5 = vmul.f32 %v4011_v43, %v4011_v43  ;;  %v1385_v40 = vmul.f32 %v3038_v33, %v4011_v43 }
 0x396   :  { %1669 = vmatpush.msrb.mxu0 %v1564_v49  ;;  %1579 = vmatpush.msra.mxu1 %v1528_v30  ;;  %v1540_v49 = vld [vmem:[#allocation10 + $0xa0] sm:$0xff] }
 0x397   :  { %v1414_v8 = vmul.f32 %v3038_v33, %v1406_v5  ;;  %v1392_v38 = vadd.f32 %v1391_v35, %v1385_v40  ;;  %v1559_v33 = vld [vmem:[#allocation10 + $0x138] sm:$0xff] }
 0x398   :  { %1670 = vmatpush.msrb.mxu0 %v1563_v46  ;;  %v1555_v35 = vld [vmem:[#allocation10 + $0x118] sm:$0xff]  ;;  %1580 = vmatpush.msra.mxu1 %v1527_v22 }
 0x399   :  { %v1421_v52 = vadd.f32 %v1420_v37, %v1414_v8  ;;  %v1523_v46 = vld [vmem:[#allocation10 + $0x18] sm:$0xff] }
 0x39a   :  { %v1308_v54 = vpop.f32.mrf.mxu3  ;;  %1671 = vmatpush.msrb.mxu0 %v1562_v60  ;;  %v1520_v60 = vld [vmem:[#allocation10] sm:$0xff] }
 0x39b   :  { %v4015_v32 = vadd.f32 %v1308_v54, %v1268_v18 }
 0x39c   :  { %1672 = vmatpush.msrb.mxu0 %v1561_v2 }
 0x39d   :  { %v1407_v1 = vmul.f32 %v4015_v32, %v4015_v32  ;;  %v1386_v36 = vmul.f32 %v3039_v0, %v4015_v32 }
 0x39f   :  { %v1415_v44 = vmul.f32 %v3039_v0, %v1407_v1  ;;  %v1393_v54 = vadd.f32 %v1392_v38, %v1386_v36 }
 0x3a1   :  { %v1422_v4 = vadd.f32 %v1421_v52, %v1415_v44  ;;  %v1541_v44 = vld [vmem:[#allocation10 + $0xa8] sm:$0xff]  ;;  %v1524_v52 = vld [vmem:[#allocation10 + $0x20] sm:$0xff] }
 0x3a2   :  { %v1311_v14 = vpop.f32.mrf.mxu3 }
 0x3a3   :  { %v4019_v17 = vadd.f32 %v1311_v14, %v1271_v50  ;;  %v1560_v50 = vld [vmem:[#allocation10 + $0x140] sm:$0xff]  ;;  %v1546_v14 = vld [vmem:[#allocation10 + $0xd0] sm:$0xff] }
 0x3a4   :  { %1673 = vmatpush.msrb.mxu0 %v1560_v50  ;;  %1624 = vmatpush.msra.mxu2 %v1546_v14 }
 0x3a5   :  { %v1408_v21 = vmul.f32 %v4019_v17, %v4019_v17  ;;  %v1387_v45 = vmul.f32 %v3043_v9, %v4019_v17 }
 0x3a6   :  { %1674 = vmatpush.msrb.mxu0 %v1559_v33  ;;  %1625 = vmatpush.msra.mxu2 %v1545_v20 }
 0x3a7   :  { %v1416_v39 = vmul.f32 %v3043_v9, %v1408_v21  ;;  %v1394_v59 = vadd.f32 %v1393_v54, %v1387_v45  ;;  %v1556_v9 = vld [vmem:[#allocation10 + $0x120] sm:$0xff]  ;;  %v1542_v21 = vld [vmem:[#allocation10 + $0xb0] sm:$0xff]  ;;  %v1525_v45 = vld [vmem:[#allocation10 + $0x28] sm:$0xff] }
 0x3a8   :  { %1675 = vmatpush.msrb.mxu0 %v1558_v15  ;;  %1626 = vmatpush.msra.mxu2 %v1544_v29  ;;  %v1552_v54 = vld [vmem:[#allocation10 + $0x100] sm:$0xff] }
 0x3a9   :  { %v1423_v62 = vadd.f32 %v1422_v4, %v1416_v39  ;;  %v1538_v4 = vld [vmem:[#allocation10 + $0x90] sm:$0xff] }
 0x3aa   :  { %v1314_v48 = vpop.f32.mrf.mxu3  ;;  %1676 = vmatpush.msrb.mxu0 %v1557_v28  ;;  %1627 = vmatpush.msra.mxu2 %v1543_v31 }
 0x3ab   :  { %v1315_v3 = vadd.f32 %v1314_v48, %v1274_v24  ;;  %v1526_v24 = vld [vmem:[#allocation10 + $0x30] sm:$0xff] }
 0x3ac   :  { %1677 = vmatpush.msrb.mxu0 %v1556_v9  ;;  %1628 = vmatpush.msra.mxu2 %v1542_v21 }
 0x3ad   :  { %v1388_v55 = vmul.f32 %v3044_v47, %v1315_v3  ;;  %v1409_v58 = vmul.f32 %v1315_v3, %v1315_v3  ;;  %1581 = vmatpush.msra.mxu1 %v1526_v24  ;;  %v1539_v3 = vld [vmem:[#allocation10 + $0x98] sm:$0xff] }
 0x3ae   :  { %1678 = vmatpush.msrb.mxu0 %v1555_v35  ;;  %1629 = vmatpush.msra.mxu2 %v1541_v44  ;;  %v1503_v44 = vld [vmem:[#allocation3 + $0x1e] sm:$0xff] }
 0x3af   :  { %v1395_v26 = vadd.f32 %v1394_v59, %v1388_v55  ;;  %v1417_v61 = vmul.f32 %v3044_v47, %v1409_v58  ;;  %v1553_v47 = vld [vmem:[#allocation10 + $0x108] sm:$0xff]  ;;  %1582 = vmatpush.msra.mxu1 %v1525_v45  ;;  %v1522_v55 = vld [vmem:[#allocation10 + $0x10] sm:$0xff] }
 0x3b0   :  { %1679 = vmatpush.msrb.mxu0 %v1554_v6  ;;  %1630 = vmatpush.msra.mxu2 %v1540_v49  ;;  %v1521_v59 = vld [vmem:[#allocation10 + $0x8] sm:$0xff] }
 0x3b1   :  { %v1396_v42 = vrot.slane %v1395_v26, 4  ;;  %v1424_v18 = vadd.f32 %v1423_v62, %v1417_v61  ;;  %1583 = vmatpush.msra.mxu1 %v1524_v52  ;;  %v1537_v58 = vld [vmem:[#allocation10 + $0x88] sm:$0xff] }
 0x3b2   :  { %1680 = vmatpush.msrb.mxu0 %v1553_v47  ;;  %1631 = vmatpush.msra.mxu2 %v1539_v3  ;;  %v1494_v45 = vld [vmem:[#allocation3 + $0x24] sm:$0xff] }
 0x3b3   :  { %v1397_v51 = vadd.f32 %v1396_v42, %v1395_v26  ;;  %v1425_v10 = vrot.slane %v1424_v18, 4  ;;  %1584 = vmatpush.msra.mxu1 %v1523_v46  ;;  %v1536_v26 = vld [vmem:[#allocation10 + $0x80] sm:$0xff]  ;;  %v1504_v47 = vld [vmem:[#allocation3 + $0x26] sm:$0xff] }
 0x3b4   :  { %1681 = vmatpush.msrb.mxu0 %v1552_v54  ;;  %1632 = vmatpush.msra.mxu2 %v1538_v4  ;;  %v1508_v4 = vld [vmem:[#allocation3 + $0x46] sm:$0xff] }
 0x3b5   :  { %v1398_v13 = vrot.slane %v1397_v51, 2  ;;  %v1426_v19 = vadd.f32 %v1425_v10, %v1424_v18  ;;  %1585 = vmatpush.msra.mxu1 %v1522_v55  ;;  %v1498_v55 = vld [vmem:[#allocation3 + $0x44] sm:$0xff] }
 0x3b6   :  { %1633 = vmatpush.msra.mxu2 %v1537_v58  ;;  %v1499_v58 = vld [vmem:[#allocation3 + $0x4c] sm:$0xff] }
 0x3b7   :  { %v1399_v5 = vadd.f32 %v1398_v13, %v1397_v51  ;;  %v1427_v0 = vrot.slane %v1426_v19, 2  ;;  %1586 = vmatpush.msra.mxu1 %v1521_v59  ;;  %v3123_v51 = vld [vmem:[%s4341_s3] ss:$0 sm:$0xff]  ;;  %v1509_v59 = vld [vmem:[#allocation3 + $0x4e] sm:$0xff] }
 0x3b8   :  { %1634 = vmatpush.msra.mxu2 %v1536_v26 }
 0x3b9   :  { %v1400_v23 = vrot.slane %v1399_v5, 1  ;;  %v1428_v27 = vadd.f32 %v1427_v0, %v1426_v19  ;;  %1587 = vmatpush.msra.mxu1 %v1520_v60 }
 0x3bb   :  { %v1401_v40 = vadd.f32 %v1400_v23, %v1399_v5  ;;  %v1429_v1 = vrot.slane %v1428_v27, 1 }
 0x3bd   :  { %v1430_v8 = vadd.f32 %v1429_v1, %v1428_v27  ;;  %v4029_v36 = vmul.f32 0.025, %v1401_v40 }
 0x3bf   :  { %v1432_v37 = vmul.f32 0.025, %v1430_v8  ;;  %v1433_v38 = vmul.f32 %v4029_v36, %v4029_v36  ;;  %v1435_v18 = vsub.f32 %v4000_v53, %v4029_v36  ;;  %v1436_v34 = vsub.f32 %v3998_v41, %v4029_v36  ;;  %v3124_v41 = vld [vmem:[%s4342_s8] ss:$0 sm:$0xff] }
 0x3c0   :  { %v1437_v7 = vsub.f32 %v4002_v25, %v4029_v36  ;;  %v1438_v50 = vsub.f32 %v4011_v43, %v4029_v36  ;;  %v1439_v10 = vsub.f32 %v4015_v32, %v4029_v36  ;;  %v1440_v11 = vsub.f32 %v4019_v17, %v4029_v36 }
 0x3c1   :  { %v1434_v48 = vsub.f32 %v1432_v37, %v1433_v38  ;;  %v4047_v37 = vld [vmem:[#allocation2] sm:$0xff] }
 0x3c2   :  { %v1493_v38 = vld [vmem:[#allocation3 + $0x1c] sm:$0xff] }
 0x3c3   :  { %v1441_v39 = vadd.f32 1e-05, %v1434_v48 }
 0x3c5   :  { %3140 = vrsqrt.f32 %v1441_v39  ;;  %vm1448_vm13 = vweird.f32 %v1441_v39 }
 0x3cb   :  { %v3141_v61 = vpop.eup %3140 }
 0x3cc   :  { %v1443_v62 = vmul.f32 %v3141_v61, %v1441_v39  ;;  %vm1449_vm12 = vweird.f32 %v3141_v61 }
 0x3cd   :  { %vm1450_vm14 = vmor %vm1448_vm13, %vm1449_vm12 }
 0x3ce   :  { %v1444_v57 = vmul.f32 %v3141_v61, %v1443_v62 }
 0x3d0   :  { %v1445_v63 = vmul.f32 0.5, %v1444_v57 }
 0x3d2   :  { %v1446_v2 = vsub.f32 1.5, %v1445_v63 }
 0x3d4   :  { %v1447_v42 = vmul.f32 %v3141_v61, %v1446_v2 }
 0x3d6   :  { %v1451_v12 = vsel %vm1450_vm14, %v3141_v61, %v1447_v42 }
 0x3d7   :  { %v1452_v33 = vmul.f32 %v1451_v12, %v1435_v18  ;;  %v1453_v53 = vmul.f32 %v1451_v12, %v1436_v34  ;;  %v1454_v13 = vmul.f32 %v1451_v12, %v1437_v7  ;;  %v1455_v19 = vmul.f32 %v1451_v12, %v1438_v50 }
 0x3d8   :  { %v1456_v14 = vmul.f32 %v1451_v12, %v1439_v10  ;;  %v1457_v56 = vmul.f32 %v1451_v12, %v1440_v11 }
 0x3d9   :  { %v1462_v25 = vmul.f32 %v3123_v51, %v1452_v33  ;;  %v1463_v15 = vmul.f32 %v3123_v51, %v1453_v53  ;;  %v1464_v5 = vmul.f32 %v3123_v51, %v1454_v13  ;;  %v1465_v43 = vmul.f32 %v3123_v51, %v1455_v19  ;;  %v1975_v13 = vld [vmem:[#allocation12 + $0x178] sm:$0xff] }
 0x3da   :  { %v1466_v0 = vmul.f32 %v3123_v51, %v1456_v14  ;;  %v1467_v20 = vmul.f32 %v3123_v51, %v1457_v56  ;;  %v1959_v19 = vld [vmem:[#allocation12 + $0xf8] sm:$0xff]  ;;  %2062 = vmatpush.msrb.mxu2 %v1975_v13  ;;  %v4054_v56 = vld [vmem:[%s4343_s14] ss:$0 sm:$0xff]  ;;  %v1942_v13 = vld [vmem:[#allocation12 + $0x70] sm:$0xff] }
 0x3db   :  { %v1472_v16 = vadd.f32 %v3124_v41, %v1462_v25  ;;  %v1473_v23 = vadd.f32 %v3124_v41, %v1463_v15  ;;  %v1474_v32 = vadd.f32 %v3124_v41, %v1464_v5  ;;  %v1475_v27 = vadd.f32 %v3124_v41, %v1465_v43  ;;  %2021 = vmatpush.msrb.mxu1 %v1959_v19 }
 0x3dc   :  { %v1476_v28 = vadd.f32 %v3124_v41, %v1466_v0  ;;  %v1477_v17 = vadd.f32 %v3124_v41, %v1467_v20  ;;  %v1974_v41 = vld [vmem:[#allocation12 + $0x170] sm:$0xff] }
 0x3dd   :  { %v1478_v29 = vmax.f32 %v1472_v16, 0.0  ;;  %v1479_v30 = vmax.f32 %v1473_v23, 0.0  ;;  %v1480_v40 = vmax.f32 %v1474_v32, 0.0  ;;  %v1481_v1 = vmax.f32 %v1475_v27, 0.0  ;;  %2063 = vmatpush.msrb.mxu2 %v1974_v41 }
 0x3de   :  { %v1482_v9 = vmax.f32 %v1476_v28, 0.0  ;;  %v1483_v31 = vmax.f32 %v1477_v17, 0.0 }
 0x3df   :  { %1484 = vst [vmem:[#allocation3 + $0x8] sm:$0xff] %v1478_v29  ;;  %1682 = vmatmul.f32.vlgmr.msrb.gmra.mxu0 %v1478_v29 }
 0x3e0   :  { %1485 = vst [vmem:[#allocation3 + $0x10] sm:$0xff] %v1479_v30 }
 0x3e1   :  { %1486 = vst [vmem:[#allocation3 + $0x18] sm:$0xf] %v1480_v40 }
 0x3e2   :  { %1487 = vst [vmem:[#allocation3 + $0x30] sm:$0xff] %v1481_v1 }
 0x3e3   :  { %1488 = vst [vmem:[#allocation3 + $0x38] sm:$0xff] %v1482_v9 }
 0x3e4   :  { %1489 = vst [vmem:[#allocation3 + $0x40] sm:$0xf] %v1483_v31 }
 0x3e6   :  { %v1490_v22 = vld [vmem:[#allocation3 + $0x4] sm:$0xff] }
 0x3e7   :  { %v1500_v35 = vld [vmem:[#allocation3 + $0x6] sm:$0xff]  ;;  %1588 = vmatmul.f32.vlgmr.msra.gmra.mxu1 %v1490_v22  ;;  %1685 = vmatmul.f32.gmra.mxu0 %v1479_v30  ;;  %v1501_v36 = vld [vmem:[#allocation3 + $0xe] sm:$0xff]  ;;  %v3047_v22 = vpop.permute.xlu1 %3046 }
 0x3e8   :  { %1635 = vmatmul.f32.vlgmr.msra.gmra.mxu2 %v1500_v35  ;;  %v1491_v8 = vld [vmem:[#allocation3 + $0xc] sm:$0xff]  ;;  %v1512_v21 = vld [vmem:[#allocation3 + $0x18] sm:$0xff] }
 0x3e9   :  { %v1492_v24 = vld [vmem:[#allocation3 + $0x14] sm:$0xff]  ;;  %v1495_v48 = vld [vmem:[#allocation3 + $0x2c] sm:$0xff] }
 0x3ea   :  { %v1502_v6 = vld [vmem:[#allocation3 + $0x16] sm:$0xff]  ;;  %v1505_v49 = vld [vmem:[#allocation3 + $0x2e] sm:$0xff] }
 0x3eb   :  { %v1496_v52 = vld [vmem:[#allocation3 + $0x34] sm:$0xff]  ;;  %v1517_v39 = vld [vmem:[#allocation3 + $0x40] sm:$0xff] }
 0x3ec   :  { %v1506_v54 = vld [vmem:[#allocation3 + $0x36] sm:$0xff]  ;;  %v1507_v46 = vld [vmem:[#allocation3 + $0x3e] sm:$0xff] }
 0x3ed   :  { %v1497_v3 = vld [vmem:[#allocation3 + $0x3c] sm:$0xff] }
 0x3ef   :  { %1591 = vmatmul.f32.gmra.mxu1 %v1491_v8  ;;  %1688 = vmatmul.f32.gmra.mxu0 %v1512_v21 }
 0x3f0   :  { %1638 = vmatmul.f32.gmra.mxu2 %v1501_v36 }
 0x3f7   :  { %1594 = vmatmul.f32.gmra.mxu1 %v1492_v24  ;;  %1691 = vmatmul.f32.gmra.mxu0 %v4047_v37 }
 0x3f8   :  { %1641 = vmatmul.f32.gmra.mxu2 %v1502_v6  ;;  %v3049_v6 = vunpack.i.h.bf16 %v3047_v22 }
 0x3ff   :  { %1597 = vmatmul.f32.gmra.mxu1 %v1493_v38  ;;  %1694 = vmatmul.f32.gmra.mxu0 %v4047_v37 }
 0x400   :  { %1644 = vmatmul.f32.gmra.mxu2 %v1503_v44  ;;  %v3052_v44 = vpop.permute.xlu2 %3051 }
 0x407   :  { %1600 = vmatmul.f32.gmra.mxu1 %v1494_v45  ;;  %1697 = vmatmul.f32.gmra.mxu0 %v1481_v1 }
 0x408   :  { %1647 = vmatmul.f32.gmra.mxu2 %v1504_v47 }
 0x40f   :  { %1603 = vmatmul.f32.gmra.mxu1 %v1495_v48  ;;  %1700 = vmatmul.f32.gmra.mxu0 %v1482_v9 }
 0x410   :  { %1650 = vmatmul.f32.gmra.mxu2 %v1505_v49 }
 0x417   :  { %1606 = vmatmul.f32.gmra.mxu1 %v1496_v52  ;;  %1703 = vmatmul.f32.gmra.mxu0 %v1517_v39  ;;  %v3053_v39 = vunpack.i.l.bf16 %v3052_v44 }
 0x418   :  { %1653 = vmatmul.f32.gmra.mxu2 %v1506_v54  ;;  %v3048_v54 = vunpack.i.l.bf16 %v3047_v22 }
 0x41f   :  { %1609 = vmatmul.f32.gmra.mxu1 %v1497_v3  ;;  %1706 = vmatmul.f32.gmra.mxu0 %v4047_v37 }
 0x420   :  { %1656 = vmatmul.f32.gmra.mxu2 %v1507_v46 }
 0x427   :  { %1612 = vmatmul.f32.gmra.mxu1 %v1498_v55  ;;  %1709 = vmatmul.f32.gmra.mxu0 %v4047_v37 }
 0x428   :  { %1659 = vmatmul.f32.gmra.mxu2 %v1508_v4 }
 0x42f   :  { %1615 = vmatmul.f32.gmra.mxu1 %v1499_v58  ;;  %v3054_v58 = vunpack.i.h.bf16 %v3052_v44 }
 0x430   :  { %1662 = vmatmul.f32.gmra.mxu2 %v1509_v59 }
 0x45c   :  { %v1683_v60 = vpop.f32.mrf.mxu0 }
 0x464   :  { %v1589_v26 = vpop.f32.mrf.mxu1  ;;  %v1686_v61 = vpop.f32.mrf.mxu0 }
 0x465   :  { %v1590_v5 = vadd.f32 %v4054_v56, %v1589_v26 }
 0x46b   :  { %v1636_v62 = vpop.f32.mrf.mxu2 }
 0x46c   :  { %v1592_v57 = vpop.f32.mrf.mxu1  ;;  %v1689_v63 = vpop.f32.mrf.mxu0  ;;  %v1637_v23 = vadd.f32 %v1636_v62, %v1590_v5 }
 0x46d   :  { %v1593_v15 = vadd.f32 %v4054_v56, %v1592_v57  ;;  %v3057_v62 = vpop.permute.xlu0 %3056 }
 0x46e   :  { %v4063_v30 = vadd.f32 %v1683_v60, %v1637_v23  ;;  %v3059_v19 = vunpack.i.h.bf16 %v3057_v62 }
 0x470   :  { %v1818_v38 = vmul.f32 %v4063_v30, %v4063_v30  ;;  %v1793_v60 = vmul.f32 %v3048_v54, %v4063_v30 }
 0x472   :  { %v1828_v57 = vmul.f32 %v3048_v54, %v1818_v38 }
 0x473   :  { %v1639_v2 = vpop.f32.mrf.mxu2 }
 0x474   :  { %v1595_v42 = vpop.f32.mrf.mxu1  ;;  %v1692_v18 = vpop.f32.mrf.mxu0  ;;  %v1640_v43 = vadd.f32 %v1639_v2, %v1593_v15 }
 0x475   :  { %v1596_v0 = vadd.f32 %v4054_v56, %v1595_v42 }
 0x476   :  { %v4061_v17 = vadd.f32 %v1686_v61, %v1640_v43 }
 0x478   :  { %v1819_v35 = vmul.f32 %v4061_v17, %v4061_v17  ;;  %v1794_v3 = vmul.f32 %v3049_v6, %v4061_v17 }
 0x47a   :  { %v1829_v46 = vmul.f32 %v3049_v6, %v1819_v35  ;;  %v1939_v6 = vld [vmem:[#allocation12 + $0x58] sm:$0xff] }
 0x47b   :  { %v1642_v34 = vpop.f32.mrf.mxu2 }
 0x47c   :  { %v1598_v7 = vpop.f32.mrf.mxu1  ;;  %v1695_v51 = vpop.f32.mrf.mxu0  ;;  %v1643_v32 = vadd.f32 %v1642_v34, %v1596_v0  ;;  %v1943_v34 = vld [vmem:[#allocation12 + $0x78] sm:$0xff] }
 0x47d   :  { %v1599_v20 = vadd.f32 %v4054_v56, %v1598_v7  ;;  %v3058_v7 = vunpack.i.l.bf16 %v3057_v62  ;;  %1980 = vmatpush.msrb.mxu3 %v1943_v34 }
 0x47e   :  { %v1690_v40 = vadd.f32 %v1689_v63, %v1643_v32 }
 0x47f   :  { %1981 = vmatpush.msrb.mxu3 %v1942_v13  ;;  %v1934_v13 = vld [vmem:[#allocation12 + $0x30] sm:$0xff] }
 0x480   :  { %v1820_v45 = vmul.f32 %v1690_v40, %v1690_v40  ;;  %v1795_v26 = vmul.f32 %v3053_v39, %v1690_v40 }
 0x482   :  { %v1830_v63 = vmul.f32 %v3053_v39, %v1820_v45  ;;  %v1938_v39 = vld [vmem:[#allocation12 + $0x50] sm:$0xff] }
 0x483   :  { %v1645_v50 = vpop.f32.mrf.mxu2 }
 0x484   :  { %v1601_v10 = vpop.f32.mrf.mxu1  ;;  %v1698_v33 = vpop.f32.mrf.mxu0  ;;  %v1646_v29 = vadd.f32 %v1645_v50, %v1599_v20  ;;  %v1803_v50 = vadd.f32 %v1794_v3, %v1793_v60 }
 0x485   :  { %v1602_v27 = vadd.f32 %v4054_v56, %v1601_v10  ;;  %v1838_v10 = vadd.f32 %v1829_v46, %v1828_v57 }
 0x486   :  { %v1693_v8 = vadd.f32 %v1692_v18, %v1646_v29  ;;  %v1804_v41 = vadd.f32 %v1803_v50, %v1795_v26  ;;  %v1971_v50 = vld [vmem:[#allocation12 + $0x158] sm:$0xff] }
 0x487   :  { %v1839_v5 = vadd.f32 %v1838_v10, %v1830_v63  ;;  %v1972_v63 = vld [vmem:[#allocation12 + $0x160] sm:$0xff] }
 0x488   :  { %v1821_v4 = vmul.f32 %v1693_v8, %v1693_v8 }
 0x48b   :  { %v1648_v11 = vpop.f32.mrf.mxu2 }
 0x48c   :  { %v1604_v12 = vpop.f32.mrf.mxu1  ;;  %v1701_v25 = vpop.f32.mrf.mxu0  ;;  %v1649_v1 = vadd.f32 %v1648_v11, %v1602_v27  ;;  %v1831_v11 = vmul.f32 %v3054_v58, %v1821_v4 }
 0x48d   :  { %v1605_v9 = vadd.f32 %v4054_v56, %v1604_v12 }
 0x48e   :  { %v1696_v47 = vadd.f32 %v1695_v51, %v1649_v1  ;;  %v1796_v51 = vmul.f32 %v3054_v58, %v1693_v8  ;;  %v1840_v29 = vadd.f32 %v1839_v5, %v1831_v11  ;;  %v1937_v58 = vld [vmem:[#allocation12 + $0x48] sm:$0xff] }
 0x490   :  { %v1822_v2 = vmul.f32 %v1696_v47, %v1696_v47  ;;  %v1805_v32 = vadd.f32 %v1804_v41, %v1796_v51  ;;  %v1935_v51 = vld [vmem:[#allocation12 + $0x38] sm:$0xff] }
 0x492   :  { %v1832_v43 = vmul.f32 %v3058_v7, %v1822_v2  ;;  %v1936_v2 = vld [vmem:[#allocation12 + $0x40] sm:$0xff] }
 0x493   :  { %v1651_v53 = vpop.f32.mrf.mxu2 }
 0x494   :  { %v1607_v14 = vpop.f32.mrf.mxu1  ;;  %v1704_v31 = vpop.f32.mrf.mxu0  ;;  %v1652_v36 = vadd.f32 %v1651_v53, %v1605_v9  ;;  %v1940_v9 = vld [vmem:[#allocation12 + $0x60] sm:$0xff] }
 0x495   :  { %v1608_v21 = vadd.f32 %v4054_v56, %v1607_v14  ;;  %v1797_v14 = vmul.f32 %v3058_v7, %v1696_v47 }
 0x496   :  { %v4073_v55 = vadd.f32 %v1698_v33, %v1652_v36  ;;  %v3067_v36 = vpop.permute.xlu2 %3066 }
 0x497   :  { %v1806_v22 = vadd.f32 %v1805_v32, %v1797_v14  ;;  %v3068_v38 = vunpack.i.l.bf16 %v3067_v36  ;;  %v3069_v60 = vunpack.i.h.bf16 %v3067_v36  ;;  %v1957_v14 = vld [vmem:[#allocation12 + $0xe8] sm:$0xff] }
 0x498   :  { %v1823_v12 = vmul.f32 %v4073_v55, %v4073_v55  ;;  %v1798_v27 = vmul.f32 %v3059_v19, %v4073_v55  ;;  %v1953_v36 = vld [vmem:[#allocation12 + $0xc8] sm:$0xff] }
 0x49a   :  { %v1833_v40 = vmul.f32 %v3059_v19, %v1823_v12  ;;  %v1807_v44 = vadd.f32 %v1806_v22, %v1798_v27  ;;  %v1955_v27 = vld [vmem:[#allocation12 + $0xd8] sm:$0xff]  ;;  %v1930_v22 = vld [vmem:[#allocation12 + $0x10] sm:$0xff] }
 0x49b   :  { %v1654_v16 = vpop.f32.mrf.mxu2 }
 0x49c   :  { %v1610_v28 = vpop.f32.mrf.mxu1  ;;  %v1655_v48 = vadd.f32 %v1654_v16, %v1608_v21  ;;  %v1707_v18 = vpop.f32.mrf.mxu0  ;;  %v1941_v16 = vld [vmem:[#allocation12 + $0x68] sm:$0xff]  ;;  %v1841_v21 = vadd.f32 %v1840_v29, %v1832_v43  ;;  %v1931_v29 = vld [vmem:[#allocation12 + $0x18] sm:$0xff] }
 0x49d   :  { %v1611_v49 = vadd.f32 %v4054_v56, %v1610_v28  ;;  %1982 = vmatpush.msrb.mxu3 %v1941_v16  ;;  %v1932_v16 = vld [vmem:[#allocation12 + $0x20] sm:$0xff] }
 0x49e   :  { %v4077_v42 = vadd.f32 %v1701_v25, %v1655_v48  ;;  %v3062_v25 = vpop.permute.xlu1 %3061  ;;  %v1842_v48 = vadd.f32 %v1841_v21, %v1833_v40  ;;  %v1965_v21 = vld [vmem:[#allocation12 + $0x128] sm:$0xff] }
 0x49f   :  { %v3063_v23 = vunpack.i.l.bf16 %v3062_v25  ;;  %1983 = vmatpush.msrb.mxu3 %v1940_v9  ;;  %v1954_v9 = vld [vmem:[#allocation12 + $0xd0] sm:$0xff] }
 0x4a0   :  { %v1824_v0 = vmul.f32 %v4077_v42, %v4077_v42 }
 0x4a1   :  { %v1799_v35 = vmul.f32 %v3063_v23, %v4077_v42  ;;  %1984 = vmatpush.msrb.mxu3 %v1939_v6 }
 0x4a3   :  { %v1657_v24 = vpop.f32.mrf.mxu2  ;;  %v1808_v46 = vadd.f32 %v1807_v44, %v1799_v35  ;;  %1985 = vmatpush.msrb.mxu3 %v1938_v39  ;;  %v1952_v44 = vld [vmem:[#allocation12 + $0xc0] sm:$0xff] }
 0x4a4   :  { %v1613_v52 = vpop.f32.mrf.mxu1  ;;  %v1658_v59 = vadd.f32 %v1657_v24, %v1611_v49  ;;  %v1834_v24 = vmul.f32 %v3063_v23, %v1824_v0  ;;  %v1710_v54 = vpop.f32.mrf.mxu0  ;;  %v1956_v0 = vld [vmem:[#allocation12 + $0xe0] sm:$0xff] }
 0x4a5   :  { %v1614_v61 = vadd.f32 %v4054_v56, %v1613_v52  ;;  %1986 = vmatpush.msrb.mxu3 %v1937_v58  ;;  %v1961_v58 = vld [vmem:[#allocation12 + $0x108] sm:$0xff] }
 0x4a6   :  { %v1705_v33 = vadd.f32 %v1704_v31, %v1658_v59  ;;  %v3064_v31 = vunpack.i.h.bf16 %v3062_v25  ;;  %v1973_v59 = vld [vmem:[#allocation12 + $0x168] sm:$0xff] }
 0x4a7   :  { %2064 = vmatpush.msrb.mxu2 %v1973_v59  ;;  %1987 = vmatpush.msrb.mxu3 %v1936_v2  ;;  %v1933_v25 = vld [vmem:[#allocation12 + $0x28] sm:$0xff]  ;;  %v1944_v2 = vld [vmem:[#allocation12 + $0x80] sm:$0xff] }
 0x4a8   :  { %v1825_v1 = vmul.f32 %v1705_v33, %v1705_v33  ;;  %v1800_v45 = vmul.f32 %v3064_v31, %v1705_v33  ;;  %v1958_v33 = vld [vmem:[#allocation12 + $0xf0] sm:$0xff]  ;;  %v1949_v59 = vld [vmem:[#allocation12 + $0xa8] sm:$0xff] }
 0x4a9   :  { %2065 = vmatpush.msrb.mxu2 %v1972_v63  ;;  %1988 = vmatpush.msrb.mxu3 %v1935_v51  ;;  %v1945_v63 = vld [vmem:[#allocation12 + $0x88] sm:$0xff] }
 0x4aa   :  { %v1835_v49 = vmul.f32 %v3064_v31, %v1825_v1  ;;  %v1809_v26 = vadd.f32 %v1808_v46, %v1800_v45  ;;  %2022 = vmatpush.msrb.mxu1 %v1958_v33  ;;  %v1966_v31 = vld [vmem:[#allocation12 + $0x130] sm:$0xff]  ;;  %v1964_v45 = vld [vmem:[#allocation12 + $0x120] sm:$0xff] }
 0x4ab   :  { %v1660_v53 = vpop.f32.mrf.mxu2  ;;  %2066 = vmatpush.msrb.mxu2 %v1971_v50  ;;  %1989 = vmatpush.msrb.mxu3 %v1934_v13  ;;  %v1950_v46 = vld [vmem:[#allocation12 + $0xb0] sm:$0xff]  ;;  %v3126_v13 = vld [vmem:[%s4344_s24] ss:$0 sm:$0xff] }
 0x4ac   :  { %v1661_v15 = vadd.f32 %v1660_v53, %v1614_v61  ;;  %v1616_v20 = vpop.f32.mrf.mxu1  ;;  %v1970_v53 = vld [vmem:[#allocation12 + $0x150] sm:$0xff]  ;;  %2023 = vmatpush.msrb.mxu1 %v1957_v14 }
 0x4ad   :  { %v1617_v8 = vadd.f32 %v4054_v56, %v1616_v20  ;;  %v1843_v56 = vadd.f32 %v1842_v48, %v1834_v24  ;;  %2067 = vmatpush.msrb.mxu2 %v1970_v53  ;;  %v1968_v20 = vld [vmem:[#allocation12 + $0x140] sm:$0xff]  ;;  %1990 = vmatpush.msrb.mxu3 %v1933_v25  ;;  %v1929_v24 = vld [vmem:[#allocation12 + $0x8] sm:$0xff] }
 0x4ae   :  { %v1708_v28 = vadd.f32 %v1707_v18, %v1661_v15  ;;  %v1969_v15 = vld [vmem:[#allocation12 + $0x148] sm:$0xff]  ;;  %2024 = vmatpush.msrb.mxu1 %v1956_v0 }
 0x4af   :  { %v1844_v57 = vadd.f32 %v1843_v56, %v1835_v49  ;;  %2068 = vmatpush.msrb.mxu2 %v1969_v15  ;;  %1991 = vmatpush.msrb.mxu3 %v1932_v16 }
 0x4b0   :  { %v1826_v47 = vmul.f32 %v1708_v28, %v1708_v28  ;;  %v1801_v3 = vmul.f32 %v3068_v38, %v1708_v28  ;;  %v1967_v28 = vld [vmem:[#allocation12 + $0x138] sm:$0xff]  ;;  %2025 = vmatpush.msrb.mxu1 %v1955_v27 }
 0x4b1   :  { %2069 = vmatpush.msrb.mxu2 %v1968_v20  ;;  %1992 = vmatpush.msrb.mxu3 %v1931_v29  ;;  %v3152_v29 = vld [vmem:[#allocation2 + $0x8] sm:$0xff] }
 0x4b2   :  { %v1836_v61 = vmul.f32 %v3068_v38, %v1826_v47  ;;  %v1810_v18 = vadd.f32 %v1809_v26, %v1801_v3  ;;  %2026 = vmatpush.msrb.mxu1 %v1954_v9  ;;  %v1928_v47 = vld [vmem:[#allocation12] sm:$0xff] }
 0x4b3   :  { %v1663_v52 = vpop.f32.mrf.mxu2  ;;  %2070 = vmatpush.msrb.mxu2 %v1967_v28  ;;  %1993 = vmatpush.msrb.mxu3 %v1930_v22  ;;  %v1948_v26 = vld [vmem:[#allocation12 + $0xa0] sm:$0xff] }
 0x4b4   :  { %v1664_v4 = vadd.f32 %v1663_v52, %v1617_v8  ;;  %v1845_v10 = vadd.f32 %v1844_v57, %v1836_v61  ;;  %2027 = vmatpush.msrb.mxu1 %v1953_v36  ;;  %v1951_v52 = vld [vmem:[#allocation12 + $0xb8] sm:$0xff]  ;;  %v1946_v57 = vld [vmem:[#allocation12 + $0x90] sm:$0xff] }
 0x4b5   :  { %2071 = vmatpush.msrb.mxu2 %v1966_v31  ;;  %1994 = vmatpush.msrb.mxu3 %v1929_v24  ;;  %v1947_v61 = vld [vmem:[#allocation12 + $0x98] sm:$0xff]  ;;  %v3154_v31 = vld [vmem:[#allocation2 + $0x28] sm:$0xff] }
 0x4b6   :  { %v1711_v62 = vadd.f32 %v1710_v54, %v1664_v4  ;;  %2028 = vmatpush.msrb.mxu1 %v1952_v44  ;;  %v1963_v54 = vld [vmem:[#allocation12 + $0x118] sm:$0xff]  ;;  %v1962_v4 = vld [vmem:[#allocation12 + $0x110] sm:$0xff] }
 0x4b7   :  { %2072 = vmatpush.msrb.mxu2 %v1965_v21  ;;  %1995 = vmatpush.msrb.mxu3 %v1928_v47  ;;  %v1919_v47 = vld [vmem:[#allocation2 + $0x3c] sm:$0xff] }
 0x4b8   :  { %v1802_v34 = vmul.f32 %v3069_v60, %v1711_v62  ;;  %v1827_v7 = vmul.f32 %v1711_v62, %v1711_v62  ;;  %2029 = vmatpush.msrb.mxu1 %v1951_v52  ;;  %1996 = vmatmul.f32.vlgmr.msrb.gmra.mxu3 %v4047_v37  ;;  %v1960_v62 = vld [vmem:[#allocation12 + $0x100] sm:$0xff] }
 0x4b9   :  { %2073 = vmatpush.msrb.mxu2 %v1964_v45 }
 0x4ba   :  { %v1811_v11 = vadd.f32 %v1810_v18, %v1802_v34  ;;  %v1837_v12 = vmul.f32 %v3069_v60, %v1827_v7  ;;  %2030 = vmatpush.msrb.mxu1 %v1950_v46 }
 0x4bb   :  { %2074 = vmatpush.msrb.mxu2 %v1963_v54 }
 0x4bc   :  { %v1812_v19 = vrot.slane %v1811_v11, 4  ;;  %v1846_v41 = vadd.f32 %v1845_v10, %v1837_v12  ;;  %2031 = vmatpush.msrb.mxu1 %v1949_v59 }
 0x4bd   :  { %2075 = vmatpush.msrb.mxu2 %v1962_v4 }
 0x4be   :  { %v1813_v5 = vadd.f32 %v1812_v19, %v1811_v11  ;;  %v1847_v43 = vrot.slane %v1846_v41, 4  ;;  %2032 = vmatpush.msrb.mxu1 %v1948_v26 }
 0x4bf   :  { %2076 = vmatpush.msrb.mxu2 %v1961_v58 }
 0x4c0   :  { %v1814_v23 = vrot.slane %v1813_v5, 2  ;;  %v1848_v32 = vadd.f32 %v1847_v43, %v1846_v41  ;;  %2033 = vmatpush.msrb.mxu1 %v1947_v61  ;;  %v4101_v61 = vld [vmem:[%s4346_s28] ss:$0 sm:$0xff] }
 0x4c1   :  { %2077 = vmatpush.msrb.mxu2 %v1960_v62 }
 0x4c2   :  { %v1815_v40 = vadd.f32 %v1814_v23, %v1813_v5  ;;  %v1849_v1 = vrot.slane %v1848_v32, 2  ;;  %2034 = vmatpush.msrb.mxu1 %v1946_v57  ;;  %v3127_v5 = vld [vmem:[%s4345_s6] ss:$0 sm:$0xff] }
 0x4c4   :  { %v1816_v35 = vrot.slane %v1815_v40, 1  ;;  %v1850_v8 = vadd.f32 %v1849_v1, %v1848_v32  ;;  %2035 = vmatpush.msrb.mxu1 %v1945_v63  ;;  %v3153_v1 = vld [vmem:[#allocation2 + $0x10] sm:$0xff] }
 0x4c6   :  { %v1817_v6 = vadd.f32 %v1816_v35, %v1815_v40  ;;  %v1851_v38 = vrot.slane %v1850_v8, 1  ;;  %2036 = vmatpush.msrb.mxu1 %v1944_v2  ;;  %v3155_v35 = vld [vmem:[#allocation2 + $0x30] sm:$0xff] }
 0x4c8   :  { %v1852_v48 = vadd.f32 %v1851_v38, %v1850_v8  ;;  %v1853_v49 = vmul.f32 0.020833334, %v1817_v6  ;;  %v1915_v6 = vld [vmem:[#allocation2 + $0x1c] sm:$0xff] }
 0x4ca   :  { %v1854_v39 = vmul.f32 0.020833334, %v1852_v48  ;;  %v1855_v3 = vmul.f32 %v1853_v49, %v1853_v49  ;;  %v1857_v11 = vsub.f32 %v4063_v30, %v1853_v49  ;;  %v1858_v12 = vsub.f32 %v4061_v17, %v1853_v49 }
 0x4cb   :  { %v1859_v33 = vsub.f32 %v4073_v55, %v1853_v49  ;;  %v1860_v53 = vsub.f32 %v4077_v42, %v1853_v49 }
 0x4cc   :  { %v1856_v56 = vsub.f32 %v1854_v39, %v1855_v3 }
 0x4ce   :  { %v1861_v60 = vadd.f32 1e-05, %v1856_v56 }
 0x4d0   :  { %3142 = vrsqrt.f32 %v1861_v60  ;;  %vm1868_vm0 = vweird.f32 %v1861_v60 }
 0x4d6   :  { %v3143_v18 = vpop.eup %3142 }
 0x4d7   :  { %v1863_v34 = vmul.f32 %v3143_v18, %v1861_v60  ;;  %vm1869_vm15 = vweird.f32 %v3143_v18 }
 0x4d8   :  { %vm1870_vm1 = vmor %vm1868_vm0, %vm1869_vm15 }
 0x4d9   :  { %v1864_v7 = vmul.f32 %v3143_v18, %v1863_v34 }
 0x4db   :  { %v1865_v50 = vmul.f32 0.5, %v1864_v7 }
 0x4dd   :  { %v1866_v51 = vsub.f32 1.5, %v1865_v50 }
 0x4df   :  { %v1867_v10 = vmul.f32 %v3143_v18, %v1866_v51 }
 0x4e1   :  { %v1871_v19 = vsel %vm1870_vm1, %v3143_v18, %v1867_v10 }
 0x4e2   :  { %v1872_v41 = vmul.f32 %v1871_v19, %v1857_v11  ;;  %v1873_v14 = vmul.f32 %v1871_v19, %v1858_v12  ;;  %v1874_v15 = vmul.f32 %v1871_v19, %v1859_v33  ;;  %v1875_v25 = vmul.f32 %v1871_v19, %v1860_v53 }
 0x4e4   :  { %v1880_v43 = vmul.f32 %v3126_v13, %v1872_v41  ;;  %v1881_v0 = vmul.f32 %v3126_v13, %v1873_v14  ;;  %v1882_v20 = vmul.f32 %v3126_v13, %v1874_v15  ;;  %v1883_v16 = vmul.f32 %v3126_v13, %v1875_v25  ;;  %v3072_v25 = vpop.permute.xlu0 %3071 }
 0x4e6   :  { %v1888_v23 = vadd.f32 %v3127_v5, %v1880_v43  ;;  %v1889_v30 = vadd.f32 %v3127_v5, %v1881_v0  ;;  %v1890_v32 = vadd.f32 %v3127_v5, %v1882_v20  ;;  %v1891_v17 = vadd.f32 %v3127_v5, %v1883_v16  ;;  %v2321_v20 = vld [vmem:[#allocation13 + $0x78] sm:$0xff] }
 0x4e7   :  { %v3074_v16 = vunpack.i.h.bf16 %v3072_v25  ;;  %2358 = vmatpush.msra.mxu0 %v2321_v20 }
 0x4e8   :  { %v1892_v27 = vmax.f32 %v1888_v23, 0.0  ;;  %v1893_v55 = vmax.f32 %v1889_v30, 0.0  ;;  %v1894_v28 = vmax.f32 %v1890_v32, 0.0  ;;  %v1895_v42 = vmax.f32 %v1891_v17, 0.0  ;;  %v3077_v23 = vpop.permute.xlu1 %3076 }
 0x4ea   :  { %v1896_v40 = vadd.f32 %v3152_v29, %v1892_v27  ;;  %v1897_v9 = vadd.f32 %v3153_v1, %v1893_v55  ;;  %v1898_v22 = vadd.f32 %v3154_v31, %v1894_v28  ;;  %v1899_v8 = vadd.f32 %v3155_v35, %v1895_v42  ;;  %v2320_v27 = vld [vmem:[#allocation13 + $0x70] sm:$0xff]  ;;  %v2319_v35 = vld [vmem:[#allocation13 + $0x68] sm:$0xff] }
 0x4eb   :  { %v3073_v55 = vunpack.i.l.bf16 %v3072_v25  ;;  %v3078_v28 = vunpack.i.l.bf16 %v3077_v23  ;;  %2359 = vmatpush.msra.mxu0 %v2320_v27  ;;  %v2337_v27 = vld [vmem:[#allocation13 + $0xf8] sm:$0xff] }
 0x4ec   :  { %1900 = vst [vmem:[#allocation2 + $0x8] sm:$0xff] %v1896_v40  ;;  %1999 = vmatmul.f32.gmra.mxu3 %v1896_v40  ;;  %2078 = vmatmul.f32.vlgmr.msrb.gmra.mxu2 %v1896_v40 }
 0x4ed   :  { %1901 = vst [vmem:[#allocation2 + $0x10] sm:$0xff] %v1897_v9  ;;  %2360 = vmatpush.msra.mxu0 %v2319_v35  ;;  %2405 = vmatpush.msra.mxu3 %v2337_v27  ;;  %v2326_v27 = vld [vmem:[#allocation13 + $0xa0] sm:$0xff] }
 0x4ee   :  { %1902 = vst [vmem:[#allocation2 + $0x28] sm:$0xff] %v1898_v22 }
 0x4ef   :  { %1903 = vst [vmem:[#allocation2 + $0x30] sm:$0xff] %v1899_v8 }
 0x4f3   :  { %v1912_v36 = vld [vmem:[#allocation2 + $0x4] sm:$0xff] }
 0x4f4   :  { %2037 = vmatmul.f32.vlgmr.msrb.gmra.mxu1 %v1912_v36  ;;  %2002 = vmatmul.f32.gmra.mxu3 %v1897_v9  ;;  %v1913_v21 = vld [vmem:[#allocation2 + $0xc] sm:$0xff]  ;;  %v1914_v24 = vld [vmem:[#allocation2 + $0x14] sm:$0xff] }
 0x4f5   :  { %2081 = vmatmul.f32.gmra.mxu2 %v1897_v9  ;;  %v1916_v38 = vld [vmem:[#allocation2 + $0x24] sm:$0xff] }
 0x4f6   :  { %v1917_v44 = vld [vmem:[#allocation2 + $0x2c] sm:$0xff]  ;;  %v1918_v45 = vld [vmem:[#allocation2 + $0x34] sm:$0xff] }
 0x4fc   :  { %2040 = vmatmul.f32.gmra.mxu1 %v1913_v21  ;;  %2005 = vmatmul.f32.gmra.mxu3 %v4047_v37 }
 0x4fd   :  { %2084 = vmatmul.f32.gmra.mxu2 %v4047_v37 }
 0x504   :  { %2043 = vmatmul.f32.gmra.mxu1 %v1914_v24  ;;  %2008 = vmatmul.f32.gmra.mxu3 %v4047_v37 }
 0x505   :  { %2087 = vmatmul.f32.gmra.mxu2 %v4047_v37 }
 0x50c   :  { %2046 = vmatmul.f32.gmra.mxu1 %v1915_v6  ;;  %2011 = vmatmul.f32.gmra.mxu3 %v1898_v22  ;;  %v3082_v6 = vpop.permute.xlu2 %3081 }
 0x50d   :  { %2090 = vmatmul.f32.gmra.mxu2 %v1898_v22 }
 0x514   :  { %2049 = vmatmul.f32.gmra.mxu1 %v1916_v38  ;;  %2014 = vmatmul.f32.gmra.mxu3 %v1899_v8 }
 0x515   :  { %2093 = vmatmul.f32.gmra.mxu2 %v1899_v8  ;;  %v3079_v8 = vunpack.i.h.bf16 %v3077_v23 }
 0x51c   :  { %2052 = vmatmul.f32.gmra.mxu1 %v1917_v44  ;;  %2017 = vmatmul.f32.gmra.mxu3 %v4047_v37 }
 0x51d   :  { %2096 = vmatmul.f32.gmra.mxu2 %v4047_v37 }
 0x524   :  { %2055 = vmatmul.f32.gmra.mxu1 %v1918_v45 }
 0x525   :  { %2099 = vmatmul.f32.gmra.mxu2 %v4047_v37 }
 0x52c   :  { %2058 = vmatmul.f32.gmra.mxu1 %v1919_v47 }
 0x53b   :  { %v1997_v48 = vpop.f32.mrf.mxu3 }
 0x53c   :  { %v1998_v63 = vadd.f32 %v4101_v61, %v1997_v48  ;;  %v2318_v48 = vld [vmem:[#allocation13 + $0x60] sm:$0xff] }
 0x53d   :  { %2361 = vmatpush.msra.mxu0 %v2318_v48  ;;  %v4169_v48 = vld [vmem:[#allocation13 + $0x140] sm:$0xff] }
 0x56f   :  { %v2000_v49 = vpop.f32.mrf.mxu3  ;;  %v2079_v52 = vpop.f32.mrf.mxu2 }
 0x570   :  { %v2001_v2 = vadd.f32 %v4101_v61, %v2000_v49  ;;  %v3083_v49 = vunpack.i.l.bf16 %v3082_v6 }
 0x571   :  { %v2038_v54 = vpop.f32.mrf.mxu1 }
 0x572   :  { %v2039_v50 = vadd.f32 %v2038_v54, %v1998_v63 }
 0x574   :  { %v4110_v13 = vadd.f32 %v2079_v52, %v2039_v50 }
 0x576   :  { %v2188_v30 = vmul.f32 %v4110_v13, %v4110_v13  ;;  %v2167_v36 = vmul.f32 %v3073_v55, %v4110_v13 }
 0x577   :  { %v2003_v39 = vpop.f32.mrf.mxu3 }
 0x578   :  { %v2082_v3 = vpop.f32.mrf.mxu2  ;;  %v2004_v34 = vadd.f32 %v4101_v61, %v2003_v39  ;;  %v2196_v38 = vmul.f32 %v3073_v55, %v2188_v30  ;;  %v2313_v55 = vld [vmem:[#allocation13 + $0x38] sm:$0xff] }
 0x579   :  { %v2041_v46 = vpop.f32.mrf.mxu1 }
 0x57a   :  { %v2042_v18 = vadd.f32 %v2041_v46, %v2001_v2  ;;  %v2316_v2 = vld [vmem:[#allocation13 + $0x50] sm:$0xff] }
 0x57c   :  { %v4108_v12 = vadd.f32 %v2082_v3, %v2042_v18  ;;  %v4141_v18 = vld [vmem:[#allocation13 + $0x170] sm:$0xff] }
 0x57e   :  { %v2189_v5 = vmul.f32 %v4108_v12, %v4108_v12  ;;  %v2168_v42 = vmul.f32 %v3074_v16, %v4108_v12 }
 0x57f   :  { %v2006_v4 = vpop.f32.mrf.mxu3 }
 0x580   :  { %v2085_v56 = vpop.f32.mrf.mxu2  ;;  %v2007_v7 = vadd.f32 %v4101_v61, %v2006_v4  ;;  %v2197_v1 = vmul.f32 %v3074_v16, %v2189_v5  ;;  %v2175_v52 = vadd.f32 %v2168_v42, %v2167_v36 }
 0x581   :  { %v2044_v59 = vpop.f32.mrf.mxu1 }
 0x582   :  { %v2045_v51 = vadd.f32 %v2044_v59, %v2004_v34  ;;  %v2204_v3 = vadd.f32 %v2197_v1, %v2196_v38  ;;  %v4135_v59 = vld [vmem:[#allocation13 + $0x178] sm:$0xff]  ;;  %v2336_v1 = vld [vmem:[#allocation13 + $0xf0] sm:$0xff] }
 0x583   :  { %2452 = vmatpush.msra.mxu1 %v4135_v59  ;;  %2900 = vmatpush.msra.mxu2 %v4135_v59 }
 0x584   :  { %v4112_v19 = vadd.f32 %v2085_v56, %v2045_v51  ;;  %v2317_v56 = vld [vmem:[#allocation13 + $0x58] sm:$0xff]  ;;  %2406 = vmatpush.msra.mxu3 %v2336_v1  ;;  %v2323_v1 = vld [vmem:[#allocation13 + $0x88] sm:$0xff] }
 0x585   :  { %2362 = vmatpush.msra.mxu0 %v2317_v56  ;;  %2453 = vmatpush.msra.mxu1 %v4141_v18 }
 0x586   :  { %v2190_v32 = vmul.f32 %v4112_v19, %v4112_v19  ;;  %v2169_v21 = vmul.f32 %v3078_v28, %v4112_v19  ;;  %2902 = vmatpush.msra.mxu2 %v4141_v18 }
 0x587   :  { %v2009_v58 = vpop.f32.mrf.mxu3  ;;  %2363 = vmatpush.msra.mxu0 %v2316_v2 }
 0x588   :  { %v2088_v60 = vpop.f32.mrf.mxu2  ;;  %v2010_v10 = vadd.f32 %v4101_v61, %v2009_v58  ;;  %v2198_v44 = vmul.f32 %v3078_v28, %v2190_v32  ;;  %v3084_v58 = vunpack.i.h.bf16 %v3082_v6  ;;  %v4157_v28 = vld [vmem:[#allocation13 + $0x158] sm:$0xff]  ;;  %v4165_v6 = vld [vmem:[#allocation13 + $0x148] sm:$0xff] }
 0x589   :  { %v2047_v26 = vpop.f32.mrf.mxu1 }
 0x58a   :  { %v2048_v33 = vadd.f32 %v2047_v26, %v2007_v7 }
 0x58c   :  { %v2089_v43 = vadd.f32 %v2088_v60, %v2048_v33  ;;  %v2176_v60 = vadd.f32 %v2175_v52, %v2169_v21  ;;  %v2335_v21 = vld [vmem:[#allocation13 + $0xe8] sm:$0xff] }
 0x58d   :  { %2407 = vmatpush.msra.mxu3 %v2335_v21 }
 0x58e   :  { %v2191_v9 = vmul.f32 %v2089_v43, %v2089_v43  ;;  %v2170_v54 = vmul.f32 %v3079_v8, %v2089_v43  ;;  %v2314_v43 = vld [vmem:[#allocation13 + $0x40] sm:$0xff] }
 0x58f   :  { %v2012_v57 = vpop.f32.mrf.mxu3 }
 0x590   :  { %v2091_v62 = vpop.f32.mrf.mxu2  ;;  %v2013_v14 = vadd.f32 %v4101_v61, %v2012_v57  ;;  %v2199_v46 = vmul.f32 %v3079_v8, %v2191_v9  ;;  %v2205_v57 = vadd.f32 %v2204_v3, %v2198_v44  ;;  %v2177_v7 = vadd.f32 %v2176_v60, %v2170_v54  ;;  %v2312_v9 = vld [vmem:[#allocation13 + $0x30] sm:$0xff]  ;;  %v2333_v54 = vld [vmem:[#allocation13 + $0xd8] sm:$0xff] }
 0x591   :  { %v2050_v37 = vpop.f32.mrf.mxu1  ;;  %v2309_v3 = vld [vmem:[#allocation13 + $0x18] sm:$0xff]  ;;  %v2308_v60 = vld [vmem:[#allocation13 + $0x10] sm:$0xff] }
 0x592   :  { %v2051_v41 = vadd.f32 %v2050_v37, %v2010_v10  ;;  %v3087_v37 = vpop.permute.xlu0 %3086 }
 0x593   :  { %v3088_v34 = vunpack.i.l.bf16 %v3087_v37  ;;  %v3089_v20 = vunpack.i.h.bf16 %v3087_v37 }
 0x594   :  { %v4121_v17 = vadd.f32 %v2091_v62, %v2051_v41  ;;  %v4148_v41 = vld [vmem:[#allocation13 + $0x168] sm:$0xff] }
 0x595   :  { %2454 = vmatpush.msra.mxu1 %v4148_v41  ;;  %2904 = vmatpush.msra.mxu2 %v4148_v41 }
 0x596   :  { %v2192_v45 = vmul.f32 %v4121_v17, %v4121_v17  ;;  %v2171_v26 = vmul.f32 %v3083_v49, %v4121_v17 }
 0x597   :  { %v2015_v15 = vpop.f32.mrf.mxu3 }
 0x598   :  { %v2094_v11 = vpop.f32.mrf.mxu2  ;;  %v2016_v29 = vadd.f32 %v4101_v61, %v2015_v15  ;;  %v2200_v63 = vmul.f32 %v3083_v49, %v2192_v45  ;;  %v2334_v45 = vld [vmem:[#allocation13 + $0xe0] sm:$0xff] }
 0x599   :  { %v2053_v53 = vpop.f32.mrf.mxu1  ;;  %2408 = vmatpush.msra.mxu3 %v2334_v45  ;;  %v3129_v45 = vld [vmem:[%s4347_s1] ss:$0 sm:$0xff] }
 0x59a   :  { %v2054_v0 = vadd.f32 %v2053_v53, %v2013_v14  ;;  %v2315_v53 = vld [vmem:[#allocation13 + $0x48] sm:$0xff]  ;;  %v2178_v14 = vadd.f32 %v2177_v7, %v2171_v26  ;;  %v4177_v26 = vld [vmem:[#allocation13 + $0x130] sm:$0xff] }
 0x59b   :  { %2364 = vmatpush.msra.mxu0 %v2315_v53  ;;  %2409 = vmatpush.msra.mxu3 %v2333_v54  ;;  %v4181_v7 = vld [vmem:[#allocation13 + $0x128] sm:$0xff]  ;;  %v4189_v53 = vld [vmem:[#allocation13 + $0x118] sm:$0xff]  ;;  %v3130_v54 = vld [vmem:[%s4348_s2] ss:$0 sm:$0xff] }
 0x59c   :  { %v4125_v31 = vadd.f32 %v2094_v11, %v2054_v0  ;;  %v4153_v0 = vld [vmem:[#allocation13 + $0x160] sm:$0xff] }
 0x59d   :  { %2365 = vmatpush.msra.mxu0 %v2314_v43  ;;  %2455 = vmatpush.msra.mxu1 %v4153_v0  ;;  %v4198_v43 = vld [vmem:[#allocation13 + $0x110] sm:$0xff] }
 0x59e   :  { %v2193_v4 = vmul.f32 %v4125_v31, %v4125_v31  ;;  %v2172_v50 = vmul.f32 %v3084_v58, %v4125_v31  ;;  %2906 = vmatpush.msra.mxu2 %v4153_v0 }
 0x59f   :  { %v2018_v47 = vpop.f32.mrf.mxu3  ;;  %2366 = vmatpush.msra.mxu0 %v2313_v55  ;;  %2456 = vmatpush.msra.mxu1 %v4157_v28  ;;  %v4207_v55 = vld [vmem:[#allocation13 + $0x100] sm:$0xff] }
 0x5a0   :  { %v2097_v40 = vpop.f32.mrf.mxu2  ;;  %v2019_v62 = vadd.f32 %v4101_v61, %v2018_v47  ;;  %v2206_v61 = vadd.f32 %v2205_v57, %v2199_v46  ;;  %v2201_v10 = vmul.f32 %v3084_v58, %v2193_v4  ;;  %v2179_v16 = vadd.f32 %v2178_v14, %v2172_v50  ;;  %2908 = vmatpush.msra.mxu2 %v4157_v28  ;;  %v2310_v47 = vld [vmem:[#allocation13 + $0x20] sm:$0xff]  ;;  %v4173_v46 = vld [vmem:[#allocation13 + $0x138] sm:$0xff]  ;;  %v2332_v58 = vld [vmem:[#allocation13 + $0xd0] sm:$0xff] }
 0x5a1   :  { %v2056_v22 = vpop.f32.mrf.mxu1  ;;  %2367 = vmatpush.msra.mxu0 %v2312_v9  ;;  %2410 = vmatpush.msra.mxu3 %v2332_v58  ;;  %v2331_v57 = vld [vmem:[#allocation13 + $0xc8] sm:$0xff]  ;;  %v2330_v50 = vld [vmem:[#allocation13 + $0xc0] sm:$0xff] }
 0x5a2   :  { %v2057_v24 = vadd.f32 %v2056_v22, %v2016_v29  ;;  %v2207_v5 = vadd.f32 %v2206_v61, %v2200_v63  ;;  %v4161_v22 = vld [vmem:[#allocation13 + $0x150] sm:$0xff]  ;;  %v2307_v63 = vld [vmem:[#allocation13 + $0x8] sm:$0xff]  ;;  %v2322_v9 = vld [vmem:[#allocation13 + $0x80] sm:$0xff] }
 0x5a3   :  { %2457 = vmatpush.msra.mxu1 %v4161_v22  ;;  %2910 = vmatpush.msra.mxu2 %v4161_v22 }
 0x5a4   :  { %v4131_v39 = vadd.f32 %v2097_v40, %v2057_v24  ;;  %v2208_v32 = vadd.f32 %v2207_v5, %v2201_v10  ;;  %v2311_v24 = vld [vmem:[#allocation13 + $0x28] sm:$0xff]  ;;  %2411 = vmatpush.msra.mxu3 %v2331_v57  ;;  %v2328_v5 = vld [vmem:[#allocation13 + $0xb0] sm:$0xff] }
 0x5a5   :  { %2368 = vmatpush.msra.mxu0 %v2311_v24  ;;  %2458 = vmatpush.msra.mxu1 %v4165_v6 }
 0x5a6   :  { %v2194_v51 = vmul.f32 %v4131_v39, %v4131_v39  ;;  %v2173_v15 = vmul.f32 %v3088_v34, %v4131_v39  ;;  %2912 = vmatpush.msra.mxu2 %v4165_v6  ;;  %2412 = vmatpush.msra.mxu3 %v2330_v50 }
 0x5a7   :  { %2369 = vmatpush.msra.mxu0 %v2310_v47  ;;  %2459 = vmatpush.msra.mxu1 %v4169_v48 }
 0x5a8   :  { %v2100_v33 = vpop.f32.mrf.mxu2  ;;  %v2202_v23 = vmul.f32 %v3088_v34, %v2194_v51  ;;  %v2180_v29 = vadd.f32 %v2179_v16, %v2173_v15  ;;  %2914 = vmatpush.msra.mxu2 %v4169_v48  ;;  %v2306_v51 = vld [vmem:[#allocation13] sm:$0xff] }
 0x5a9   :  { %v2059_v11 = vpop.f32.mrf.mxu1  ;;  %2370 = vmatpush.msra.mxu0 %v2309_v3  ;;  %2460 = vmatpush.msra.mxu1 %v4173_v46 }
 0x5aa   :  { %v2060_v25 = vadd.f32 %v2059_v11, %v2019_v62  ;;  %v2209_v36 = vadd.f32 %v2208_v32, %v2202_v23  ;;  %2916 = vmatpush.msra.mxu2 %v4173_v46  ;;  %v4185_v11 = vld [vmem:[#allocation13 + $0x120] sm:$0xff]  ;;  %v2327_v23 = vld [vmem:[#allocation13 + $0xa8] sm:$0xff] }
 0x5ab   :  { %2371 = vmatpush.msra.mxu0 %v2308_v60  ;;  %2461 = vmatpush.msra.mxu1 %v4177_v26 }
 0x5ac   :  { %v2101_v30 = vadd.f32 %v2100_v33, %v2060_v25  ;;  %2918 = vmatpush.msra.mxu2 %v4177_v26  ;;  %v2329_v33 = vld [vmem:[#allocation13 + $0xb8] sm:$0xff]  ;;  %v4193_v25 = vld [vmem:[#allocation2] sm:$0xff] }
 0x5ad   :  { %2372 = vmatpush.msra.mxu0 %v2307_v63  ;;  %2462 = vmatpush.msra.mxu1 %v4181_v7 }
 0x5ae   :  { %v2174_v42 = vmul.f32 %v3089_v20, %v2101_v30  ;;  %v2195_v40 = vmul.f32 %v2101_v30, %v2101_v30  ;;  %2920 = vmatpush.msra.mxu2 %v4181_v7  ;;  %2413 = vmatpush.msra.mxu3 %v2329_v33  ;;  %v4203_v30 = vld [vmem:[#allocation13 + $0x108] sm:$0xff] }
 0x5af   :  { %2373 = vmatpush.msra.mxu0 %v2306_v51  ;;  %2463 = vmatpush.msra.mxu1 %v4185_v11 }
 0x5b0   :  { %v2181_v35 = vadd.f32 %v2180_v29, %v2174_v42  ;;  %v2203_v8 = vmul.f32 %v3089_v20, %v2195_v40  ;;  %2922 = vmatpush.msra.mxu2 %v4185_v11  ;;  %2374 = vmatmul.f32.vlgmr.msra.gmra.mxu0 %v4193_v25  ;;  %v2325_v29 = vld [vmem:[#allocation13 + $0x98] sm:$0xff]  ;;  %v2324_v40 = vld [vmem:[#allocation13 + $0x90] sm:$0xff] }
 0x5b1   :  { %2464 = vmatpush.msra.mxu1 %v4189_v53  ;;  %2414 = vmatpush.msra.mxu3 %v2328_v5 }
 0x5b2   :  { %v2182_v38 = vrot.slane %v2181_v35, 4  ;;  %v2210_v44 = vadd.f32 %v2209_v36, %v2203_v8  ;;  %2924 = vmatpush.msra.mxu2 %v4189_v53 }
 0x5b3   :  { %2465 = vmatpush.msra.mxu1 %v4198_v43  ;;  %2415 = vmatpush.msra.mxu3 %v2327_v23 }
 0x5b4   :  { %v2183_v49 = vadd.f32 %v2182_v38, %v2181_v35  ;;  %v2211_v52 = vrot.slane %v2210_v44, 4  ;;  %2926 = vmatpush.msra.mxu2 %v4198_v43 }
 0x5b5   :  { %2466 = vmatpush.msra.mxu1 %v4203_v30  ;;  %2416 = vmatpush.msra.mxu3 %v2326_v27 }
 0x5b6   :  { %v2184_v4 = vrot.slane %v2183_v49, 2  ;;  %v2212_v56 = vadd.f32 %v2211_v52, %v2210_v44  ;;  %2928 = vmatpush.msra.mxu2 %v4203_v30 }
 0x5b7   :  { %2467 = vmatpush.msra.mxu1 %v4207_v55  ;;  %2417 = vmatpush.msra.mxu3 %v2325_v29 }
 0x5b8   :  { %v2185_v62 = vadd.f32 %v2184_v4, %v2183_v49  ;;  %v2213_v37 = vrot.slane %v2212_v56, 2  ;;  %2930 = vmatpush.msra.mxu2 %v4207_v55 }
 0x5b9   :  { %2418 = vmatpush.msra.mxu3 %v2324_v40 }
 0x5ba   :  { %v2186_v2 = vrot.slane %v2185_v62, 1  ;;  %v2214_v34 = vadd.f32 %v2213_v37, %v2212_v56 }
 0x5bb   :  { %2419 = vmatpush.msra.mxu3 %v2323_v1 }
 0x5bc   :  { %v2187_v61 = vadd.f32 %v2186_v2, %v2185_v62  ;;  %v2215_v10 = vrot.slane %v2214_v34, 1 }
 0x5bd   :  { %2420 = vmatpush.msra.mxu3 %v2322_v9 }
 0x5be   :  { %v2216_v14 = vadd.f32 %v2215_v10, %v2214_v34  ;;  %v4191_v15 = vmul.f32 0.020833334, %v2187_v61  ;;  %v2290_v10 = vld [vmem:[#allocation3 + $0x24] sm:$0xff] }
 0x5bf   :  { %2901 = vmatpush.msrb.mxu3 %v4135_v59 }
 0x5c0   :  { %v2218_v20 = vmul.f32 0.020833334, %v2216_v14  ;;  %v2219_v16 = vmul.f32 %v4191_v15, %v4191_v15  ;;  %v2221_v44 = vsub.f32 %v4110_v13, %v4191_v15  ;;  %v2222_v59 = vsub.f32 %v4108_v12, %v4191_v15 }
 0x5c1   :  { %2903 = vmatpush.msrb.mxu3 %v4141_v18  ;;  %v2223_v18 = vsub.f32 %v4112_v19, %v4191_v15 }
 0x5c2   :  { %v2220_v32 = vsub.f32 %v2218_v20, %v2219_v16 }
 0x5c3   :  { %2905 = vmatpush.msrb.mxu3 %v4148_v41  ;;  %v2224_v41 = vsub.f32 %v4121_v17, %v4191_v15 }
 0x5c4   :  { %v2227_v42 = vadd.f32 1e-05, %v2220_v32 }
 0x5c5   :  { %2907 = vmatpush.msrb.mxu3 %v4153_v0  ;;  %v2225_v0 = vsub.f32 %v4125_v31, %v4191_v15 }
 0x5c6   :  { %3144 = vrsqrt.f32 %v2227_v42  ;;  %vm2234_vm3 = vweird.f32 %v2227_v42 }
 0x5c7   :  { %2909 = vmatpush.msrb.mxu3 %v4157_v28  ;;  %v2226_v28 = vsub.f32 %v4131_v39, %v4191_v15  ;;  %v2295_v15 = vld [vmem:[#allocation3 + $0x4c] sm:$0xff] }
 0x5c9   :  { %2911 = vmatpush.msrb.mxu3 %v4161_v22 }
 0x5cb   :  { %2913 = vmatpush.msrb.mxu3 %v4165_v6 }
 0x5cc   :  { %v3145_v35 = vpop.eup %3144 }
 0x5cd   :  { %v2229_v8 = vmul.f32 %v3145_v35, %v2227_v42  ;;  %vm2235_vm2 = vweird.f32 %v3145_v35  ;;  %2915 = vmatpush.msrb.mxu3 %v4169_v48 }
 0x5ce   :  { %vm2236_vm4 = vmor %vm2234_vm3, %vm2235_vm2 }
 0x5cf   :  { %v2230_v36 = vmul.f32 %v3145_v35, %v2229_v8  ;;  %2917 = vmatpush.msrb.mxu3 %v4173_v46 }
 0x5d1   :  { %v2231_v21 = vmul.f32 0.5, %v2230_v36  ;;  %2919 = vmatpush.msrb.mxu3 %v4177_v26 }
 0x5d3   :  { %v2232_v24 = vsub.f32 1.5, %v2231_v21  ;;  %2921 = vmatpush.msrb.mxu3 %v4181_v7  ;;  %v4250_v21 = vld [vmem:[%s4349_s7] ss:$0 sm:$0xff] }
 0x5d5   :  { %v2233_v38 = vmul.f32 %v3145_v35, %v2232_v24  ;;  %2923 = vmatpush.msrb.mxu3 %v4185_v11 }
 0x5d7   :  { %v2237_v47 = vsel %vm2236_vm4, %v3145_v35, %v2233_v38  ;;  %2925 = vmatpush.msrb.mxu3 %v4189_v53 }
 0x5d8   :  { %v2238_v13 = vmul.f32 %v2237_v47, %v2221_v44  ;;  %v2239_v49 = vmul.f32 %v2237_v47, %v2222_v59  ;;  %v2240_v12 = vmul.f32 %v2237_v47, %v2223_v18  ;;  %v2241_v52 = vmul.f32 %v2237_v47, %v2224_v41 }
 0x5d9   :  { %v2242_v19 = vmul.f32 %v2237_v47, %v2225_v0  ;;  %v2243_v3 = vmul.f32 %v2237_v47, %v2226_v28  ;;  %2927 = vmatpush.msrb.mxu3 %v4198_v43 }
 0x5da   :  { %v2248_v17 = vmul.f32 %v3129_v45, %v2238_v13  ;;  %v2249_v4 = vmul.f32 %v3129_v45, %v2239_v49  ;;  %v2250_v56 = vmul.f32 %v3129_v45, %v2240_v12  ;;  %v2251_v58 = vmul.f32 %v3129_v45, %v2241_v52 }
 0x5db   :  { %v2252_v31 = vmul.f32 %v3129_v45, %v2242_v19  ;;  %v2253_v60 = vmul.f32 %v3129_v45, %v2243_v3  ;;  %2929 = vmatpush.msrb.mxu3 %v4203_v30  ;;  %v3092_v19 = vpop.permute.xlu1 %3091 }
 0x5dc   :  { %v2258_v39 = vadd.f32 %v3130_v54, %v2248_v17  ;;  %v2259_v62 = vadd.f32 %v3130_v54, %v2249_v4  ;;  %v2260_v22 = vadd.f32 %v3130_v54, %v2250_v56  ;;  %v2261_v37 = vadd.f32 %v3130_v54, %v2251_v58 }
 0x5dd   :  { %v2262_v57 = vadd.f32 %v3130_v54, %v2252_v31  ;;  %v2263_v63 = vadd.f32 %v3130_v54, %v2253_v60  ;;  %2931 = vmatpush.msrb.mxu3 %v4207_v55 }
 0x5de   :  { %v2264_v2 = vmax.f32 %v2258_v39, 0.0  ;;  %v2265_v34 = vmax.f32 %v2259_v62, 0.0  ;;  %v2266_v50 = vmax.f32 %v2260_v22, 0.0  ;;  %v2267_v6 = vmax.f32 %v2261_v37, 0.0  ;;  %v3097_v62 = vpop.permute.xlu2 %3096 }
 0x5df   :  { %v2269_v51 = vmax.f32 %v2263_v63, 0.0  ;;  %v2268_v61 = vmax.f32 %v2262_v57, 0.0  ;;  %v3094_v39 = vunpack.i.h.bf16 %v3092_v19  ;;  %v3093_v37 = vunpack.i.l.bf16 %v3092_v19 }
 0x5e0   :  { %2270 = vst [vmem:[#allocation3 + $0x8] sm:$0xff] %v2264_v2  ;;  %2377 = vmatmul.f32.gmra.mxu0 %v2264_v2  ;;  %2468 = vmatmul.f32.vlgmr.msra.gmra.mxu1 %v2264_v2 }
 0x5e1   :  { %2271 = vst [vmem:[#allocation3 + $0x10] sm:$0xff] %v2265_v34  ;;  %2489 = vmatmul.f32.vlgmr.msra.gmra.mxu2 %v2269_v51 }
 0x5e2   :  { %2272 = vst [vmem:[#allocation3 + $0x18] sm:$0xff] %v2266_v50 }
 0x5e3   :  { %2273 = vst [vmem:[#allocation3 + $0x30] sm:$0xff] %v2267_v6 }
 0x5e4   :  { %2274 = vst [vmem:[#allocation3 + $0x38] sm:$0xff] %v2268_v61 }
 0x5e5   :  { %2275 = vst [vmem:[#allocation3 + $0x40] sm:$0xff] %v2269_v51 }
 0x5e7   :  { %v2286_v48 = vld [vmem:[#allocation3 + $0x4] sm:$0xff] }
 0x5e8   :  { %2421 = vmatmul.f32.vlgmr.msra.gmra.mxu3 %v2286_v48  ;;  %2380 = vmatmul.f32.gmra.mxu0 %v2265_v34  ;;  %v2287_v46 = vld [vmem:[#allocation3 + $0xc] sm:$0xff] }
 0x5e9   :  { %2471 = vmatmul.f32.gmra.mxu1 %v2265_v34  ;;  %2492 = vmatmul.f32.gmra.mxu2 %v4193_v25  ;;  %v2288_v26 = vld [vmem:[#allocation3 + $0x14] sm:$0xff]  ;;  %v2289_v7 = vld [vmem:[#allocation3 + $0x1c] sm:$0xff] }
 0x5ea   :  { %v2291_v11 = vld [vmem:[#allocation3 + $0x2c] sm:$0xff] }
 0x5eb   :  { %v2292_v33 = vld [vmem:[#allocation3 + $0x34] sm:$0xff] }
 0x5ec   :  { %v2293_v53 = vld [vmem:[#allocation3 + $0x3c] sm:$0xff]  ;;  %v2294_v14 = vld [vmem:[#allocation3 + $0x44] sm:$0xff] }
 0x5f0   :  { %2424 = vmatmul.f32.gmra.mxu3 %v2287_v46  ;;  %2383 = vmatmul.f32.gmra.mxu0 %v2266_v50 }
 0x5f1   :  { %2474 = vmatmul.f32.gmra.mxu1 %v2266_v50 }
 0x5f8   :  { %2427 = vmatmul.f32.gmra.mxu3 %v2288_v26  ;;  %2386 = vmatmul.f32.gmra.mxu0 %v4193_v25  ;;  %v3099_v26 = vunpack.i.h.bf16 %v3097_v62 }
 0x5f9   :  { %2477 = vmatmul.f32.gmra.mxu1 %v4193_v25 }
 0x600   :  { %2430 = vmatmul.f32.gmra.mxu3 %v2289_v7  ;;  %2389 = vmatmul.f32.gmra.mxu0 %v4193_v25 }
 0x601   :  { %2480 = vmatmul.f32.gmra.mxu1 %v4193_v25 }
 0x608   :  { %2433 = vmatmul.f32.gmra.mxu3 %v2290_v10  ;;  %2392 = vmatmul.f32.gmra.mxu0 %v2267_v6 }
 0x609   :  { %2483 = vmatmul.f32.gmra.mxu1 %v2267_v6  ;;  %v3102_v6 = vpop.permute.xlu0 %3101 }
 0x610   :  { %2436 = vmatmul.f32.gmra.mxu3 %v2291_v11  ;;  %2395 = vmatmul.f32.gmra.mxu0 %v2268_v61 }
 0x611   :  { %2486 = vmatmul.f32.gmra.mxu1 %v2268_v61 }
 0x618   :  { %2439 = vmatmul.f32.gmra.mxu3 %v2292_v33  ;;  %2398 = vmatmul.f32.gmra.mxu0 %v2269_v51  ;;  %v3098_v51 = vunpack.i.l.bf16 %v3097_v62 }
 0x620   :  { %2442 = vmatmul.f32.gmra.mxu3 %v2293_v53  ;;  %2401 = vmatmul.f32.gmra.mxu0 %v4193_v25 }
 0x628   :  { %2445 = vmatmul.f32.gmra.mxu3 %v2294_v14 }
 0x62d   :  { %v2375_v5 = vpop.f32.mrf.mxu0 }
 0x62e   :  { %v2376_v38 = vadd.f32 %v4250_v21, %v2375_v5  ;;  %v3103_v5 = vunpack.i.l.bf16 %v3102_v6 }
 0x630   :  { %2448 = vmatmul.f32.gmra.mxu3 %v2295_v15 }
 0x638   :  { %2495 = vmatmul.f32.vlgmr.msrb.gmra.mxu3 %v4193_v25 }
 0x65d   :  { %v2378_v43 = vpop.f32.mrf.mxu0  ;;  %v2469_v23 = vpop.f32.mrf.mxu1 }
 0x65e   :  { %v2379_v44 = vadd.f32 %v4250_v21, %v2378_v43 }
 0x664   :  { %v2490_v56 = vpop.f32.mrf.mxu2 }
 0x665   :  { %v2381_v16 = vpop.f32.mrf.mxu0 }
 0x666   :  { %v2472_v55 = vpop.f32.mrf.mxu1  ;;  %v2382_v59 = vadd.f32 %v4250_v21, %v2381_v16 }
 0x66b   :  { %v2422_v20 = vpop.f32.mrf.mxu3 }
 0x66c   :  { %v2423_v45 = vadd.f32 %v2422_v20, %v2376_v38 }
 0x66d   :  { %v2384_v32 = vpop.f32.mrf.mxu0 }
 0x66e   :  { %v2475_v40 = vpop.f32.mrf.mxu1  ;;  %v2385_v0 = vadd.f32 %v4250_v21, %v2384_v32  ;;  %v4260_v3 = vadd.f32 %v2469_v23, %v2423_v45 }
 0x670   :  { %v2604_v57 = vmul.f32 %v4260_v3, %v4260_v3  ;;  %v2579_v33 = vmul.f32 %v3093_v37, %v4260_v3 }
 0x672   :  { %v2614_v43 = vmul.f32 %v3093_v37, %v2604_v57 }
 0x673   :  { %v2425_v30 = vpop.f32.mrf.mxu3 }
 0x674   :  { %v2426_v18 = vadd.f32 %v2425_v30, %v2379_v44  ;;  %v3107_v30 = vpop.permute.xlu1 %3106 }
 0x675   :  { %v2387_v42 = vpop.f32.mrf.mxu0 }
 0x676   :  { %v2478_v35 = vpop.f32.mrf.mxu1  ;;  %v2388_v47 = vadd.f32 %v4250_v21, %v2387_v42  ;;  %v4257_v49 = vadd.f32 %v2472_v55, %v2426_v18 }
 0x678   :  { %v2605_v58 = vmul.f32 %v4257_v49, %v4257_v49  ;;  %v2580_v61 = vmul.f32 %v3094_v39, %v4257_v49 }
 0x67a   :  { %v2615_v7 = vmul.f32 %v3094_v39, %v2605_v58  ;;  %v2589_v32 = vadd.f32 %v2580_v61, %v2579_v33 }
 0x67b   :  { %v2428_v27 = vpop.f32.mrf.mxu3 }
 0x67c   :  { %v2429_v28 = vadd.f32 %v2428_v27, %v2382_v59 }
 0x67d   :  { %v2390_v9 = vpop.f32.mrf.mxu0 }
 0x67e   :  { %v2481_v25 = vpop.f32.mrf.mxu1  ;;  %v2391_v52 = vadd.f32 %v4250_v21, %v2390_v9  ;;  %v2476_v17 = vadd.f32 %v2475_v40, %v2429_v28  ;;  %v2493_v9 = vpop.f32.mrf.mxu2 }
 0x680   :  { %v2606_v63 = vmul.f32 %v2476_v17, %v2476_v17  ;;  %v2581_v53 = vmul.f32 %v3098_v51, %v2476_v17 }
 0x682   :  { %v2616_v20 = vmul.f32 %v3098_v51, %v2606_v63 }
 0x683   :  { %v2431_v29 = vpop.f32.mrf.mxu3 }
 0x684   :  { %v2432_v12 = vadd.f32 %v2431_v29, %v2385_v0  ;;  %v2624_v29 = vadd.f32 %v2615_v7, %v2614_v43 }
 0x685   :  { %v2393_v36 = vpop.f32.mrf.mxu0 }
 0x686   :  { %v2484_v54 = vpop.f32.mrf.mxu1  ;;  %v2479_v31 = vadd.f32 %v2478_v35, %v2432_v12  ;;  %v2394_v22 = vadd.f32 %v4250_v21, %v2393_v36  ;;  %v3104_v35 = vunpack.i.h.bf16 %v3102_v6  ;;  %v2625_v38 = vadd.f32 %v2624_v29, %v2616_v20 }
 0x688   :  { %v2607_v10 = vmul.f32 %v2479_v31, %v2479_v31  ;;  %v2582_v27 = vmul.f32 %v3099_v26, %v2479_v31 }
 0x68a   :  { %v2617_v40 = vmul.f32 %v3099_v26, %v2607_v10 }
 0x68b   :  { %v2434_v1 = vpop.f32.mrf.mxu3 }
 0x68c   :  { %v2435_v4 = vadd.f32 %v2434_v1, %v2388_v47  ;;  %v2626_v12 = vadd.f32 %v2625_v38, %v2617_v40 }
 0x68d   :  { %v2396_v41 = vpop.f32.mrf.mxu0 }
 0x68e   :  { %v2482_v2 = vadd.f32 %v2481_v25, %v2435_v4  ;;  %v2397_v48 = vadd.f32 %v4250_v21, %v2396_v41  ;;  %v2487_v23 = vpop.f32.mrf.mxu1  ;;  %v3112_v41 = vpop.permute.xlu2 %3111 }
 0x690   :  { %v2608_v16 = vmul.f32 %v2482_v2, %v2482_v2  ;;  %v2583_v36 = vmul.f32 %v3103_v5, %v2482_v2 }
 0x692   :  { %v2618_v44 = vmul.f32 %v3103_v5, %v2608_v16 }
 0x693   :  { %v2437_v8 = vpop.f32.mrf.mxu3 }
 0x694   :  { %v2438_v60 = vadd.f32 %v2437_v8, %v2391_v52  ;;  %v2590_v8 = vadd.f32 %v2589_v32, %v2581_v53  ;;  %v2627_v58 = vadd.f32 %v2626_v12, %v2618_v44 }
 0x695   :  { %v2399_v34 = vpop.f32.mrf.mxu0 }
 0x696   :  { %v4269_v11 = vadd.f32 %v2484_v54, %v2438_v60  ;;  %v2400_v14 = vadd.f32 %v4250_v21, %v2399_v34  ;;  %v2591_v45 = vadd.f32 %v2590_v8, %v2582_v27  ;;  %v3114_v34 = vunpack.i.h.bf16 %v3112_v41 }
 0x698   :  { %v2609_v1 = vmul.f32 %v4269_v11, %v4269_v11  ;;  %v2584_v0 = vmul.f32 %v3104_v35, %v4269_v11  ;;  %v2592_v54 = vadd.f32 %v2591_v45, %v2583_v36  ;;  %v3132_v45 = vld [vmem:[%s4350_s29] ss:$0 sm:$0xff] }
 0x69a   :  { %v2619_v52 = vmul.f32 %v3104_v35, %v2609_v1  ;;  %v2593_v31 = vadd.f32 %v2592_v54, %v2584_v0 }
 0x69b   :  { %v2440_v24 = vpop.f32.mrf.mxu3 }
 0x69c   :  { %v2441_v46 = vadd.f32 %v2440_v24, %v2394_v22  ;;  %v3108_v24 = vunpack.i.l.bf16 %v3107_v30  ;;  %v2628_v22 = vadd.f32 %v2627_v58, %v2619_v52  ;;  %v3133_v52 = vld [vmem:[%s4351_s19] ss:$0 sm:$0xff] }
 0x69d   :  { %v2402_v59 = vpop.f32.mrf.mxu0 }
 0x69e   :  { %v4273_v55 = vadd.f32 %v2487_v23, %v2441_v46  ;;  %v2403_v4 = vadd.f32 %v4250_v21, %v2402_v59 }
 0x6a0   :  { %v2610_v28 = vmul.f32 %v4273_v55, %v4273_v55  ;;  %v2585_v19 = vmul.f32 %v3108_v24, %v4273_v55 }
 0x6a2   :  { %v2620_v60 = vmul.f32 %v3108_v24, %v2610_v28  ;;  %v2594_v63 = vadd.f32 %v2593_v31, %v2585_v19 }
 0x6a3   :  { %v2443_v13 = vpop.f32.mrf.mxu3 }
 0x6a4   :  { %v2444_v15 = vadd.f32 %v2443_v13, %v2397_v48  ;;  %v3109_v13 = vunpack.i.h.bf16 %v3107_v30  ;;  %v2629_v61 = vadd.f32 %v2628_v22, %v2620_v60 }
 0x6a6   :  { %v2491_v25 = vadd.f32 %v2490_v56, %v2444_v15  ;;  %v3113_v56 = vunpack.i.l.bf16 %v3112_v41 }
 0x6a8   :  { %v2611_v17 = vmul.f32 %v2491_v25, %v2491_v25  ;;  %v2586_v39 = vmul.f32 %v3109_v13, %v2491_v25 }
 0x6aa   :  { %v2621_v37 = vmul.f32 %v3109_v13, %v2611_v17  ;;  %v2595_v6 = vadd.f32 %v2594_v63, %v2586_v39 }
 0x6ab   :  { %v2446_v50 = vpop.f32.mrf.mxu3 }
 0x6ac   :  { %v2447_v42 = vadd.f32 %v2446_v50, %v2400_v14  ;;  %v2630_v26 = vadd.f32 %v2629_v61, %v2621_v37  ;;  %v2686_v61 = vld [vmem:[%s4352_s11] sm:$0x3] }
 0x6ae   :  { %v2494_v47 = vadd.f32 %v2493_v9, %v2447_v42 }
 0x6b0   :  { %v2612_v62 = vmul.f32 %v2494_v47, %v2494_v47  ;;  %v2587_v57 = vmul.f32 %v3113_v56, %v2494_v47 }
 0x6b2   :  { %v2622_v51 = vmul.f32 %v3113_v56, %v2612_v62  ;;  %v2596_v46 = vadd.f32 %v2595_v6, %v2587_v57  ;;  %v3158_v57 = vld [vmem:[#allocation2 + $0x28] sm:$0xff] }
 0x6b3   :  { %v2449_v18 = vpop.f32.mrf.mxu3  ;;  %v3160_v6 = vld [vmem:[#allocation2 + $0x8] sm:$0xff] }
 0x6b4   :  { %v2450_v2 = vadd.f32 %v2449_v18, %v2403_v4  ;;  %v2631_v10 = vadd.f32 %v2630_v26, %v2622_v51  ;;  %v2724_v26 = vld [vmem:[%s4353_s10 + $0x68] sm:$0xff] }
 0x6bb   :  { %v2496_v50 = vpop.f32.mrf.mxu3 }
 0x6bc   :  { %v2497_v48 = vadd.f32 %v2496_v50, %v2450_v2 }
 0x6be   :  { %v2588_v21 = vmul.f32 %v3114_v34, %v2497_v48  ;;  %v2613_v7 = vmul.f32 %v2497_v48, %v2497_v48  ;;  %v2726_v48 = vld [vmem:[%s4353_s10 + $0x78] sm:$0xff] }
 0x6c0   :  { %v2597_v33 = vadd.f32 %v2596_v46, %v2588_v21  ;;  %v2623_v53 = vmul.f32 %v3114_v34, %v2613_v7  ;;  %v3159_v34 = vld [vmem:[#allocation2 + $0x10] sm:$0xff]  ;;  %v2723_v21 = vld [vmem:[%s4353_s10 + $0x60] sm:$0xff]  ;;  %v2722_v7 = vld [vmem:[%s4353_s10 + $0x58] sm:$0xff] }
 0x6c1   :  { %v2725_v46 = vld [vmem:[%s4353_s10 + $0x70] sm:$0xff] }
 0x6c2   :  { %v2598_v14 = vrot.slane %v2597_v33, 4  ;;  %v2632_v15 = vadd.f32 %v2631_v10, %v2623_v53  ;;  %v2721_v10 = vld [vmem:[%s4353_s10 + $0x50] sm:$0xff]  ;;  %v2719_v53 = vld [vmem:[%s4353_s10 + $0x40] sm:$0xff] }
 0x6c4   :  { %v2599_v5 = vadd.f32 %v2598_v14, %v2597_v33  ;;  %v2633_v43 = vrot.slane %v2632_v15, 4  ;;  %v2720_v33 = vld [vmem:[%s4353_s10 + $0x48] sm:$0xff]  ;;  %v2718_v14 = vld [vmem:[%s4353_s10 + $0x38] sm:$0xff] }
 0x6c6   :  { %v2600_v20 = vrot.slane %v2599_v5, 2  ;;  %v2634_v16 = vadd.f32 %v2633_v43, %v2632_v15  ;;  %v2717_v15 = vld [vmem:[%s4353_s10 + $0x30] sm:$0xff]  ;;  %v2715_v43 = vld [vmem:[%s4353_s10 + $0x20] sm:$0xff] }
 0x6c8   :  { %v2601_v23 = vadd.f32 %v2600_v20, %v2599_v5  ;;  %v2635_v30 = vrot.slane %v2634_v16, 2  ;;  %v2716_v5 = vld [vmem:[%s4353_s10 + $0x28] sm:$0xff]  ;;  %v2714_v20 = vld [vmem:[%s4353_s10 + $0x18] sm:$0xff] }
 0x6ca   :  { %v2602_v32 = vrot.slane %v2601_v23, 1  ;;  %v2636_v27 = vadd.f32 %v2635_v30, %v2634_v16  ;;  %v2713_v16 = vld [vmem:[%s4353_s10 + $0x10] sm:$0xff]  ;;  %v2711_v30 = vld [vmem:[%s4353_s10] sm:$0xff] }
 0x6cc   :  { %v2603_v42 = vadd.f32 %v2602_v32, %v2601_v23  ;;  %v2637_v29 = vrot.slane %v2636_v27, 1  ;;  %v2712_v23 = vld [vmem:[%s4353_s10 + $0x8] sm:$0xff]  ;;  %v2759_v32 = vld [vmem:[%s3552_s27 + $0x38] sm:$0xff] }
 0x6cd   :  { %2776 = vmatpush.msrb.mxu0 %v2759_v32 }
 0x6ce   :  { %v2638_v40 = vadd.f32 %v2637_v29, %v2636_v27  ;;  %v2639_v1 = vmul.f32 0.015625, %v2603_v42  ;;  %v2758_v27 = vld [vmem:[%s3552_s27 + $0x30] sm:$0xff]  ;;  %v2757_v42 = vld [vmem:[%s3552_s27 + $0x28] sm:$0xff]  ;;  %v2756_v29 = vld [vmem:[%s3552_s27 + $0x20] sm:$0xff] }
 0x6cf   :  { %2777 = vmatpush.msrb.mxu0 %v2758_v27 }
 0x6d0   :  { %v2640_v9 = vmul.f32 0.015625, %v2638_v40  ;;  %v2641_v35 = vmul.f32 %v2639_v1, %v2639_v1  ;;  %v2646_v41 = vsub.f32 %v4273_v55, %v2639_v1  ;;  %v2645_v0 = vsub.f32 %v4269_v11, %v2639_v1  ;;  %v2755_v40 = vld [vmem:[%s3552_s27 + $0x18] sm:$0xff] }
 0x6d1   :  { %v2644_v28 = vsub.f32 %v4257_v49, %v2639_v1  ;;  %v2643_v47 = vsub.f32 %v4260_v3, %v2639_v1  ;;  %v3157_v49 = vld [vmem:[#allocation2 + $0x30] sm:$0xff]  ;;  %2778 = vmatpush.msrb.mxu0 %v2757_v42 }
 0x6d2   :  { %v2642_v8 = vsub.f32 %v2640_v9, %v2641_v35  ;;  %v2754_v1 = vld [vmem:[%s3552_s27 + $0x10] sm:$0xff]  ;;  %v2753_v9 = vld [vmem:[%s3552_s27 + $0x8] sm:$0xff]  ;;  %v2752_v35 = vld [vmem:[%s3552_s27] sm:$0xff]  ;;  %s3317_s27 = sshra.s32 %s2798_s12, 4  ;;  %s3318_s27 = int_to_ptr.hbm [resolvable:$true] %s3317_s27 }
 0x6d3   :  { %2779 = vmatpush.msrb.mxu0 %v2756_v29  ;;  %p3322_p3 = scmp.lt.s32.totalorder %s3318_s27, %s3562_s30 }
 0x6d4   :  { %v2647_v36 = vadd.f32 1e-05, %v2642_v8 }
 0x6d5   :  { %2780 = vmatpush.msrb.mxu0 %v2755_v40 }
 0x6d6   :  { %3146 = vrsqrt.f32 %v2647_v36  ;;  %vm2654_vm6 = vweird.f32 %v2647_v36 }
 0x6d7   :  { %2781 = vmatpush.msrb.mxu0 %v2754_v1 }
 0x6d9   :  { %2782 = vmatpush.msrb.mxu0 %v2753_v9 }
 0x6db   :  { %2783 = vmatpush.msrb.mxu0 %v2752_v35 }
 0x6dc   :  { %v3147_v25 = vpop.eup %3146 }
 0x6dd   :  { %v2649_v24 = vmul.f32 %v3147_v25, %v2647_v36  ;;  %vm2655_vm5 = vweird.f32 %v3147_v25  ;;  %v3134_v36 = vld [vmem:[%s3547_s20] ss:$0 sm:$0xff]  ;;  %s3319_s20 = scalar_lea.hbm %s3318_s27, 2 }
 0x6de   :  { %vm2656_vm7 = vmor %vm2654_vm6, %vm2655_vm5  ;;  %p3320_p2 = scmp.ne.s32.totalorder %s3318_s27, %s3319_s20  ;;  %p3323_p4 = scmp.lt.s32.totalorder %s3321_s23, %s3319_s20 }
 0x6df   :  { %v2650_v38 = vmul.f32 %v3147_v25, %v2649_v24 }
 0x6e0   :  { %p3324_p5 = por %p3323_p4, %p3322_p3 }
 0x6e1   :  { %v2651_v44 = vmul.f32 0.5, %v2650_v38 }
 0x6e2   :  { %p3325_p6 = pnand %p3324_p5, %p3320_p2 }
 0x6e3   :  { %v2652_v59 = vsub.f32 1.5, %v2651_v44  ;;  %v3135_v44 = vld [vmem:[%s3557_s4] ss:$0 sm:$0xff] }
 0x6e5   :  { %v2653_v18 = vmul.f32 %v3147_v25, %v2652_v59 }
 0x6e7   :  { %v2657_v13 = vsel %vm2656_vm7, %v3147_v25, %v2653_v18 }
 0x6e8   :  { %v2661_v12 = vmul.f32 %v2657_v13, %v2646_v41  ;;  %v2660_v54 = vmul.f32 %v2657_v13, %v2645_v0  ;;  %v2659_v19 = vmul.f32 %v2657_v13, %v2644_v28  ;;  %v2658_v17 = vmul.f32 %v2657_v13, %v2643_v47 }
 0x6ea   :  { %v2669_v4 = vmul.f32 %v3132_v45, %v2661_v12  ;;  %v2668_v56 = vmul.f32 %v3132_v45, %v2660_v54  ;;  %v2667_v58 = vmul.f32 %v3132_v45, %v2659_v19  ;;  %v2666_v31 = vmul.f32 %v3132_v45, %v2658_v17 }
 0x6ec   :  { %v2677_v60 = vadd.f32 %v3133_v52, %v2669_v4  ;;  %v2676_v55 = vadd.f32 %v3133_v52, %v2668_v56  ;;  %v2675_v39 = vadd.f32 %v3133_v52, %v2667_v58  ;;  %v2674_v22 = vadd.f32 %v3133_v52, %v2666_v31 }
 0x6ee   :  { %v2681_v62 = vmax.f32 %v2677_v60, 0.0  ;;  %v2680_v11 = vmax.f32 %v2676_v55, 0.0  ;;  %v2679_v37 = vmax.f32 %v2675_v39, 0.0  ;;  %v2678_v2 = vmax.f32 %v2674_v22, 0.0 }
 0x6f0   :  { %v2685_v3 = vadd.f32 %v3157_v49, %v2681_v62  ;;  %v2684_v63 = vadd.f32 %v3158_v57, %v2680_v11  ;;  %v2683_v50 = vadd.f32 %v3159_v34, %v2679_v37  ;;  %v2682_v51 = vadd.f32 %v3160_v6, %v2678_v2 }
 0x6f2   :  { %2703 = vmatpush.msrb.mxu2 %v2685_v3 }
 0x6f4   :  { %2704 = vmatpush.msrb.mxu2 %v2684_v63 }
 0x6f6   :  { %2705 = vmatpush.msrb.mxu2 %v2683_v50 }
 0x6f8   :  { %2706 = vmatpush.msrb.mxu2 %v2682_v51 }
 0x6f9   :  { %2898 = vmatmul.msk.f32.vlgmr.msrb.gmra.mxu2 %vm2687_vm8, %v2686_v61 }
 0x6fa   :  { %2731 = vmatpush.msra.mxu2 %v2726_v48 }
 0x6fc   :  { %2732 = vmatpush.msra.mxu2 %v2725_v46 }
 0x6fe   :  { %2733 = vmatpush.msra.mxu2 %v2724_v26 }
 0x700   :  { %2734 = vmatpush.msra.mxu2 %v2723_v21 }
 0x702   :  { %2735 = vmatpush.msra.mxu2 %v2722_v7 }
 0x704   :  { %2736 = vmatpush.msra.mxu2 %v2721_v10 }
 0x706   :  { %2737 = vmatpush.msra.mxu2 %v2720_v33 }
 0x708   :  { %2738 = vmatpush.msra.mxu2 %v2719_v53 }
 0x70a   :  { %2739 = vmatpush.msra.mxu2 %v2718_v14 }
 0x70c   :  { %2740 = vmatpush.msra.mxu2 %v2717_v15 }
 0x70e   :  { %2741 = vmatpush.msra.mxu2 %v2716_v5 }
 0x710   :  { %2742 = vmatpush.msra.mxu2 %v2715_v43 }
 0x712   :  { %2743 = vmatpush.msra.mxu2 %v2714_v20 }
 0x714   :  { %2744 = vmatpush.msra.mxu2 %v2713_v16 }
 0x716   :  { %2745 = vmatpush.msra.mxu2 %v2712_v23 }
 0x718   :  { %2746 = vmatpush.msra.mxu2 %v2711_v30 }
 0x77c   :  { %v2708_v8 = vpop.f32.mrf.mxu2 }
 0x77d   :  { %2747 = vmatmul.f32.vlgmr.msra.gmra.mxu2 %v2708_v8 }
 0x800   :  { %v2748_v25 = vpop.f32.mrf.mxu2 }
 0x801   :  { %v2749_v24 = vadd.f32 %v3134_v36, %v2748_v25 }
 0x803   :  { %v2751_v38 = vmax.f32 %v2749_v24, 0.0 }
 0x805   :  { %2899 = vmatmul.msk.f32.vlgmr.msrb.gmra.mxu0 %vm2764_vm9, %v2751_v38 }
 0x882   :  { %v2785_v59 = vpop.f32.mrf.mxu0 }
 0x883   :  { %v2786_v18 = vadd.f32 %v3135_v44, %v2785_v59 }
 0x885   :  { %2789 = vst.msk [vmem:[#allocation15] sm:$0x3] %vm2788_vm10, %v2786_v18 }
 0x886   :  { %3328 = shalt.err (!%p3325_p6)
}
 0x887   :  { %2800 = dma.vmem_to_hbm [thread:$0]  %s2796_s18, 32, %s2798_s12, [#allocation6]  }
 0x888   :  { %3337 = dma.done.wait [#allocation6], 32  }
 0x889   :  { %3338 = vsyncadd [#allocation6], 4294967264 }
 0x88a   :  { %2805 = vsyncpa [#allocation5], 1 }
 0x88b   :  { %2806 = vsyncpa [#allocation8], 1 }
 0x88c   :  { %2807 = vsyncpa [#allocation11], 1 }
 0x88d   :  { %2808 = vsyncpa [#allocation14], 1 }
 0x88e   :  { %2809 = vsyncpa [#allocation6], 1 }

</bundles_post_ra>
